<compile_context>
chip_gen: v5e
topology: v5e:2x2
jax: 0.10.0
libtpu: 0.0.40
codegen_flags: <defaults>
</compile_context>

<pallas_src>
import math
from functools import partial

import jax
import jax.numpy as jnp
from jax.experimental import pallas as pl
from jax.experimental.pallas import tpu as pltpu


def _round_up(a, b):
    return ((a + b - 1) // b) * b


# ---------------------------------------------------------------------------
# Fused kernel: one (batch, node-tile) step, all heads.
#   x ref    : (TN, E)      node features
#   e ref    : (TN, M)      scalar edge features, M on the lane axis
#   m ref    : (TN, M)      optional int8 mask (nonzero => masked)
#   wqkv ref : (E, 3*H*D)   resident qkv weight (transposed)
#   wprj ref : (H*D, E)     resident output-projection weight (transposed)
#   bprj ref : (1, E)       output-projection bias
#   ewv ref  : (4, H*D)     VMEM: rows = [wk, bk, wv, bv] (row-vector slices)
#   ews ref  : (4, H*D)     SMEM: same table (per-d scalar reads)
#   o ref    : (TN, E)      output tile (single lane-dense store)
# ---------------------------------------------------------------------------
def _fused_edge_attn_kernel(*refs, num_heads, head_size, has_mask, precision):
    if has_mask:
        (x_ref, e_ref, m_ref, wqkv_ref, wprj_ref, bprj_ref,
         ewv_ref, ews_ref, o_ref) = refs
    else:
        (x_ref, e_ref, wqkv_ref, wprj_ref, bprj_ref,
         ewv_ref, ews_ref, o_ref) = refs
        m_ref = None

    H, D = num_heads, head_size
    HD = H * D
    slope = jnp.float32(0.01)            # torch LeakyReLU default negative slope
    pos = jnp.float32(0.99)              # LeakyReLU(t) = 0.01*t + 0.99*relu(t)
    scale = jnp.float32(1.0 / math.sqrt(D))

    x_t = x_ref[...].astype(jnp.float32)                        # (TN, E)
    e_t = e_ref[...].astype(jnp.float32)                        # (TN, M)
    masked = (m_ref[...] != 0) if has_mask else None
    ew = ewv_ref[...]                                           # (4, HD)

    # Fused qkv projection on the MXU (resident weights, no HBM round trip).
    qkv = jnp.dot(x_t, wqkv_ref[...],
                  preferred_element_type=jnp.float32,
                  precision=precision)                          # (TN, 3*HD)

    TN = x_t.shape[0]
    col_iota = jax.lax.broadcasted_iota(jnp.int32, (1, HD), 1)  # hoisted
    hat_edge = jnp.zeros((TN, HD), jnp.float32)                 # edge-value part

    for h in range(H):                   # H, D small & static -> unrolled
        c0 = h * D
        q = qkv[:, c0:c0 + D] * scale                           # (TN, D) pre-scaled
        k = qkv[:, HD + c0:HD + c0 + D]

        wk_row = ew[0:1, c0:c0 + D]                             # (1, D)
        bk_row = ew[1:2, c0:c0 + D]

        # LeakyReLU linear part collapses over d into one (TN, M) fma.
        qk = jnp.sum(q * k, axis=-1, keepdims=True)             # (TN, 1)
        qwk = jnp.sum(q * wk_row, axis=-1, keepdims=True)       # (TN, 1)
        qbk = jnp.sum(q * bk_row, axis=-1, keepdims=True)       # (TN, 1)
        q99 = q * pos                                           # (TN, D)

        dots = e_t * (slope * qwk) + (qk + slope * qbk)         # (TN, M)
        for d in range(D):                                      # relu branch only
            wkd = ews_ref[0, c0 + d]
            bkd = ews_ref[1, c0 + d]
            t = jnp.maximum(e_t * wkd + bkd, 0.0)
            dots = dots + q99[:, d:d + 1] * t

        if has_mask:
            # masked_fill(-inf); a fully-masked row yields NaN, matching torch.
            dots = jnp.where(masked, -jnp.inf, dots)

        # softmax over neighbours (lane axis)
        mx = jnp.max(dots, axis=-1, keepdims=True)
        p = jnp.exp(dots - mx)
        l = jnp.sum(p, axis=-1, keepdims=True)
        inv = pl.reciprocal(l, approx=True)                     # EUP slot
        inv = inv * (2.0 - l * inv)                             # Newton: ~f32 exact
        attn = p * inv                                          # (TN, M)

        # hat_edge[:, c0+d] = 0.01*(sum_m(attn*e)*wv[d] + bv[d])
        #                   + sum_m relu(0.99*attn*e*wv[d] + 0.99*attn*bv[d])
        # (sum_m attn == 1; attn >= 0 lets 0.99*attn move inside the relu.)
        ae = attn * e_t                                         # (TN, M)
        ae_sum = jnp.sum(ae, axis=-1, keepdims=True)            # (TN, 1)
        ae99 = ae * pos
        a99 = attn * pos

        for d in range(D):
            wvd = ews_ref[2, c0 + d]
            bvd = ews_ref[3, c0 + d]
            y = jnp.maximum(ae99 * wvd + a99 * bvd, 0.0)        # (TN, M)
            col = jnp.sum(y, axis=-1, keepdims=True)            # (TN, 1)
            contrib = col + slope * (ae_sum * wvd + bvd)        # (TN, 1)
            # place column c0+d without any width-1 stores
            hat_edge = hat_edge + jnp.where(col_iota == (c0 + d), contrib, 0.0)

    # V contribution is the contiguous V slab of qkv (already 'B M (H D)' order).
    hat = qkv[:, 2 * HD:3 * HD] + hat_edge                      # (TN, HD)

    # Fused output projection (+bias) on the MXU; single lane-dense store.
    out = jnp.dot(hat, wprj_ref[...],
                  preferred_element_type=jnp.float32,
                  precision=precision) + bprj_ref[...]
    o_ref[...] = out.astype(o_ref.dtype)


# ---------------------------------------------------------------------------
# Tiling heuristics
# ---------------------------------------------------------------------------
def _choose_node_tile(B, N, M, E, has_mask, node_tile):
    n8 = _round_up(max(N, 1), 8)
    # rough per-node-row f32 working set: live (., M) temporaries + x/qkv/hat rows
    row_bytes = 4 * (12 * M + 8 * E) + (M if has_mask else 0)
    budget = 12 << 20                 # conservative vs v7x's 32 MiB scoped VMEM
    tn = min(node_tile, max(8, budget // max(row_bytes, 1)))
    if tn >= n8:
        tn = n8                       # whole (padded) node axis in one block
    else:
        tn = max(32, (tn // 32) * 32)  # 32-aligned keeps int8 mask tiles legal
    # give both TensorCores on 2-TC chips (v7x) >= 1 grid step each when possible
    while B * (_round_up(N, tn) // tn) < 2 and tn > 32:
        tn = max(32, _round_up(tn // 2, 32))
    return tn


# ---------------------------------------------------------------------------
# Module forward
# ---------------------------------------------------------------------------
def edge_weighted_mhsa(x, e, params, mask=None, *,
                       mxu_precision=jax.lax.Precision.DEFAULT,
                       node_tile=256):
    B, N, E = x.shape
    M = e.shape[-1]
    H = params["num_heads"]
    D = params["head_size"]
    HD = H * D
    has_mask = mask is not None

    # Resident (VMEM) projection weights -- a few KiB each.
    w_qkv_t = params["w_qkv"].T.astype(jnp.float32)             # (E, 3*HD)
    w_prj_t = params["w_prj"].T.astype(jnp.float32)             # (HD, E)
    b_prj = params["b_prj"].reshape(1, E).astype(jnp.float32)   # (1, E)

    # Edge projection Linear(1 -> 2*HD): pack [wk; bk; wv; bv] as a (4, HD)
    # table, passed as a VMEM tile (row slices) and in SMEM (per-d scalars).
    w_e = params["w_ekv"][:, 0].astype(jnp.float32)
    b_e = params["b_ekv"].astype(jnp.float32)
    ew = jnp.stack([w_e[:HD], b_e[:HD], w_e[HD:], b_e[HD:]], axis=0)   # (4, HD)

    # Node tiling: VMEM-bounded, never a giant full-dim fallback block; pad N
    # to the tile (row-independent math, padded rows are sliced off).
    TN = _choose_node_tile(B, N, M, E, has_mask, node_tile)
    Np = _round_up(N, TN)
    pad = Np - N
    xs, es = x, e
    ms = mask.astype(jnp.int8) if has_mask else None            # 1 B/elem DMA
    if pad:
        xs = jnp.pad(xs, ((0, 0), (0, pad), (0, 0)))
        es = jnp.pad(es, ((0, 0), (0, pad), (0, 0)))
        if has_mask:
            ms = jnp.pad(ms, ((0, 0), (0, pad), (0, 0)))

    grid = (B, Np // TN)
    idx_bn = lambda b, n: (b, n, 0)
    idx_w = lambda b, n: (0, 0)

    in_specs = [pl.BlockSpec((None, TN, E), idx_bn),            # x tile
                pl.BlockSpec((None, TN, M), idx_bn)]            # e tile
    inputs = [xs, es]
    if has_mask:
        in_specs.append(pl.BlockSpec((None, TN, M), idx_bn))    # int8 mask tile
        inputs.append(ms)
    in_specs += [pl.BlockSpec((E, 3 * HD), idx_w),              # w_qkv^T resident
                 pl.BlockSpec((HD, E), idx_w),                  # w_prj^T resident
                 pl.BlockSpec((1, E), idx_w),                   # b_prj
                 pl.BlockSpec((4, HD), idx_w),                  # ew rows (VMEM)
                 pl.BlockSpec(memory_space=pltpu.MemorySpace.SMEM)]  # ew scalars
    inputs += [w_qkv_t, w_prj_t, b_prj, ew, ew]

    # Scoped-VMEM hint, only when the conservative default would be tight.
    io = TN * (2 * E * 4 + M * 4 + (M if has_mask else 0))
    est = 4 * io + 8 * (3 * E * HD + HD * E + E + 4 * HD) + 12 * TN * M * 4
    vmem_limit = int(min(est + (8 << 20), 40 << 20)) if est > (12 << 20) else None

    kernel = partial(_fused_edge_attn_kernel, num_heads=H, head_size=D,
                     has_mask=has_mask, precision=mxu_precision)
    out = pl.pallas_call(
        kernel,
        out_shape=jax.ShapeDtypeStruct((B, Np, E), jnp.float32),
        grid=grid,
        in_specs=in_specs,
        out_specs=pl.BlockSpec((None, TN, E), idx_bn),
        compiler_params=pltpu.CompilerParams(
            dimension_semantics=("parallel", "parallel"),
            vmem_limit_bytes=vmem_limit),
    )(*inputs)
    return out[:, :N, :] if pad else out


# ---------------------------------------------------------------------------
# Pure-JAX reference (mirrors the torch forward exactly) for validation
# ---------------------------------------------------------------------------
def reference_forward(x, e, params, mask=None):
    B, N, E = x.shape
    M = e.shape[-1]
    H, D = params["num_heads"], params["head_size"]
    hp = jax.lax.Precision.HIGHEST

    qkv = jnp.einsum("bne,oe->bno", x, params["w_qkv"], precision=hp)
    qkv = qkv.reshape(B, N, 3, H, D)
    que = jnp.transpose(qkv[:, :, 0], (0, 2, 1, 3))
    key = jnp.transpose(qkv[:, :, 1], (0, 2, 1, 3))
    val = jnp.transpose(qkv[:, :, 2], (0, 2, 1, 3))

    pre = e[..., None] * params["w_ekv"][:, 0] + params["b_ekv"]     # (B,N,M,2HD)
    ekv = jnp.where(pre >= 0, pre, 0.01 * pre)
    ekv = ekv.reshape(B, N, M, 2, H, D)
    ekm = jnp.transpose(ekv[:, :, :, 0], (0, 3, 1, 2, 4))            # (B,H,N,M,D)
    evm = jnp.transpose(ekv[:, :, :, 1], (0, 3, 1, 2, 4))

    dots = jnp.einsum("bhnd,bhnmd->bhnm", que,
                      key[:, :, :, None, :] + ekm, precision=hp)
    if mask is not None:
        dots = jnp.where(mask.astype(bool)[:, None], -jnp.inf, dots)
    attn = jax.nn.softmax(dots / math.sqrt(D), axis=-1)
    hat = jnp.einsum("bhnm,bhnmd->bhnd", attn,
                     val[:, :, :, None, :] + evm, precision=hp)
    hat_flat = jnp.transpose(hat, (0, 2, 1, 3)).reshape(B, N, H * D)
    return (jnp.einsum("bnk,ek->bne", hat_flat, params["w_prj"], precision=hp)
            + params["b_prj"])


# ---------------------------------------------------------------------------
if __name__ == "__main__":
    B, N, M, E, H = 2, 8, 8, 32, 4
    D = E // H

    root = jax.random.PRNGKey(0)
    k_x, k_e, k_qkv, k_ew, k_eb, k_prj, k_m = jax.random.split(root, 7)

    x = jax.random.normal(k_x, (B, N, E), jnp.float32)
    e = jax.random.normal(k_e, (B, N, M), jnp.float32)

    stdv_q = 1.0 / math.sqrt(D)
    params = dict(
        num_heads=H,
        head_size=D,
        # qkv: Linear(E, 3*H*D, bias=False), U(-1/sqrt(D), 1/sqrt(D))
        w_qkv=jax.random.uniform(k_qkv, (3 * H * D, E), jnp.float32,
                                 -stdv_q, stdv_q),
        # ekv: Linear(1, 2*H*D, bias=True)
        w_ekv=jax.random.uniform(k_ew, (2 * H * D, 1), jnp.float32, -1.0, 1.0),
        b_ekv=jax.random.uniform(k_eb, (2 * H * D,), jnp.float32, -1.0, 1.0),
        # prj: Linear(H*D, E), U(-1/sqrt(E), 1/sqrt(E)), zero bias
        w_prj=jax.random.uniform(k_prj, (E, H * D), jnp.float32,
                                 -1.0 / math.sqrt(E), 1.0 / math.sqrt(E)),
        b_prj=jnp.zeros((E,), jnp.float32),
    )

    # neighbour mask with at least one un-masked neighbour per node (column 0)
    mask = (jax.random.uniform(k_m, (B, N, M)) > 0.7).at[:, :, 0].set(False)

    ref = reference_forward(x, e, params, mask=None)
    ref_masked = reference_forward(x, e, params, mask=mask)

    # 1) exact-f32 MXU path vs HIGHEST-precision reference (tight check)
    out_exact = jax.block_until_ready(
        edge_weighted_mhsa(x, e, params, mask=None,
                           mxu_precision=jax.lax.Precision.HIGHEST))
    if not bool(jnp.allclose(out_exact, ref, atol=2e-3, rtol=2e-3)):
        raise RuntimeError("exact-precision mismatch, max abs err "
                           f"{float(jnp.max(jnp.abs(out_exact - ref)))}")

    # 2) masked path (exact precision)
    out_masked = jax.block_until_ready(
        edge_weighted_mhsa(x, e, params, mask=mask,
                           mxu_precision=jax.lax.Precision.HIGHEST))
    if not bool(jnp.allclose(out_masked, ref_masked, atol=2e-3, rtol=2e-3)):
        raise RuntimeError("masked mismatch, max abs err "
                           f"{float(jnp.max(jnp.abs(out_masked - ref_masked)))}")

    # 3) default fast MXU path (bf16-rounded MXU operands) -- loose sanity bound
    out_fast = jax.block_until_ready(edge_weighted_mhsa(x, e, params, mask=None))
    if not bool(jnp.allclose(out_fast, ref, atol=1e-1, rtol=1e-1)):
        raise RuntimeError("fast-precision sanity check failed, max abs err "
                           f"{float(jnp.max(jnp.abs(out_fast - ref)))}")

    print("KERNEL_OK")
</pallas_src>

<mosaic_0001>
module attributes {stable_mosaic.version = 11 : i64} {
  func.func @_fused_edge_attn_kernel(%arg0: i32, %arg1: i32, %arg2: memref<1x8x32xf32, #tpu.memory_space<vmem>>, %arg3: memref<1x8x8xf32, #tpu.memory_space<vmem>>, %arg4: memref<32x96xf32, #tpu.memory_space<vmem>>, %arg5: memref<32x32xf32, #tpu.memory_space<vmem>>, %arg6: memref<1x32xf32, #tpu.memory_space<vmem>>, %arg7: memref<4x32xf32, #tpu.memory_space<vmem>>, %arg8: memref<4x32xf32, #tpu.memory_space<smem>>, %arg9: memref<1x8x32xf32, #tpu.memory_space<vmem>>) attributes {dimension_semantics = [#tpu.dimension_semantics<parallel>, #tpu.dimension_semantics<parallel>], iteration_bounds = array<i64: 2, 1>, scalar_prefetch = 0 : i64, scratch_operands = 0 : i64, tpu.core_type = #tpu.core_type<tc>, window_params = [{transform_indices = @transform_0, window_bounds = array<i64: 1, 8, 32>}, {transform_indices = @transform_1, window_bounds = array<i64: 1, 8, 8>}, {pipeline_mode = #tpu.pipeline_mode<synchronous>, transform_indices = @transform_2, window_bounds = array<i64: 32, 96>}, {pipeline_mode = #tpu.pipeline_mode<synchronous>, transform_indices = @transform_3, window_bounds = array<i64: 32, 32>}, {pipeline_mode = #tpu.pipeline_mode<synchronous>, transform_indices = @transform_4, window_bounds = array<i64: 1, 32>}, {pipeline_mode = #tpu.pipeline_mode<synchronous>, transform_indices = @transform_5, window_bounds = array<i64: 4, 32>}, {transform_indices = @transform_6, window_bounds = array<i64: 4, 32>}, {transform_indices = @transform_7, window_bounds = array<i64: 1, 8, 32>}]} {
    %c0 = arith.constant 0 : index
    %c0_0 = arith.constant 0 : index
    %c0_1 = arith.constant 0 : index
    %0 = vector.load %arg2[%c0, %c0_0, %c0_1] : memref<1x8x32xf32, #tpu.memory_space<vmem>>, vector<1x8x32xf32>
    %1 = vector.shape_cast %0 : vector<1x8x32xf32> to vector<8x32xf32>
    %c0_2 = arith.constant 0 : index
    %c0_3 = arith.constant 0 : index
    %c0_4 = arith.constant 0 : index
    %2 = vector.load %arg3[%c0_2, %c0_3, %c0_4] : memref<1x8x8xf32, #tpu.memory_space<vmem>>, vector<1x8x8xf32>
    %3 = vector.shape_cast %2 : vector<1x8x8xf32> to vector<8x8xf32>
    %c0_5 = arith.constant 0 : index
    %c0_6 = arith.constant 0 : index
    %4 = vector.load %arg7[%c0_5, %c0_6] : memref<4x32xf32, #tpu.memory_space<vmem>>, vector<4x32xf32>
    %c0_7 = arith.constant 0 : index
    %c0_8 = arith.constant 0 : index
    %5 = vector.load %arg4[%c0_7, %c0_8] : memref<32x96xf32, #tpu.memory_space<vmem>>, vector<32x96xf32>
    %cst = arith.constant dense<0.000000e+00> : vector<8x96xf32>
    %6 = tpu.matmul %1, %5, %cst {dimension_numbers = #tpu.dot_dimension_numbers<[1], [0], [0], [1], [0, 0, 1, 1], [], []>, precision = #tpu.contract_precision<fp32>} : vector<8x32xf32>, vector<32x96xf32>, vector<8x96xf32> -> vector<8x96xf32>
    %7 = tpu.iota {dimensions = array<i32: 1>} : vector<1x32xi32>
    %cst_9 = arith.constant 0.000000e+00 : f32
    %8 = vector.broadcast %cst_9 : f32 to vector<8x32xf32>
    %9 = vector.extract_strided_slice %6 {offsets = [0, 0], sizes = [8, 8], strides = [1, 1]} : vector<8x96xf32> to vector<8x8xf32>
    %cst_10 = arith.constant 0.353553385 : f32
    %10 = vector.broadcast %cst_10 : f32 to vector<8x8xf32>
    %11 = arith.mulf %9, %10 : vector<8x8xf32>
    %12 = vector.extract_strided_slice %6 {offsets = [0, 32], sizes = [8, 8], strides = [1, 1]} : vector<8x96xf32> to vector<8x8xf32>
    %13 = vector.extract_strided_slice %4 {offsets = [0, 0], sizes = [1, 8], strides = [1, 1]} : vector<4x32xf32> to vector<1x8xf32>
    %14 = vector.extract_strided_slice %4 {offsets = [1, 0], sizes = [1, 8], strides = [1, 1]} : vector<4x32xf32> to vector<1x8xf32>
    %15 = arith.mulf %11, %12 : vector<8x8xf32>
    %cst_11 = arith.constant dense<0.000000e+00> : vector<8xf32>
    %16 = vector.multi_reduction <add>, %15, %cst_11 [1] : vector<8x8xf32> to vector<8xf32>
    %17 = vector.shape_cast %16 : vector<8xf32> to vector<8x1xf32>
    %18 = vector.broadcast %13 : vector<1x8xf32> to vector<8x8xf32>
    %19 = arith.mulf %11, %18 : vector<8x8xf32>
    %cst_12 = arith.constant dense<0.000000e+00> : vector<8xf32>
    %20 = vector.multi_reduction <add>, %19, %cst_12 [1] : vector<8x8xf32> to vector<8xf32>
    %21 = vector.shape_cast %20 : vector<8xf32> to vector<8x1xf32>
    %22 = vector.broadcast %14 : vector<1x8xf32> to vector<8x8xf32>
    %23 = arith.mulf %11, %22 : vector<8x8xf32>
    %cst_13 = arith.constant dense<0.000000e+00> : vector<8xf32>
    %24 = vector.multi_reduction <add>, %23, %cst_13 [1] : vector<8x8xf32> to vector<8xf32>
    %25 = vector.shape_cast %24 : vector<8xf32> to vector<8x1xf32>
    %cst_14 = arith.constant 9.900000e-01 : f32
    %26 = vector.broadcast %cst_14 : f32 to vector<8x8xf32>
    %27 = arith.mulf %11, %26 : vector<8x8xf32>
    %cst_15 = arith.constant 0.00999999977 : f32
    %28 = vector.broadcast %cst_15 : f32 to vector<8x1xf32>
    %29 = arith.mulf %28, %21 : vector<8x1xf32>
    %30 = vector.broadcast %29 : vector<8x1xf32> to vector<8x8xf32>
    %31 = arith.mulf %3, %30 : vector<8x8xf32>
    %cst_16 = arith.constant 0.00999999977 : f32
    %32 = vector.broadcast %cst_16 : f32 to vector<8x1xf32>
    %33 = arith.mulf %32, %25 : vector<8x1xf32>
    %34 = arith.addf %17, %33 : vector<8x1xf32>
    %35 = vector.broadcast %34 : vector<8x1xf32> to vector<8x8xf32>
    %36 = arith.addf %31, %35 : vector<8x8xf32>
    %c0_17 = arith.constant 0 : index
    %c0_18 = arith.constant 0 : index
    %37 = memref.load %arg8[%c0_17, %c0_18] : memref<4x32xf32, #tpu.memory_space<smem>>
    %c1 = arith.constant 1 : index
    %c0_19 = arith.constant 0 : index
    %38 = memref.load %arg8[%c1, %c0_19] : memref<4x32xf32, #tpu.memory_space<smem>>
    %39 = vector.broadcast %37 : f32 to vector<8x8xf32>
    %40 = arith.mulf %3, %39 : vector<8x8xf32>
    %41 = vector.broadcast %38 : f32 to vector<8x8xf32>
    %42 = arith.addf %40, %41 : vector<8x8xf32>
    %cst_20 = arith.constant 0.000000e+00 : f32
    %43 = vector.broadcast %cst_20 : f32 to vector<8x8xf32>
    %44 = arith.maximumf %42, %43 : vector<8x8xf32>
    %45 = vector.extract_strided_slice %27 {offsets = [0, 0], sizes = [8, 1], strides = [1, 1]} : vector<8x8xf32> to vector<8x1xf32>
    %46 = vector.broadcast %45 : vector<8x1xf32> to vector<8x8xf32>
    %47 = arith.mulf %46, %44 : vector<8x8xf32>
    %48 = arith.addf %36, %47 : vector<8x8xf32>
    %c0_21 = arith.constant 0 : index
    %c1_22 = arith.constant 1 : index
    %49 = memref.load %arg8[%c0_21, %c1_22] : memref<4x32xf32, #tpu.memory_space<smem>>
    %c1_23 = arith.constant 1 : index
    %c1_24 = arith.constant 1 : index
    %50 = memref.load %arg8[%c1_23, %c1_24] : memref<4x32xf32, #tpu.memory_space<smem>>
    %51 = vector.broadcast %49 : f32 to vector<8x8xf32>
    %52 = arith.mulf %3, %51 : vector<8x8xf32>
    %53 = vector.broadcast %50 : f32 to vector<8x8xf32>
    %54 = arith.addf %52, %53 : vector<8x8xf32>
    %cst_25 = arith.constant 0.000000e+00 : f32
    %55 = vector.broadcast %cst_25 : f32 to vector<8x8xf32>
    %56 = arith.maximumf %54, %55 : vector<8x8xf32>
    %57 = vector.extract_strided_slice %27 {offsets = [0, 1], sizes = [8, 1], strides = [1, 1]} : vector<8x8xf32> to vector<8x1xf32>
    %58 = vector.broadcast %57 : vector<8x1xf32> to vector<8x8xf32>
    %59 = arith.mulf %58, %56 : vector<8x8xf32>
    %60 = arith.addf %48, %59 : vector<8x8xf32>
    %c0_26 = arith.constant 0 : index
    %c2 = arith.constant 2 : index
    %61 = memref.load %arg8[%c0_26, %c2] : memref<4x32xf32, #tpu.memory_space<smem>>
    %c1_27 = arith.constant 1 : index
    %c2_28 = arith.constant 2 : index
    %62 = memref.load %arg8[%c1_27, %c2_28] : memref<4x32xf32, #tpu.memory_space<smem>>
    %63 = vector.broadcast %61 : f32 to vector<8x8xf32>
    %64 = arith.mulf %3, %63 : vector<8x8xf32>
    %65 = vector.broadcast %62 : f32 to vector<8x8xf32>
    %66 = arith.addf %64, %65 : vector<8x8xf32>
    %cst_29 = arith.constant 0.000000e+00 : f32
    %67 = vector.broadcast %cst_29 : f32 to vector<8x8xf32>
    %68 = arith.maximumf %66, %67 : vector<8x8xf32>
    %69 = vector.extract_strided_slice %27 {offsets = [0, 2], sizes = [8, 1], strides = [1, 1]} : vector<8x8xf32> to vector<8x1xf32>
    %70 = vector.broadcast %69 : vector<8x1xf32> to vector<8x8xf32>
    %71 = arith.mulf %70, %68 : vector<8x8xf32>
    %72 = arith.addf %60, %71 : vector<8x8xf32>
    %c0_30 = arith.constant 0 : index
    %c3 = arith.constant 3 : index
    %73 = memref.load %arg8[%c0_30, %c3] : memref<4x32xf32, #tpu.memory_space<smem>>
    %c1_31 = arith.constant 1 : index
    %c3_32 = arith.constant 3 : index
    %74 = memref.load %arg8[%c1_31, %c3_32] : memref<4x32xf32, #tpu.memory_space<smem>>
    %75 = vector.broadcast %73 : f32 to vector<8x8xf32>
    %76 = arith.mulf %3, %75 : vector<8x8xf32>
    %77 = vector.broadcast %74 : f32 to vector<8x8xf32>
    %78 = arith.addf %76, %77 : vector<8x8xf32>
    %cst_33 = arith.constant 0.000000e+00 : f32
    %79 = vector.broadcast %cst_33 : f32 to vector<8x8xf32>
    %80 = arith.maximumf %78, %79 : vector<8x8xf32>
    %81 = vector.extract_strided_slice %27 {offsets = [0, 3], sizes = [8, 1], strides = [1, 1]} : vector<8x8xf32> to vector<8x1xf32>
    %82 = vector.broadcast %81 : vector<8x1xf32> to vector<8x8xf32>
    %83 = arith.mulf %82, %80 : vector<8x8xf32>
    %84 = arith.addf %72, %83 : vector<8x8xf32>
    %c0_34 = arith.constant 0 : index
    %c4 = arith.constant 4 : index
    %85 = memref.load %arg8[%c0_34, %c4] : memref<4x32xf32, #tpu.memory_space<smem>>
    %c1_35 = arith.constant 1 : index
    %c4_36 = arith.constant 4 : index
    %86 = memref.load %arg8[%c1_35, %c4_36] : memref<4x32xf32, #tpu.memory_space<smem>>
    %87 = vector.broadcast %85 : f32 to vector<8x8xf32>
    %88 = arith.mulf %3, %87 : vector<8x8xf32>
    %89 = vector.broadcast %86 : f32 to vector<8x8xf32>
    %90 = arith.addf %88, %89 : vector<8x8xf32>
    %cst_37 = arith.constant 0.000000e+00 : f32
    %91 = vector.broadcast %cst_37 : f32 to vector<8x8xf32>
    %92 = arith.maximumf %90, %91 : vector<8x8xf32>
    %93 = vector.extract_strided_slice %27 {offsets = [0, 4], sizes = [8, 1], strides = [1, 1]} : vector<8x8xf32> to vector<8x1xf32>
    %94 = vector.broadcast %93 : vector<8x1xf32> to vector<8x8xf32>
    %95 = arith.mulf %94, %92 : vector<8x8xf32>
    %96 = arith.addf %84, %95 : vector<8x8xf32>
    %c0_38 = arith.constant 0 : index
    %c5 = arith.constant 5 : index
    %97 = memref.load %arg8[%c0_38, %c5] : memref<4x32xf32, #tpu.memory_space<smem>>
    %c1_39 = arith.constant 1 : index
    %c5_40 = arith.constant 5 : index
    %98 = memref.load %arg8[%c1_39, %c5_40] : memref<4x32xf32, #tpu.memory_space<smem>>
    %99 = vector.broadcast %97 : f32 to vector<8x8xf32>
    %100 = arith.mulf %3, %99 : vector<8x8xf32>
    %101 = vector.broadcast %98 : f32 to vector<8x8xf32>
    %102 = arith.addf %100, %101 : vector<8x8xf32>
    %cst_41 = arith.constant 0.000000e+00 : f32
    %103 = vector.broadcast %cst_41 : f32 to vector<8x8xf32>
    %104 = arith.maximumf %102, %103 : vector<8x8xf32>
    %105 = vector.extract_strided_slice %27 {offsets = [0, 5], sizes = [8, 1], strides = [1, 1]} : vector<8x8xf32> to vector<8x1xf32>
    %106 = vector.broadcast %105 : vector<8x1xf32> to vector<8x8xf32>
    %107 = arith.mulf %106, %104 : vector<8x8xf32>
    %108 = arith.addf %96, %107 : vector<8x8xf32>
    %c0_42 = arith.constant 0 : index
    %c6 = arith.constant 6 : index
    %109 = memref.load %arg8[%c0_42, %c6] : memref<4x32xf32, #tpu.memory_space<smem>>
    %c1_43 = arith.constant 1 : index
    %c6_44 = arith.constant 6 : index
    %110 = memref.load %arg8[%c1_43, %c6_44] : memref<4x32xf32, #tpu.memory_space<smem>>
    %111 = vector.broadcast %109 : f32 to vector<8x8xf32>
    %112 = arith.mulf %3, %111 : vector<8x8xf32>
    %113 = vector.broadcast %110 : f32 to vector<8x8xf32>
    %114 = arith.addf %112, %113 : vector<8x8xf32>
    %cst_45 = arith.constant 0.000000e+00 : f32
    %115 = vector.broadcast %cst_45 : f32 to vector<8x8xf32>
    %116 = arith.maximumf %114, %115 : vector<8x8xf32>
    %117 = vector.extract_strided_slice %27 {offsets = [0, 6], sizes = [8, 1], strides = [1, 1]} : vector<8x8xf32> to vector<8x1xf32>
    %118 = vector.broadcast %117 : vector<8x1xf32> to vector<8x8xf32>
    %119 = arith.mulf %118, %116 : vector<8x8xf32>
    %120 = arith.addf %108, %119 : vector<8x8xf32>
    %c0_46 = arith.constant 0 : index
    %c7 = arith.constant 7 : index
    %121 = memref.load %arg8[%c0_46, %c7] : memref<4x32xf32, #tpu.memory_space<smem>>
    %c1_47 = arith.constant 1 : index
    %c7_48 = arith.constant 7 : index
    %122 = memref.load %arg8[%c1_47, %c7_48] : memref<4x32xf32, #tpu.memory_space<smem>>
    %123 = vector.broadcast %121 : f32 to vector<8x8xf32>
    %124 = arith.mulf %3, %123 : vector<8x8xf32>
    %125 = vector.broadcast %122 : f32 to vector<8x8xf32>
    %126 = arith.addf %124, %125 : vector<8x8xf32>
    %cst_49 = arith.constant 0.000000e+00 : f32
    %127 = vector.broadcast %cst_49 : f32 to vector<8x8xf32>
    %128 = arith.maximumf %126, %127 : vector<8x8xf32>
    %129 = vector.extract_strided_slice %27 {offsets = [0, 7], sizes = [8, 1], strides = [1, 1]} : vector<8x8xf32> to vector<8x1xf32>
    %130 = vector.broadcast %129 : vector<8x1xf32> to vector<8x8xf32>
    %131 = arith.mulf %130, %128 : vector<8x8xf32>
    %132 = arith.addf %120, %131 : vector<8x8xf32>
    %cst_50 = arith.constant dense<0xFF800000> : vector<8xf32>
    %133 = vector.multi_reduction <maximumf>, %132, %cst_50 [1] : vector<8x8xf32> to vector<8xf32>
    %134 = vector.shape_cast %133 : vector<8xf32> to vector<8x1xf32>
    %135 = vector.broadcast %134 : vector<8x1xf32> to vector<8x8xf32>
    %136 = arith.subf %132, %135 : vector<8x8xf32>
    %137 = math.exp %136 : vector<8x8xf32>
    %cst_51 = arith.constant dense<0.000000e+00> : vector<8xf32>
    %138 = vector.multi_reduction <add>, %137, %cst_51 [1] : vector<8x8xf32> to vector<8xf32>
    %139 = vector.shape_cast %138 : vector<8xf32> to vector<8x1xf32>
    %140 = tpu.reciprocal %139 {approx = true} : vector<8x1xf32> -> vector<8x1xf32>
    %141 = arith.mulf %139, %140 : vector<8x1xf32>
    %cst_52 = arith.constant 2.000000e+00 : f32
    %142 = vector.broadcast %cst_52 : f32 to vector<8x1xf32>
    %143 = arith.subf %142, %141 : vector<8x1xf32>
    %144 = arith.mulf %140, %143 : vector<8x1xf32>
    %145 = vector.broadcast %144 : vector<8x1xf32> to vector<8x8xf32>
    %146 = arith.mulf %137, %145 : vector<8x8xf32>
    %147 = arith.mulf %146, %3 : vector<8x8xf32>
    %cst_53 = arith.constant dense<0.000000e+00> : vector<8xf32>
    %148 = vector.multi_reduction <add>, %147, %cst_53 [1] : vector<8x8xf32> to vector<8xf32>
    %149 = vector.shape_cast %148 : vector<8xf32> to vector<8x1xf32>
    %cst_54 = arith.constant 9.900000e-01 : f32
    %150 = vector.broadcast %cst_54 : f32 to vector<8x8xf32>
    %151 = arith.mulf %147, %150 : vector<8x8xf32>
    %cst_55 = arith.constant 9.900000e-01 : f32
    %152 = vector.broadcast %cst_55 : f32 to vector<8x8xf32>
    %153 = arith.mulf %146, %152 : vector<8x8xf32>
    %c2_56 = arith.constant 2 : index
    %c0_57 = arith.constant 0 : index
    %154 = memref.load %arg8[%c2_56, %c0_57] : memref<4x32xf32, #tpu.memory_space<smem>>
    %c3_58 = arith.constant 3 : index
    %c0_59 = arith.constant 0 : index
    %155 = memref.load %arg8[%c3_58, %c0_59] : memref<4x32xf32, #tpu.memory_space<smem>>
    %156 = vector.broadcast %154 : f32 to vector<8x8xf32>
    %157 = arith.mulf %151, %156 : vector<8x8xf32>
    %158 = vector.broadcast %155 : f32 to vector<8x8xf32>
    %159 = arith.mulf %153, %158 : vector<8x8xf32>
    %160 = arith.addf %157, %159 : vector<8x8xf32>
    %cst_60 = arith.constant 0.000000e+00 : f32
    %161 = vector.broadcast %cst_60 : f32 to vector<8x8xf32>
    %162 = arith.maximumf %160, %161 : vector<8x8xf32>
    %cst_61 = arith.constant dense<0.000000e+00> : vector<8xf32>
    %163 = vector.multi_reduction <add>, %162, %cst_61 [1] : vector<8x8xf32> to vector<8xf32>
    %164 = vector.shape_cast %163 : vector<8xf32> to vector<8x1xf32>
    %165 = vector.broadcast %154 : f32 to vector<8x1xf32>
    %166 = arith.mulf %149, %165 : vector<8x1xf32>
    %167 = vector.broadcast %155 : f32 to vector<8x1xf32>
    %168 = arith.addf %166, %167 : vector<8x1xf32>
    %cst_62 = arith.constant 0.00999999977 : f32
    %169 = vector.broadcast %cst_62 : f32 to vector<8x1xf32>
    %170 = arith.mulf %169, %168 : vector<8x1xf32>
    %171 = arith.addf %164, %170 : vector<8x1xf32>
    %c0_i32 = arith.constant 0 : i32
    %172 = vector.broadcast %c0_i32 : i32 to vector<1x32xi32>
    %173 = arith.cmpi eq, %7, %172 : vector<1x32xi32>
    %cst_63 = arith.constant 0.000000e+00 : f32
    %174 = vector.shape_cast %173 : vector<1x32xi1> to vector<1x32xi1>
    %175 = vector.broadcast %174 : vector<1x32xi1> to vector<8x32xi1>
    %176 = vector.shape_cast %171 : vector<8x1xf32> to vector<8x1xf32>
    %177 = vector.broadcast %176 : vector<8x1xf32> to vector<8x32xf32>
    %178 = vector.broadcast %cst_63 : f32 to vector<8x32xf32>
    %179 = arith.select %175, %177, %178 : vector<8x32xi1>, vector<8x32xf32>
    %180 = arith.addf %8, %179 : vector<8x32xf32>
    %c2_64 = arith.constant 2 : index
    %c1_65 = arith.constant 1 : index
    %181 = memref.load %arg8[%c2_64, %c1_65] : memref<4x32xf32, #tpu.memory_space<smem>>
    %c3_66 = arith.constant 3 : index
    %c1_67 = arith.constant 1 : index
    %182 = memref.load %arg8[%c3_66, %c1_67] : memref<4x32xf32, #tpu.memory_space<smem>>
    %183 = vector.broadcast %181 : f32 to vector<8x8xf32>
    %184 = arith.mulf %151, %183 : vector<8x8xf32>
    %185 = vector.broadcast %182 : f32 to vector<8x8xf32>
    %186 = arith.mulf %153, %185 : vector<8x8xf32>
    %187 = arith.addf %184, %186 : vector<8x8xf32>
    %cst_68 = arith.constant 0.000000e+00 : f32
    %188 = vector.broadcast %cst_68 : f32 to vector<8x8xf32>
    %189 = arith.maximumf %187, %188 : vector<8x8xf32>
    %cst_69 = arith.constant dense<0.000000e+00> : vector<8xf32>
    %190 = vector.multi_reduction <add>, %189, %cst_69 [1] : vector<8x8xf32> to vector<8xf32>
    %191 = vector.shape_cast %190 : vector<8xf32> to vector<8x1xf32>
    %192 = vector.broadcast %181 : f32 to vector<8x1xf32>
    %193 = arith.mulf %149, %192 : vector<8x1xf32>
    %194 = vector.broadcast %182 : f32 to vector<8x1xf32>
    %195 = arith.addf %193, %194 : vector<8x1xf32>
    %cst_70 = arith.constant 0.00999999977 : f32
    %196 = vector.broadcast %cst_70 : f32 to vector<8x1xf32>
    %197 = arith.mulf %196, %195 : vector<8x1xf32>
    %198 = arith.addf %191, %197 : vector<8x1xf32>
    %c1_i32 = arith.constant 1 : i32
    %199 = vector.broadcast %c1_i32 : i32 to vector<1x32xi32>
    %200 = arith.cmpi eq, %7, %199 : vector<1x32xi32>
    %cst_71 = arith.constant 0.000000e+00 : f32
    %201 = vector.shape_cast %200 : vector<1x32xi1> to vector<1x32xi1>
    %202 = vector.broadcast %201 : vector<1x32xi1> to vector<8x32xi1>
    %203 = vector.shape_cast %198 : vector<8x1xf32> to vector<8x1xf32>
    %204 = vector.broadcast %203 : vector<8x1xf32> to vector<8x32xf32>
    %205 = vector.broadcast %cst_71 : f32 to vector<8x32xf32>
    %206 = arith.select %202, %204, %205 : vector<8x32xi1>, vector<8x32xf32>
    %207 = arith.addf %180, %206 : vector<8x32xf32>
    %c2_72 = arith.constant 2 : index
    %c2_73 = arith.constant 2 : index
    %208 = memref.load %arg8[%c2_72, %c2_73] : memref<4x32xf32, #tpu.memory_space<smem>>
    %c3_74 = arith.constant 3 : index
    %c2_75 = arith.constant 2 : index
    %209 = memref.load %arg8[%c3_74, %c2_75] : memref<4x32xf32, #tpu.memory_space<smem>>
    %210 = vector.broadcast %208 : f32 to vector<8x8xf32>
    %211 = arith.mulf %151, %210 : vector<8x8xf32>
    %212 = vector.broadcast %209 : f32 to vector<8x8xf32>
    %213 = arith.mulf %153, %212 : vector<8x8xf32>
    %214 = arith.addf %211, %213 : vector<8x8xf32>
    %cst_76 = arith.constant 0.000000e+00 : f32
    %215 = vector.broadcast %cst_76 : f32 to vector<8x8xf32>
    %216 = arith.maximumf %214, %215 : vector<8x8xf32>
    %cst_77 = arith.constant dense<0.000000e+00> : vector<8xf32>
    %217 = vector.multi_reduction <add>, %216, %cst_77 [1] : vector<8x8xf32> to vector<8xf32>
    %218 = vector.shape_cast %217 : vector<8xf32> to vector<8x1xf32>
    %219 = vector.broadcast %208 : f32 to vector<8x1xf32>
    %220 = arith.mulf %149, %219 : vector<8x1xf32>
    %221 = vector.broadcast %209 : f32 to vector<8x1xf32>
    %222 = arith.addf %220, %221 : vector<8x1xf32>
    %cst_78 = arith.constant 0.00999999977 : f32
    %223 = vector.broadcast %cst_78 : f32 to vector<8x1xf32>
    %224 = arith.mulf %223, %222 : vector<8x1xf32>
    %225 = arith.addf %218, %224 : vector<8x1xf32>
    %c2_i32 = arith.constant 2 : i32
    %226 = vector.broadcast %c2_i32 : i32 to vector<1x32xi32>
    %227 = arith.cmpi eq, %7, %226 : vector<1x32xi32>
    %cst_79 = arith.constant 0.000000e+00 : f32
    %228 = vector.shape_cast %227 : vector<1x32xi1> to vector<1x32xi1>
    %229 = vector.broadcast %228 : vector<1x32xi1> to vector<8x32xi1>
    %230 = vector.shape_cast %225 : vector<8x1xf32> to vector<8x1xf32>
    %231 = vector.broadcast %230 : vector<8x1xf32> to vector<8x32xf32>
    %232 = vector.broadcast %cst_79 : f32 to vector<8x32xf32>
    %233 = arith.select %229, %231, %232 : vector<8x32xi1>, vector<8x32xf32>
    %234 = arith.addf %207, %233 : vector<8x32xf32>
    %c2_80 = arith.constant 2 : index
    %c3_81 = arith.constant 3 : index
    %235 = memref.load %arg8[%c2_80, %c3_81] : memref<4x32xf32, #tpu.memory_space<smem>>
    %c3_82 = arith.constant 3 : index
    %c3_83 = arith.constant 3 : index
    %236 = memref.load %arg8[%c3_82, %c3_83] : memref<4x32xf32, #tpu.memory_space<smem>>
    %237 = vector.broadcast %235 : f32 to vector<8x8xf32>
    %238 = arith.mulf %151, %237 : vector<8x8xf32>
    %239 = vector.broadcast %236 : f32 to vector<8x8xf32>
    %240 = arith.mulf %153, %239 : vector<8x8xf32>
    %241 = arith.addf %238, %240 : vector<8x8xf32>
    %cst_84 = arith.constant 0.000000e+00 : f32
    %242 = vector.broadcast %cst_84 : f32 to vector<8x8xf32>
    %243 = arith.maximumf %241, %242 : vector<8x8xf32>
    %cst_85 = arith.constant dense<0.000000e+00> : vector<8xf32>
    %244 = vector.multi_reduction <add>, %243, %cst_85 [1] : vector<8x8xf32> to vector<8xf32>
    %245 = vector.shape_cast %244 : vector<8xf32> to vector<8x1xf32>
    %246 = vector.broadcast %235 : f32 to vector<8x1xf32>
    %247 = arith.mulf %149, %246 : vector<8x1xf32>
    %248 = vector.broadcast %236 : f32 to vector<8x1xf32>
    %249 = arith.addf %247, %248 : vector<8x1xf32>
    %cst_86 = arith.constant 0.00999999977 : f32
    %250 = vector.broadcast %cst_86 : f32 to vector<8x1xf32>
    %251 = arith.mulf %250, %249 : vector<8x1xf32>
    %252 = arith.addf %245, %251 : vector<8x1xf32>
    %c3_i32 = arith.constant 3 : i32
    %253 = vector.broadcast %c3_i32 : i32 to vector<1x32xi32>
    %254 = arith.cmpi eq, %7, %253 : vector<1x32xi32>
    %cst_87 = arith.constant 0.000000e+00 : f32
    %255 = vector.shape_cast %254 : vector<1x32xi1> to vector<1x32xi1>
    %256 = vector.broadcast %255 : vector<1x32xi1> to vector<8x32xi1>
    %257 = vector.shape_cast %252 : vector<8x1xf32> to vector<8x1xf32>
    %258 = vector.broadcast %257 : vector<8x1xf32> to vector<8x32xf32>
    %259 = vector.broadcast %cst_87 : f32 to vector<8x32xf32>
    %260 = arith.select %256, %258, %259 : vector<8x32xi1>, vector<8x32xf32>
    %261 = arith.addf %234, %260 : vector<8x32xf32>
    %c2_88 = arith.constant 2 : index
    %c4_89 = arith.constant 4 : index
    %262 = memref.load %arg8[%c2_88, %c4_89] : memref<4x32xf32, #tpu.memory_space<smem>>
    %c3_90 = arith.constant 3 : index
    %c4_91 = arith.constant 4 : index
    %263 = memref.load %arg8[%c3_90, %c4_91] : memref<4x32xf32, #tpu.memory_space<smem>>
    %264 = vector.broadcast %262 : f32 to vector<8x8xf32>
    %265 = arith.mulf %151, %264 : vector<8x8xf32>
    %266 = vector.broadcast %263 : f32 to vector<8x8xf32>
    %267 = arith.mulf %153, %266 : vector<8x8xf32>
    %268 = arith.addf %265, %267 : vector<8x8xf32>
    %cst_92 = arith.constant 0.000000e+00 : f32
    %269 = vector.broadcast %cst_92 : f32 to vector<8x8xf32>
    %270 = arith.maximumf %268, %269 : vector<8x8xf32>
    %cst_93 = arith.constant dense<0.000000e+00> : vector<8xf32>
    %271 = vector.multi_reduction <add>, %270, %cst_93 [1] : vector<8x8xf32> to vector<8xf32>
    %272 = vector.shape_cast %271 : vector<8xf32> to vector<8x1xf32>
    %273 = vector.broadcast %262 : f32 to vector<8x1xf32>
    %274 = arith.mulf %149, %273 : vector<8x1xf32>
    %275 = vector.broadcast %263 : f32 to vector<8x1xf32>
    %276 = arith.addf %274, %275 : vector<8x1xf32>
    %cst_94 = arith.constant 0.00999999977 : f32
    %277 = vector.broadcast %cst_94 : f32 to vector<8x1xf32>
    %278 = arith.mulf %277, %276 : vector<8x1xf32>
    %279 = arith.addf %272, %278 : vector<8x1xf32>
    %c4_i32 = arith.constant 4 : i32
    %280 = vector.broadcast %c4_i32 : i32 to vector<1x32xi32>
    %281 = arith.cmpi eq, %7, %280 : vector<1x32xi32>
    %cst_95 = arith.constant 0.000000e+00 : f32
    %282 = vector.shape_cast %281 : vector<1x32xi1> to vector<1x32xi1>
    %283 = vector.broadcast %282 : vector<1x32xi1> to vector<8x32xi1>
    %284 = vector.shape_cast %279 : vector<8x1xf32> to vector<8x1xf32>
    %285 = vector.broadcast %284 : vector<8x1xf32> to vector<8x32xf32>
    %286 = vector.broadcast %cst_95 : f32 to vector<8x32xf32>
    %287 = arith.select %283, %285, %286 : vector<8x32xi1>, vector<8x32xf32>
    %288 = arith.addf %261, %287 : vector<8x32xf32>
    %c2_96 = arith.constant 2 : index
    %c5_97 = arith.constant 5 : index
    %289 = memref.load %arg8[%c2_96, %c5_97] : memref<4x32xf32, #tpu.memory_space<smem>>
    %c3_98 = arith.constant 3 : index
    %c5_99 = arith.constant 5 : index
    %290 = memref.load %arg8[%c3_98, %c5_99] : memref<4x32xf32, #tpu.memory_space<smem>>
    %291 = vector.broadcast %289 : f32 to vector<8x8xf32>
    %292 = arith.mulf %151, %291 : vector<8x8xf32>
    %293 = vector.broadcast %290 : f32 to vector<8x8xf32>
    %294 = arith.mulf %153, %293 : vector<8x8xf32>
    %295 = arith.addf %292, %294 : vector<8x8xf32>
    %cst_100 = arith.constant 0.000000e+00 : f32
    %296 = vector.broadcast %cst_100 : f32 to vector<8x8xf32>
    %297 = arith.maximumf %295, %296 : vector<8x8xf32>
    %cst_101 = arith.constant dense<0.000000e+00> : vector<8xf32>
    %298 = vector.multi_reduction <add>, %297, %cst_101 [1] : vector<8x8xf32> to vector<8xf32>
    %299 = vector.shape_cast %298 : vector<8xf32> to vector<8x1xf32>
    %300 = vector.broadcast %289 : f32 to vector<8x1xf32>
    %301 = arith.mulf %149, %300 : vector<8x1xf32>
    %302 = vector.broadcast %290 : f32 to vector<8x1xf32>
    %303 = arith.addf %301, %302 : vector<8x1xf32>
    %cst_102 = arith.constant 0.00999999977 : f32
    %304 = vector.broadcast %cst_102 : f32 to vector<8x1xf32>
    %305 = arith.mulf %304, %303 : vector<8x1xf32>
    %306 = arith.addf %299, %305 : vector<8x1xf32>
    %c5_i32 = arith.constant 5 : i32
    %307 = vector.broadcast %c5_i32 : i32 to vector<1x32xi32>
    %308 = arith.cmpi eq, %7, %307 : vector<1x32xi32>
    %cst_103 = arith.constant 0.000000e+00 : f32
    %309 = vector.shape_cast %308 : vector<1x32xi1> to vector<1x32xi1>
    %310 = vector.broadcast %309 : vector<1x32xi1> to vector<8x32xi1>
    %311 = vector.shape_cast %306 : vector<8x1xf32> to vector<8x1xf32>
    %312 = vector.broadcast %311 : vector<8x1xf32> to vector<8x32xf32>
    %313 = vector.broadcast %cst_103 : f32 to vector<8x32xf32>
    %314 = arith.select %310, %312, %313 : vector<8x32xi1>, vector<8x32xf32>
    %315 = arith.addf %288, %314 : vector<8x32xf32>
    %c2_104 = arith.constant 2 : index
    %c6_105 = arith.constant 6 : index
    %316 = memref.load %arg8[%c2_104, %c6_105] : memref<4x32xf32, #tpu.memory_space<smem>>
    %c3_106 = arith.constant 3 : index
    %c6_107 = arith.constant 6 : index
    %317 = memref.load %arg8[%c3_106, %c6_107] : memref<4x32xf32, #tpu.memory_space<smem>>
    %318 = vector.broadcast %316 : f32 to vector<8x8xf32>
    %319 = arith.mulf %151, %318 : vector<8x8xf32>
    %320 = vector.broadcast %317 : f32 to vector<8x8xf32>
    %321 = arith.mulf %153, %320 : vector<8x8xf32>
    %322 = arith.addf %319, %321 : vector<8x8xf32>
    %cst_108 = arith.constant 0.000000e+00 : f32
    %323 = vector.broadcast %cst_108 : f32 to vector<8x8xf32>
    %324 = arith.maximumf %322, %323 : vector<8x8xf32>
    %cst_109 = arith.constant dense<0.000000e+00> : vector<8xf32>
    %325 = vector.multi_reduction <add>, %324, %cst_109 [1] : vector<8x8xf32> to vector<8xf32>
    %326 = vector.shape_cast %325 : vector<8xf32> to vector<8x1xf32>
    %327 = vector.broadcast %316 : f32 to vector<8x1xf32>
    %328 = arith.mulf %149, %327 : vector<8x1xf32>
    %329 = vector.broadcast %317 : f32 to vector<8x1xf32>
    %330 = arith.addf %328, %329 : vector<8x1xf32>
    %cst_110 = arith.constant 0.00999999977 : f32
    %331 = vector.broadcast %cst_110 : f32 to vector<8x1xf32>
    %332 = arith.mulf %331, %330 : vector<8x1xf32>
    %333 = arith.addf %326, %332 : vector<8x1xf32>
    %c6_i32 = arith.constant 6 : i32
    %334 = vector.broadcast %c6_i32 : i32 to vector<1x32xi32>
    %335 = arith.cmpi eq, %7, %334 : vector<1x32xi32>
    %cst_111 = arith.constant 0.000000e+00 : f32
    %336 = vector.shape_cast %335 : vector<1x32xi1> to vector<1x32xi1>
    %337 = vector.broadcast %336 : vector<1x32xi1> to vector<8x32xi1>
    %338 = vector.shape_cast %333 : vector<8x1xf32> to vector<8x1xf32>
    %339 = vector.broadcast %338 : vector<8x1xf32> to vector<8x32xf32>
    %340 = vector.broadcast %cst_111 : f32 to vector<8x32xf32>
    %341 = arith.select %337, %339, %340 : vector<8x32xi1>, vector<8x32xf32>
    %342 = arith.addf %315, %341 : vector<8x32xf32>
    %c2_112 = arith.constant 2 : index
    %c7_113 = arith.constant 7 : index
    %343 = memref.load %arg8[%c2_112, %c7_113] : memref<4x32xf32, #tpu.memory_space<smem>>
    %c3_114 = arith.constant 3 : index
    %c7_115 = arith.constant 7 : index
    %344 = memref.load %arg8[%c3_114, %c7_115] : memref<4x32xf32, #tpu.memory_space<smem>>
    %345 = vector.broadcast %343 : f32 to vector<8x8xf32>
    %346 = arith.mulf %151, %345 : vector<8x8xf32>
    %347 = vector.broadcast %344 : f32 to vector<8x8xf32>
    %348 = arith.mulf %153, %347 : vector<8x8xf32>
    %349 = arith.addf %346, %348 : vector<8x8xf32>
    %cst_116 = arith.constant 0.000000e+00 : f32
    %350 = vector.broadcast %cst_116 : f32 to vector<8x8xf32>
    %351 = arith.maximumf %349, %350 : vector<8x8xf32>
    %cst_117 = arith.constant dense<0.000000e+00> : vector<8xf32>
    %352 = vector.multi_reduction <add>, %351, %cst_117 [1] : vector<8x8xf32> to vector<8xf32>
    %353 = vector.shape_cast %352 : vector<8xf32> to vector<8x1xf32>
    %354 = vector.broadcast %343 : f32 to vector<8x1xf32>
    %355 = arith.mulf %149, %354 : vector<8x1xf32>
    %356 = vector.broadcast %344 : f32 to vector<8x1xf32>
    %357 = arith.addf %355, %356 : vector<8x1xf32>
    %cst_118 = arith.constant 0.00999999977 : f32
    %358 = vector.broadcast %cst_118 : f32 to vector<8x1xf32>
    %359 = arith.mulf %358, %357 : vector<8x1xf32>
    %360 = arith.addf %353, %359 : vector<8x1xf32>
    %c7_i32 = arith.constant 7 : i32
    %361 = vector.broadcast %c7_i32 : i32 to vector<1x32xi32>
    %362 = arith.cmpi eq, %7, %361 : vector<1x32xi32>
    %cst_119 = arith.constant 0.000000e+00 : f32
    %363 = vector.shape_cast %362 : vector<1x32xi1> to vector<1x32xi1>
    %364 = vector.broadcast %363 : vector<1x32xi1> to vector<8x32xi1>
    %365 = vector.shape_cast %360 : vector<8x1xf32> to vector<8x1xf32>
    %366 = vector.broadcast %365 : vector<8x1xf32> to vector<8x32xf32>
    %367 = vector.broadcast %cst_119 : f32 to vector<8x32xf32>
    %368 = arith.select %364, %366, %367 : vector<8x32xi1>, vector<8x32xf32>
    %369 = arith.addf %342, %368 : vector<8x32xf32>
    %370 = vector.extract_strided_slice %6 {offsets = [0, 8], sizes = [8, 8], strides = [1, 1]} : vector<8x96xf32> to vector<8x8xf32>
    %cst_120 = arith.constant 0.353553385 : f32
    %371 = vector.broadcast %cst_120 : f32 to vector<8x8xf32>
    %372 = arith.mulf %370, %371 : vector<8x8xf32>
    %373 = vector.extract_strided_slice %6 {offsets = [0, 40], sizes = [8, 8], strides = [1, 1]} : vector<8x96xf32> to vector<8x8xf32>
    %374 = vector.extract_strided_slice %4 {offsets = [0, 8], sizes = [1, 8], strides = [1, 1]} : vector<4x32xf32> to vector<1x8xf32>
    %375 = vector.extract_strided_slice %4 {offsets = [1, 8], sizes = [1, 8], strides = [1, 1]} : vector<4x32xf32> to vector<1x8xf32>
    %376 = arith.mulf %372, %373 : vector<8x8xf32>
    %cst_121 = arith.constant dense<0.000000e+00> : vector<8xf32>
    %377 = vector.multi_reduction <add>, %376, %cst_121 [1] : vector<8x8xf32> to vector<8xf32>
    %378 = vector.shape_cast %377 : vector<8xf32> to vector<8x1xf32>
    %379 = vector.broadcast %374 : vector<1x8xf32> to vector<8x8xf32>
    %380 = arith.mulf %372, %379 : vector<8x8xf32>
    %cst_122 = arith.constant dense<0.000000e+00> : vector<8xf32>
    %381 = vector.multi_reduction <add>, %380, %cst_122 [1] : vector<8x8xf32> to vector<8xf32>
    %382 = vector.shape_cast %381 : vector<8xf32> to vector<8x1xf32>
    %383 = vector.broadcast %375 : vector<1x8xf32> to vector<8x8xf32>
    %384 = arith.mulf %372, %383 : vector<8x8xf32>
    %cst_123 = arith.constant dense<0.000000e+00> : vector<8xf32>
    %385 = vector.multi_reduction <add>, %384, %cst_123 [1] : vector<8x8xf32> to vector<8xf32>
    %386 = vector.shape_cast %385 : vector<8xf32> to vector<8x1xf32>
    %cst_124 = arith.constant 9.900000e-01 : f32
    %387 = vector.broadcast %cst_124 : f32 to vector<8x8xf32>
    %388 = arith.mulf %372, %387 : vector<8x8xf32>
    %cst_125 = arith.constant 0.00999999977 : f32
    %389 = vector.broadcast %cst_125 : f32 to vector<8x1xf32>
    %390 = arith.mulf %389, %382 : vector<8x1xf32>
    %391 = vector.broadcast %390 : vector<8x1xf32> to vector<8x8xf32>
    %392 = arith.mulf %3, %391 : vector<8x8xf32>
    %cst_126 = arith.constant 0.00999999977 : f32
    %393 = vector.broadcast %cst_126 : f32 to vector<8x1xf32>
    %394 = arith.mulf %393, %386 : vector<8x1xf32>
    %395 = arith.addf %378, %394 : vector<8x1xf32>
    %396 = vector.broadcast %395 : vector<8x1xf32> to vector<8x8xf32>
    %397 = arith.addf %392, %396 : vector<8x8xf32>
    %c0_127 = arith.constant 0 : index
    %c8 = arith.constant 8 : index
    %398 = memref.load %arg8[%c0_127, %c8] : memref<4x32xf32, #tpu.memory_space<smem>>
    %c1_128 = arith.constant 1 : index
    %c8_129 = arith.constant 8 : index
    %399 = memref.load %arg8[%c1_128, %c8_129] : memref<4x32xf32, #tpu.memory_space<smem>>
    %400 = vector.broadcast %398 : f32 to vector<8x8xf32>
    %401 = arith.mulf %3, %400 : vector<8x8xf32>
    %402 = vector.broadcast %399 : f32 to vector<8x8xf32>
    %403 = arith.addf %401, %402 : vector<8x8xf32>
    %cst_130 = arith.constant 0.000000e+00 : f32
    %404 = vector.broadcast %cst_130 : f32 to vector<8x8xf32>
    %405 = arith.maximumf %403, %404 : vector<8x8xf32>
    %406 = vector.extract_strided_slice %388 {offsets = [0, 0], sizes = [8, 1], strides = [1, 1]} : vector<8x8xf32> to vector<8x1xf32>
    %407 = vector.broadcast %406 : vector<8x1xf32> to vector<8x8xf32>
    %408 = arith.mulf %407, %405 : vector<8x8xf32>
    %409 = arith.addf %397, %408 : vector<8x8xf32>
    %c0_131 = arith.constant 0 : index
    %c9 = arith.constant 9 : index
    %410 = memref.load %arg8[%c0_131, %c9] : memref<4x32xf32, #tpu.memory_space<smem>>
    %c1_132 = arith.constant 1 : index
    %c9_133 = arith.constant 9 : index
    %411 = memref.load %arg8[%c1_132, %c9_133] : memref<4x32xf32, #tpu.memory_space<smem>>
    %412 = vector.broadcast %410 : f32 to vector<8x8xf32>
    %413 = arith.mulf %3, %412 : vector<8x8xf32>
    %414 = vector.broadcast %411 : f32 to vector<8x8xf32>
    %415 = arith.addf %413, %414 : vector<8x8xf32>
    %cst_134 = arith.constant 0.000000e+00 : f32
    %416 = vector.broadcast %cst_134 : f32 to vector<8x8xf32>
    %417 = arith.maximumf %415, %416 : vector<8x8xf32>
    %418 = vector.extract_strided_slice %388 {offsets = [0, 1], sizes = [8, 1], strides = [1, 1]} : vector<8x8xf32> to vector<8x1xf32>
    %419 = vector.broadcast %418 : vector<8x1xf32> to vector<8x8xf32>
    %420 = arith.mulf %419, %417 : vector<8x8xf32>
    %421 = arith.addf %409, %420 : vector<8x8xf32>
    %c0_135 = arith.constant 0 : index
    %c10 = arith.constant 10 : index
    %422 = memref.load %arg8[%c0_135, %c10] : memref<4x32xf32, #tpu.memory_space<smem>>
    %c1_136 = arith.constant 1 : index
    %c10_137 = arith.constant 10 : index
    %423 = memref.load %arg8[%c1_136, %c10_137] : memref<4x32xf32, #tpu.memory_space<smem>>
    %424 = vector.broadcast %422 : f32 to vector<8x8xf32>
    %425 = arith.mulf %3, %424 : vector<8x8xf32>
    %426 = vector.broadcast %423 : f32 to vector<8x8xf32>
    %427 = arith.addf %425, %426 : vector<8x8xf32>
    %cst_138 = arith.constant 0.000000e+00 : f32
    %428 = vector.broadcast %cst_138 : f32 to vector<8x8xf32>
    %429 = arith.maximumf %427, %428 : vector<8x8xf32>
    %430 = vector.extract_strided_slice %388 {offsets = [0, 2], sizes = [8, 1], strides = [1, 1]} : vector<8x8xf32> to vector<8x1xf32>
    %431 = vector.broadcast %430 : vector<8x1xf32> to vector<8x8xf32>
    %432 = arith.mulf %431, %429 : vector<8x8xf32>
    %433 = arith.addf %421, %432 : vector<8x8xf32>
    %c0_139 = arith.constant 0 : index
    %c11 = arith.constant 11 : index
    %434 = memref.load %arg8[%c0_139, %c11] : memref<4x32xf32, #tpu.memory_space<smem>>
    %c1_140 = arith.constant 1 : index
    %c11_141 = arith.constant 11 : index
    %435 = memref.load %arg8[%c1_140, %c11_141] : memref<4x32xf32, #tpu.memory_space<smem>>
    %436 = vector.broadcast %434 : f32 to vector<8x8xf32>
    %437 = arith.mulf %3, %436 : vector<8x8xf32>
    %438 = vector.broadcast %435 : f32 to vector<8x8xf32>
    %439 = arith.addf %437, %438 : vector<8x8xf32>
    %cst_142 = arith.constant 0.000000e+00 : f32
    %440 = vector.broadcast %cst_142 : f32 to vector<8x8xf32>
    %441 = arith.maximumf %439, %440 : vector<8x8xf32>
    %442 = vector.extract_strided_slice %388 {offsets = [0, 3], sizes = [8, 1], strides = [1, 1]} : vector<8x8xf32> to vector<8x1xf32>
    %443 = vector.broadcast %442 : vector<8x1xf32> to vector<8x8xf32>
    %444 = arith.mulf %443, %441 : vector<8x8xf32>
    %445 = arith.addf %433, %444 : vector<8x8xf32>
    %c0_143 = arith.constant 0 : index
    %c12 = arith.constant 12 : index
    %446 = memref.load %arg8[%c0_143, %c12] : memref<4x32xf32, #tpu.memory_space<smem>>
    %c1_144 = arith.constant 1 : index
    %c12_145 = arith.constant 12 : index
    %447 = memref.load %arg8[%c1_144, %c12_145] : memref<4x32xf32, #tpu.memory_space<smem>>
    %448 = vector.broadcast %446 : f32 to vector<8x8xf32>
    %449 = arith.mulf %3, %448 : vector<8x8xf32>
    %450 = vector.broadcast %447 : f32 to vector<8x8xf32>
    %451 = arith.addf %449, %450 : vector<8x8xf32>
    %cst_146 = arith.constant 0.000000e+00 : f32
    %452 = vector.broadcast %cst_146 : f32 to vector<8x8xf32>
    %453 = arith.maximumf %451, %452 : vector<8x8xf32>
    %454 = vector.extract_strided_slice %388 {offsets = [0, 4], sizes = [8, 1], strides = [1, 1]} : vector<8x8xf32> to vector<8x1xf32>
    %455 = vector.broadcast %454 : vector<8x1xf32> to vector<8x8xf32>
    %456 = arith.mulf %455, %453 : vector<8x8xf32>
    %457 = arith.addf %445, %456 : vector<8x8xf32>
    %c0_147 = arith.constant 0 : index
    %c13 = arith.constant 13 : index
    %458 = memref.load %arg8[%c0_147, %c13] : memref<4x32xf32, #tpu.memory_space<smem>>
    %c1_148 = arith.constant 1 : index
    %c13_149 = arith.constant 13 : index
    %459 = memref.load %arg8[%c1_148, %c13_149] : memref<4x32xf32, #tpu.memory_space<smem>>
    %460 = vector.broadcast %458 : f32 to vector<8x8xf32>
    %461 = arith.mulf %3, %460 : vector<8x8xf32>
    %462 = vector.broadcast %459 : f32 to vector<8x8xf32>
    %463 = arith.addf %461, %462 : vector<8x8xf32>
    %cst_150 = arith.constant 0.000000e+00 : f32
    %464 = vector.broadcast %cst_150 : f32 to vector<8x8xf32>
    %465 = arith.maximumf %463, %464 : vector<8x8xf32>
    %466 = vector.extract_strided_slice %388 {offsets = [0, 5], sizes = [8, 1], strides = [1, 1]} : vector<8x8xf32> to vector<8x1xf32>
    %467 = vector.broadcast %466 : vector<8x1xf32> to vector<8x8xf32>
    %468 = arith.mulf %467, %465 : vector<8x8xf32>
    %469 = arith.addf %457, %468 : vector<8x8xf32>
    %c0_151 = arith.constant 0 : index
    %c14 = arith.constant 14 : index
    %470 = memref.load %arg8[%c0_151, %c14] : memref<4x32xf32, #tpu.memory_space<smem>>
    %c1_152 = arith.constant 1 : index
    %c14_153 = arith.constant 14 : index
    %471 = memref.load %arg8[%c1_152, %c14_153] : memref<4x32xf32, #tpu.memory_space<smem>>
    %472 = vector.broadcast %470 : f32 to vector<8x8xf32>
    %473 = arith.mulf %3, %472 : vector<8x8xf32>
    %474 = vector.broadcast %471 : f32 to vector<8x8xf32>
    %475 = arith.addf %473, %474 : vector<8x8xf32>
    %cst_154 = arith.constant 0.000000e+00 : f32
    %476 = vector.broadcast %cst_154 : f32 to vector<8x8xf32>
    %477 = arith.maximumf %475, %476 : vector<8x8xf32>
    %478 = vector.extract_strided_slice %388 {offsets = [0, 6], sizes = [8, 1], strides = [1, 1]} : vector<8x8xf32> to vector<8x1xf32>
    %479 = vector.broadcast %478 : vector<8x1xf32> to vector<8x8xf32>
    %480 = arith.mulf %479, %477 : vector<8x8xf32>
    %481 = arith.addf %469, %480 : vector<8x8xf32>
    %c0_155 = arith.constant 0 : index
    %c15 = arith.constant 15 : index
    %482 = memref.load %arg8[%c0_155, %c15] : memref<4x32xf32, #tpu.memory_space<smem>>
    %c1_156 = arith.constant 1 : index
    %c15_157 = arith.constant 15 : index
    %483 = memref.load %arg8[%c1_156, %c15_157] : memref<4x32xf32, #tpu.memory_space<smem>>
    %484 = vector.broadcast %482 : f32 to vector<8x8xf32>
    %485 = arith.mulf %3, %484 : vector<8x8xf32>
    %486 = vector.broadcast %483 : f32 to vector<8x8xf32>
    %487 = arith.addf %485, %486 : vector<8x8xf32>
    %cst_158 = arith.constant 0.000000e+00 : f32
    %488 = vector.broadcast %cst_158 : f32 to vector<8x8xf32>
    %489 = arith.maximumf %487, %488 : vector<8x8xf32>
    %490 = vector.extract_strided_slice %388 {offsets = [0, 7], sizes = [8, 1], strides = [1, 1]} : vector<8x8xf32> to vector<8x1xf32>
    %491 = vector.broadcast %490 : vector<8x1xf32> to vector<8x8xf32>
    %492 = arith.mulf %491, %489 : vector<8x8xf32>
    %493 = arith.addf %481, %492 : vector<8x8xf32>
    %cst_159 = arith.constant dense<0xFF800000> : vector<8xf32>
    %494 = vector.multi_reduction <maximumf>, %493, %cst_159 [1] : vector<8x8xf32> to vector<8xf32>
    %495 = vector.shape_cast %494 : vector<8xf32> to vector<8x1xf32>
    %496 = vector.broadcast %495 : vector<8x1xf32> to vector<8x8xf32>
    %497 = arith.subf %493, %496 : vector<8x8xf32>
    %498 = math.exp %497 : vector<8x8xf32>
    %cst_160 = arith.constant dense<0.000000e+00> : vector<8xf32>
    %499 = vector.multi_reduction <add>, %498, %cst_160 [1] : vector<8x8xf32> to vector<8xf32>
    %500 = vector.shape_cast %499 : vector<8xf32> to vector<8x1xf32>
    %501 = tpu.reciprocal %500 {approx = true} : vector<8x1xf32> -> vector<8x1xf32>
    %502 = arith.mulf %500, %501 : vector<8x1xf32>
    %cst_161 = arith.constant 2.000000e+00 : f32
    %503 = vector.broadcast %cst_161 : f32 to vector<8x1xf32>
    %504 = arith.subf %503, %502 : vector<8x1xf32>
    %505 = arith.mulf %501, %504 : vector<8x1xf32>
    %506 = vector.broadcast %505 : vector<8x1xf32> to vector<8x8xf32>
    %507 = arith.mulf %498, %506 : vector<8x8xf32>
    %508 = arith.mulf %507, %3 : vector<8x8xf32>
    %cst_162 = arith.constant dense<0.000000e+00> : vector<8xf32>
    %509 = vector.multi_reduction <add>, %508, %cst_162 [1] : vector<8x8xf32> to vector<8xf32>
    %510 = vector.shape_cast %509 : vector<8xf32> to vector<8x1xf32>
    %cst_163 = arith.constant 9.900000e-01 : f32
    %511 = vector.broadcast %cst_163 : f32 to vector<8x8xf32>
    %512 = arith.mulf %508, %511 : vector<8x8xf32>
    %cst_164 = arith.constant 9.900000e-01 : f32
    %513 = vector.broadcast %cst_164 : f32 to vector<8x8xf32>
    %514 = arith.mulf %507, %513 : vector<8x8xf32>
    %c2_165 = arith.constant 2 : index
    %c8_166 = arith.constant 8 : index
    %515 = memref.load %arg8[%c2_165, %c8_166] : memref<4x32xf32, #tpu.memory_space<smem>>
    %c3_167 = arith.constant 3 : index
    %c8_168 = arith.constant 8 : index
    %516 = memref.load %arg8[%c3_167, %c8_168] : memref<4x32xf32, #tpu.memory_space<smem>>
    %517 = vector.broadcast %515 : f32 to vector<8x8xf32>
    %518 = arith.mulf %512, %517 : vector<8x8xf32>
    %519 = vector.broadcast %516 : f32 to vector<8x8xf32>
    %520 = arith.mulf %514, %519 : vector<8x8xf32>
    %521 = arith.addf %518, %520 : vector<8x8xf32>
    %cst_169 = arith.constant 0.000000e+00 : f32
    %522 = vector.broadcast %cst_169 : f32 to vector<8x8xf32>
    %523 = arith.maximumf %521, %522 : vector<8x8xf32>
    %cst_170 = arith.constant dense<0.000000e+00> : vector<8xf32>
    %524 = vector.multi_reduction <add>, %523, %cst_170 [1] : vector<8x8xf32> to vector<8xf32>
    %525 = vector.shape_cast %524 : vector<8xf32> to vector<8x1xf32>
    %526 = vector.broadcast %515 : f32 to vector<8x1xf32>
    %527 = arith.mulf %510, %526 : vector<8x1xf32>
    %528 = vector.broadcast %516 : f32 to vector<8x1xf32>
    %529 = arith.addf %527, %528 : vector<8x1xf32>
    %cst_171 = arith.constant 0.00999999977 : f32
    %530 = vector.broadcast %cst_171 : f32 to vector<8x1xf32>
    %531 = arith.mulf %530, %529 : vector<8x1xf32>
    %532 = arith.addf %525, %531 : vector<8x1xf32>
    %c8_i32 = arith.constant 8 : i32
    %533 = vector.broadcast %c8_i32 : i32 to vector<1x32xi32>
    %534 = arith.cmpi eq, %7, %533 : vector<1x32xi32>
    %cst_172 = arith.constant 0.000000e+00 : f32
    %535 = vector.shape_cast %534 : vector<1x32xi1> to vector<1x32xi1>
    %536 = vector.broadcast %535 : vector<1x32xi1> to vector<8x32xi1>
    %537 = vector.shape_cast %532 : vector<8x1xf32> to vector<8x1xf32>
    %538 = vector.broadcast %537 : vector<8x1xf32> to vector<8x32xf32>
    %539 = vector.broadcast %cst_172 : f32 to vector<8x32xf32>
    %540 = arith.select %536, %538, %539 : vector<8x32xi1>, vector<8x32xf32>
    %541 = arith.addf %369, %540 : vector<8x32xf32>
    %c2_173 = arith.constant 2 : index
    %c9_174 = arith.constant 9 : index
    %542 = memref.load %arg8[%c2_173, %c9_174] : memref<4x32xf32, #tpu.memory_space<smem>>
    %c3_175 = arith.constant 3 : index
    %c9_176 = arith.constant 9 : index
    %543 = memref.load %arg8[%c3_175, %c9_176] : memref<4x32xf32, #tpu.memory_space<smem>>
    %544 = vector.broadcast %542 : f32 to vector<8x8xf32>
    %545 = arith.mulf %512, %544 : vector<8x8xf32>
    %546 = vector.broadcast %543 : f32 to vector<8x8xf32>
    %547 = arith.mulf %514, %546 : vector<8x8xf32>
    %548 = arith.addf %545, %547 : vector<8x8xf32>
    %cst_177 = arith.constant 0.000000e+00 : f32
    %549 = vector.broadcast %cst_177 : f32 to vector<8x8xf32>
    %550 = arith.maximumf %548, %549 : vector<8x8xf32>
    %cst_178 = arith.constant dense<0.000000e+00> : vector<8xf32>
    %551 = vector.multi_reduction <add>, %550, %cst_178 [1] : vector<8x8xf32> to vector<8xf32>
    %552 = vector.shape_cast %551 : vector<8xf32> to vector<8x1xf32>
    %553 = vector.broadcast %542 : f32 to vector<8x1xf32>
    %554 = arith.mulf %510, %553 : vector<8x1xf32>
    %555 = vector.broadcast %543 : f32 to vector<8x1xf32>
    %556 = arith.addf %554, %555 : vector<8x1xf32>
    %cst_179 = arith.constant 0.00999999977 : f32
    %557 = vector.broadcast %cst_179 : f32 to vector<8x1xf32>
    %558 = arith.mulf %557, %556 : vector<8x1xf32>
    %559 = arith.addf %552, %558 : vector<8x1xf32>
    %c9_i32 = arith.constant 9 : i32
    %560 = vector.broadcast %c9_i32 : i32 to vector<1x32xi32>
    %561 = arith.cmpi eq, %7, %560 : vector<1x32xi32>
    %cst_180 = arith.constant 0.000000e+00 : f32
    %562 = vector.shape_cast %561 : vector<1x32xi1> to vector<1x32xi1>
    %563 = vector.broadcast %562 : vector<1x32xi1> to vector<8x32xi1>
    %564 = vector.shape_cast %559 : vector<8x1xf32> to vector<8x1xf32>
    %565 = vector.broadcast %564 : vector<8x1xf32> to vector<8x32xf32>
    %566 = vector.broadcast %cst_180 : f32 to vector<8x32xf32>
    %567 = arith.select %563, %565, %566 : vector<8x32xi1>, vector<8x32xf32>
    %568 = arith.addf %541, %567 : vector<8x32xf32>
    %c2_181 = arith.constant 2 : index
    %c10_182 = arith.constant 10 : index
    %569 = memref.load %arg8[%c2_181, %c10_182] : memref<4x32xf32, #tpu.memory_space<smem>>
    %c3_183 = arith.constant 3 : index
    %c10_184 = arith.constant 10 : index
    %570 = memref.load %arg8[%c3_183, %c10_184] : memref<4x32xf32, #tpu.memory_space<smem>>
    %571 = vector.broadcast %569 : f32 to vector<8x8xf32>
    %572 = arith.mulf %512, %571 : vector<8x8xf32>
    %573 = vector.broadcast %570 : f32 to vector<8x8xf32>
    %574 = arith.mulf %514, %573 : vector<8x8xf32>
    %575 = arith.addf %572, %574 : vector<8x8xf32>
    %cst_185 = arith.constant 0.000000e+00 : f32
    %576 = vector.broadcast %cst_185 : f32 to vector<8x8xf32>
    %577 = arith.maximumf %575, %576 : vector<8x8xf32>
    %cst_186 = arith.constant dense<0.000000e+00> : vector<8xf32>
    %578 = vector.multi_reduction <add>, %577, %cst_186 [1] : vector<8x8xf32> to vector<8xf32>
    %579 = vector.shape_cast %578 : vector<8xf32> to vector<8x1xf32>
    %580 = vector.broadcast %569 : f32 to vector<8x1xf32>
    %581 = arith.mulf %510, %580 : vector<8x1xf32>
    %582 = vector.broadcast %570 : f32 to vector<8x1xf32>
    %583 = arith.addf %581, %582 : vector<8x1xf32>
    %cst_187 = arith.constant 0.00999999977 : f32
    %584 = vector.broadcast %cst_187 : f32 to vector<8x1xf32>
    %585 = arith.mulf %584, %583 : vector<8x1xf32>
    %586 = arith.addf %579, %585 : vector<8x1xf32>
    %c10_i32 = arith.constant 10 : i32
    %587 = vector.broadcast %c10_i32 : i32 to vector<1x32xi32>
    %588 = arith.cmpi eq, %7, %587 : vector<1x32xi32>
    %cst_188 = arith.constant 0.000000e+00 : f32
    %589 = vector.shape_cast %588 : vector<1x32xi1> to vector<1x32xi1>
    %590 = vector.broadcast %589 : vector<1x32xi1> to vector<8x32xi1>
    %591 = vector.shape_cast %586 : vector<8x1xf32> to vector<8x1xf32>
    %592 = vector.broadcast %591 : vector<8x1xf32> to vector<8x32xf32>
    %593 = vector.broadcast %cst_188 : f32 to vector<8x32xf32>
    %594 = arith.select %590, %592, %593 : vector<8x32xi1>, vector<8x32xf32>
    %595 = arith.addf %568, %594 : vector<8x32xf32>
    %c2_189 = arith.constant 2 : index
    %c11_190 = arith.constant 11 : index
    %596 = memref.load %arg8[%c2_189, %c11_190] : memref<4x32xf32, #tpu.memory_space<smem>>
    %c3_191 = arith.constant 3 : index
    %c11_192 = arith.constant 11 : index
    %597 = memref.load %arg8[%c3_191, %c11_192] : memref<4x32xf32, #tpu.memory_space<smem>>
    %598 = vector.broadcast %596 : f32 to vector<8x8xf32>
    %599 = arith.mulf %512, %598 : vector<8x8xf32>
    %600 = vector.broadcast %597 : f32 to vector<8x8xf32>
    %601 = arith.mulf %514, %600 : vector<8x8xf32>
    %602 = arith.addf %599, %601 : vector<8x8xf32>
    %cst_193 = arith.constant 0.000000e+00 : f32
    %603 = vector.broadcast %cst_193 : f32 to vector<8x8xf32>
    %604 = arith.maximumf %602, %603 : vector<8x8xf32>
    %cst_194 = arith.constant dense<0.000000e+00> : vector<8xf32>
    %605 = vector.multi_reduction <add>, %604, %cst_194 [1] : vector<8x8xf32> to vector<8xf32>
    %606 = vector.shape_cast %605 : vector<8xf32> to vector<8x1xf32>
    %607 = vector.broadcast %596 : f32 to vector<8x1xf32>
    %608 = arith.mulf %510, %607 : vector<8x1xf32>
    %609 = vector.broadcast %597 : f32 to vector<8x1xf32>
    %610 = arith.addf %608, %609 : vector<8x1xf32>
    %cst_195 = arith.constant 0.00999999977 : f32
    %611 = vector.broadcast %cst_195 : f32 to vector<8x1xf32>
    %612 = arith.mulf %611, %610 : vector<8x1xf32>
    %613 = arith.addf %606, %612 : vector<8x1xf32>
    %c11_i32 = arith.constant 11 : i32
    %614 = vector.broadcast %c11_i32 : i32 to vector<1x32xi32>
    %615 = arith.cmpi eq, %7, %614 : vector<1x32xi32>
    %cst_196 = arith.constant 0.000000e+00 : f32
    %616 = vector.shape_cast %615 : vector<1x32xi1> to vector<1x32xi1>
    %617 = vector.broadcast %616 : vector<1x32xi1> to vector<8x32xi1>
    %618 = vector.shape_cast %613 : vector<8x1xf32> to vector<8x1xf32>
    %619 = vector.broadcast %618 : vector<8x1xf32> to vector<8x32xf32>
    %620 = vector.broadcast %cst_196 : f32 to vector<8x32xf32>
    %621 = arith.select %617, %619, %620 : vector<8x32xi1>, vector<8x32xf32>
    %622 = arith.addf %595, %621 : vector<8x32xf32>
    %c2_197 = arith.constant 2 : index
    %c12_198 = arith.constant 12 : index
    %623 = memref.load %arg8[%c2_197, %c12_198] : memref<4x32xf32, #tpu.memory_space<smem>>
    %c3_199 = arith.constant 3 : index
    %c12_200 = arith.constant 12 : index
    %624 = memref.load %arg8[%c3_199, %c12_200] : memref<4x32xf32, #tpu.memory_space<smem>>
    %625 = vector.broadcast %623 : f32 to vector<8x8xf32>
    %626 = arith.mulf %512, %625 : vector<8x8xf32>
    %627 = vector.broadcast %624 : f32 to vector<8x8xf32>
    %628 = arith.mulf %514, %627 : vector<8x8xf32>
    %629 = arith.addf %626, %628 : vector<8x8xf32>
    %cst_201 = arith.constant 0.000000e+00 : f32
    %630 = vector.broadcast %cst_201 : f32 to vector<8x8xf32>
    %631 = arith.maximumf %629, %630 : vector<8x8xf32>
    %cst_202 = arith.constant dense<0.000000e+00> : vector<8xf32>
    %632 = vector.multi_reduction <add>, %631, %cst_202 [1] : vector<8x8xf32> to vector<8xf32>
    %633 = vector.shape_cast %632 : vector<8xf32> to vector<8x1xf32>
    %634 = vector.broadcast %623 : f32 to vector<8x1xf32>
    %635 = arith.mulf %510, %634 : vector<8x1xf32>
    %636 = vector.broadcast %624 : f32 to vector<8x1xf32>
    %637 = arith.addf %635, %636 : vector<8x1xf32>
    %cst_203 = arith.constant 0.00999999977 : f32
    %638 = vector.broadcast %cst_203 : f32 to vector<8x1xf32>
    %639 = arith.mulf %638, %637 : vector<8x1xf32>
    %640 = arith.addf %633, %639 : vector<8x1xf32>
    %c12_i32 = arith.constant 12 : i32
    %641 = vector.broadcast %c12_i32 : i32 to vector<1x32xi32>
    %642 = arith.cmpi eq, %7, %641 : vector<1x32xi32>
    %cst_204 = arith.constant 0.000000e+00 : f32
    %643 = vector.shape_cast %642 : vector<1x32xi1> to vector<1x32xi1>
    %644 = vector.broadcast %643 : vector<1x32xi1> to vector<8x32xi1>
    %645 = vector.shape_cast %640 : vector<8x1xf32> to vector<8x1xf32>
    %646 = vector.broadcast %645 : vector<8x1xf32> to vector<8x32xf32>
    %647 = vector.broadcast %cst_204 : f32 to vector<8x32xf32>
    %648 = arith.select %644, %646, %647 : vector<8x32xi1>, vector<8x32xf32>
    %649 = arith.addf %622, %648 : vector<8x32xf32>
    %c2_205 = arith.constant 2 : index
    %c13_206 = arith.constant 13 : index
    %650 = memref.load %arg8[%c2_205, %c13_206] : memref<4x32xf32, #tpu.memory_space<smem>>
    %c3_207 = arith.constant 3 : index
    %c13_208 = arith.constant 13 : index
    %651 = memref.load %arg8[%c3_207, %c13_208] : memref<4x32xf32, #tpu.memory_space<smem>>
    %652 = vector.broadcast %650 : f32 to vector<8x8xf32>
    %653 = arith.mulf %512, %652 : vector<8x8xf32>
    %654 = vector.broadcast %651 : f32 to vector<8x8xf32>
    %655 = arith.mulf %514, %654 : vector<8x8xf32>
    %656 = arith.addf %653, %655 : vector<8x8xf32>
    %cst_209 = arith.constant 0.000000e+00 : f32
    %657 = vector.broadcast %cst_209 : f32 to vector<8x8xf32>
    %658 = arith.maximumf %656, %657 : vector<8x8xf32>
    %cst_210 = arith.constant dense<0.000000e+00> : vector<8xf32>
    %659 = vector.multi_reduction <add>, %658, %cst_210 [1] : vector<8x8xf32> to vector<8xf32>
    %660 = vector.shape_cast %659 : vector<8xf32> to vector<8x1xf32>
    %661 = vector.broadcast %650 : f32 to vector<8x1xf32>
    %662 = arith.mulf %510, %661 : vector<8x1xf32>
    %663 = vector.broadcast %651 : f32 to vector<8x1xf32>
    %664 = arith.addf %662, %663 : vector<8x1xf32>
    %cst_211 = arith.constant 0.00999999977 : f32
    %665 = vector.broadcast %cst_211 : f32 to vector<8x1xf32>
    %666 = arith.mulf %665, %664 : vector<8x1xf32>
    %667 = arith.addf %660, %666 : vector<8x1xf32>
    %c13_i32 = arith.constant 13 : i32
    %668 = vector.broadcast %c13_i32 : i32 to vector<1x32xi32>
    %669 = arith.cmpi eq, %7, %668 : vector<1x32xi32>
    %cst_212 = arith.constant 0.000000e+00 : f32
    %670 = vector.shape_cast %669 : vector<1x32xi1> to vector<1x32xi1>
    %671 = vector.broadcast %670 : vector<1x32xi1> to vector<8x32xi1>
    %672 = vector.shape_cast %667 : vector<8x1xf32> to vector<8x1xf32>
    %673 = vector.broadcast %672 : vector<8x1xf32> to vector<8x32xf32>
    %674 = vector.broadcast %cst_212 : f32 to vector<8x32xf32>
    %675 = arith.select %671, %673, %674 : vector<8x32xi1>, vector<8x32xf32>
    %676 = arith.addf %649, %675 : vector<8x32xf32>
    %c2_213 = arith.constant 2 : index
    %c14_214 = arith.constant 14 : index
    %677 = memref.load %arg8[%c2_213, %c14_214] : memref<4x32xf32, #tpu.memory_space<smem>>
    %c3_215 = arith.constant 3 : index
    %c14_216 = arith.constant 14 : index
    %678 = memref.load %arg8[%c3_215, %c14_216] : memref<4x32xf32, #tpu.memory_space<smem>>
    %679 = vector.broadcast %677 : f32 to vector<8x8xf32>
    %680 = arith.mulf %512, %679 : vector<8x8xf32>
    %681 = vector.broadcast %678 : f32 to vector<8x8xf32>
    %682 = arith.mulf %514, %681 : vector<8x8xf32>
    %683 = arith.addf %680, %682 : vector<8x8xf32>
    %cst_217 = arith.constant 0.000000e+00 : f32
    %684 = vector.broadcast %cst_217 : f32 to vector<8x8xf32>
    %685 = arith.maximumf %683, %684 : vector<8x8xf32>
    %cst_218 = arith.constant dense<0.000000e+00> : vector<8xf32>
    %686 = vector.multi_reduction <add>, %685, %cst_218 [1] : vector<8x8xf32> to vector<8xf32>
    %687 = vector.shape_cast %686 : vector<8xf32> to vector<8x1xf32>
    %688 = vector.broadcast %677 : f32 to vector<8x1xf32>
    %689 = arith.mulf %510, %688 : vector<8x1xf32>
    %690 = vector.broadcast %678 : f32 to vector<8x1xf32>
    %691 = arith.addf %689, %690 : vector<8x1xf32>
    %cst_219 = arith.constant 0.00999999977 : f32
    %692 = vector.broadcast %cst_219 : f32 to vector<8x1xf32>
    %693 = arith.mulf %692, %691 : vector<8x1xf32>
    %694 = arith.addf %687, %693 : vector<8x1xf32>
    %c14_i32 = arith.constant 14 : i32
    %695 = vector.broadcast %c14_i32 : i32 to vector<1x32xi32>
    %696 = arith.cmpi eq, %7, %695 : vector<1x32xi32>
    %cst_220 = arith.constant 0.000000e+00 : f32
    %697 = vector.shape_cast %696 : vector<1x32xi1> to vector<1x32xi1>
    %698 = vector.broadcast %697 : vector<1x32xi1> to vector<8x32xi1>
    %699 = vector.shape_cast %694 : vector<8x1xf32> to vector<8x1xf32>
    %700 = vector.broadcast %699 : vector<8x1xf32> to vector<8x32xf32>
    %701 = vector.broadcast %cst_220 : f32 to vector<8x32xf32>
    %702 = arith.select %698, %700, %701 : vector<8x32xi1>, vector<8x32xf32>
    %703 = arith.addf %676, %702 : vector<8x32xf32>
    %c2_221 = arith.constant 2 : index
    %c15_222 = arith.constant 15 : index
    %704 = memref.load %arg8[%c2_221, %c15_222] : memref<4x32xf32, #tpu.memory_space<smem>>
    %c3_223 = arith.constant 3 : index
    %c15_224 = arith.constant 15 : index
    %705 = memref.load %arg8[%c3_223, %c15_224] : memref<4x32xf32, #tpu.memory_space<smem>>
    %706 = vector.broadcast %704 : f32 to vector<8x8xf32>
    %707 = arith.mulf %512, %706 : vector<8x8xf32>
    %708 = vector.broadcast %705 : f32 to vector<8x8xf32>
    %709 = arith.mulf %514, %708 : vector<8x8xf32>
    %710 = arith.addf %707, %709 : vector<8x8xf32>
    %cst_225 = arith.constant 0.000000e+00 : f32
    %711 = vector.broadcast %cst_225 : f32 to vector<8x8xf32>
    %712 = arith.maximumf %710, %711 : vector<8x8xf32>
    %cst_226 = arith.constant dense<0.000000e+00> : vector<8xf32>
    %713 = vector.multi_reduction <add>, %712, %cst_226 [1] : vector<8x8xf32> to vector<8xf32>
    %714 = vector.shape_cast %713 : vector<8xf32> to vector<8x1xf32>
    %715 = vector.broadcast %704 : f32 to vector<8x1xf32>
    %716 = arith.mulf %510, %715 : vector<8x1xf32>
    %717 = vector.broadcast %705 : f32 to vector<8x1xf32>
    %718 = arith.addf %716, %717 : vector<8x1xf32>
    %cst_227 = arith.constant 0.00999999977 : f32
    %719 = vector.broadcast %cst_227 : f32 to vector<8x1xf32>
    %720 = arith.mulf %719, %718 : vector<8x1xf32>
    %721 = arith.addf %714, %720 : vector<8x1xf32>
    %c15_i32 = arith.constant 15 : i32
    %722 = vector.broadcast %c15_i32 : i32 to vector<1x32xi32>
    %723 = arith.cmpi eq, %7, %722 : vector<1x32xi32>
    %cst_228 = arith.constant 0.000000e+00 : f32
    %724 = vector.shape_cast %723 : vector<1x32xi1> to vector<1x32xi1>
    %725 = vector.broadcast %724 : vector<1x32xi1> to vector<8x32xi1>
    %726 = vector.shape_cast %721 : vector<8x1xf32> to vector<8x1xf32>
    %727 = vector.broadcast %726 : vector<8x1xf32> to vector<8x32xf32>
    %728 = vector.broadcast %cst_228 : f32 to vector<8x32xf32>
    %729 = arith.select %725, %727, %728 : vector<8x32xi1>, vector<8x32xf32>
    %730 = arith.addf %703, %729 : vector<8x32xf32>
    %731 = vector.extract_strided_slice %6 {offsets = [0, 16], sizes = [8, 8], strides = [1, 1]} : vector<8x96xf32> to vector<8x8xf32>
    %cst_229 = arith.constant 0.353553385 : f32
    %732 = vector.broadcast %cst_229 : f32 to vector<8x8xf32>
    %733 = arith.mulf %731, %732 : vector<8x8xf32>
    %734 = vector.extract_strided_slice %6 {offsets = [0, 48], sizes = [8, 8], strides = [1, 1]} : vector<8x96xf32> to vector<8x8xf32>
    %735 = vector.extract_strided_slice %4 {offsets = [0, 16], sizes = [1, 8], strides = [1, 1]} : vector<4x32xf32> to vector<1x8xf32>
    %736 = vector.extract_strided_slice %4 {offsets = [1, 16], sizes = [1, 8], strides = [1, 1]} : vector<4x32xf32> to vector<1x8xf32>
    %737 = arith.mulf %733, %734 : vector<8x8xf32>
    %cst_230 = arith.constant dense<0.000000e+00> : vector<8xf32>
    %738 = vector.multi_reduction <add>, %737, %cst_230 [1] : vector<8x8xf32> to vector<8xf32>
    %739 = vector.shape_cast %738 : vector<8xf32> to vector<8x1xf32>
    %740 = vector.broadcast %735 : vector<1x8xf32> to vector<8x8xf32>
    %741 = arith.mulf %733, %740 : vector<8x8xf32>
    %cst_231 = arith.constant dense<0.000000e+00> : vector<8xf32>
    %742 = vector.multi_reduction <add>, %741, %cst_231 [1] : vector<8x8xf32> to vector<8xf32>
    %743 = vector.shape_cast %742 : vector<8xf32> to vector<8x1xf32>
    %744 = vector.broadcast %736 : vector<1x8xf32> to vector<8x8xf32>
    %745 = arith.mulf %733, %744 : vector<8x8xf32>
    %cst_232 = arith.constant dense<0.000000e+00> : vector<8xf32>
    %746 = vector.multi_reduction <add>, %745, %cst_232 [1] : vector<8x8xf32> to vector<8xf32>
    %747 = vector.shape_cast %746 : vector<8xf32> to vector<8x1xf32>
    %cst_233 = arith.constant 9.900000e-01 : f32
    %748 = vector.broadcast %cst_233 : f32 to vector<8x8xf32>
    %749 = arith.mulf %733, %748 : vector<8x8xf32>
    %cst_234 = arith.constant 0.00999999977 : f32
    %750 = vector.broadcast %cst_234 : f32 to vector<8x1xf32>
    %751 = arith.mulf %750, %743 : vector<8x1xf32>
    %752 = vector.broadcast %751 : vector<8x1xf32> to vector<8x8xf32>
    %753 = arith.mulf %3, %752 : vector<8x8xf32>
    %cst_235 = arith.constant 0.00999999977 : f32
    %754 = vector.broadcast %cst_235 : f32 to vector<8x1xf32>
    %755 = arith.mulf %754, %747 : vector<8x1xf32>
    %756 = arith.addf %739, %755 : vector<8x1xf32>
    %757 = vector.broadcast %756 : vector<8x1xf32> to vector<8x8xf32>
    %758 = arith.addf %753, %757 : vector<8x8xf32>
    %c0_236 = arith.constant 0 : index
    %c16 = arith.constant 16 : index
    %759 = memref.load %arg8[%c0_236, %c16] : memref<4x32xf32, #tpu.memory_space<smem>>
    %c1_237 = arith.constant 1 : index
    %c16_238 = arith.constant 16 : index
    %760 = memref.load %arg8[%c1_237, %c16_238] : memref<4x32xf32, #tpu.memory_space<smem>>
    %761 = vector.broadcast %759 : f32 to vector<8x8xf32>
    %762 = arith.mulf %3, %761 : vector<8x8xf32>
    %763 = vector.broadcast %760 : f32 to vector<8x8xf32>
    %764 = arith.addf %762, %763 : vector<8x8xf32>
    %cst_239 = arith.constant 0.000000e+00 : f32
    %765 = vector.broadcast %cst_239 : f32 to vector<8x8xf32>
    %766 = arith.maximumf %764, %765 : vector<8x8xf32>
    %767 = vector.extract_strided_slice %749 {offsets = [0, 0], sizes = [8, 1], strides = [1, 1]} : vector<8x8xf32> to vector<8x1xf32>
    %768 = vector.broadcast %767 : vector<8x1xf32> to vector<8x8xf32>
    %769 = arith.mulf %768, %766 : vector<8x8xf32>
    %770 = arith.addf %758, %769 : vector<8x8xf32>
    %c0_240 = arith.constant 0 : index
    %c17 = arith.constant 17 : index
    %771 = memref.load %arg8[%c0_240, %c17] : memref<4x32xf32, #tpu.memory_space<smem>>
    %c1_241 = arith.constant 1 : index
    %c17_242 = arith.constant 17 : index
    %772 = memref.load %arg8[%c1_241, %c17_242] : memref<4x32xf32, #tpu.memory_space<smem>>
    %773 = vector.broadcast %771 : f32 to vector<8x8xf32>
    %774 = arith.mulf %3, %773 : vector<8x8xf32>
    %775 = vector.broadcast %772 : f32 to vector<8x8xf32>
    %776 = arith.addf %774, %775 : vector<8x8xf32>
    %cst_243 = arith.constant 0.000000e+00 : f32
    %777 = vector.broadcast %cst_243 : f32 to vector<8x8xf32>
    %778 = arith.maximumf %776, %777 : vector<8x8xf32>
    %779 = vector.extract_strided_slice %749 {offsets = [0, 1], sizes = [8, 1], strides = [1, 1]} : vector<8x8xf32> to vector<8x1xf32>
    %780 = vector.broadcast %779 : vector<8x1xf32> to vector<8x8xf32>
    %781 = arith.mulf %780, %778 : vector<8x8xf32>
    %782 = arith.addf %770, %781 : vector<8x8xf32>
    %c0_244 = arith.constant 0 : index
    %c18 = arith.constant 18 : index
    %783 = memref.load %arg8[%c0_244, %c18] : memref<4x32xf32, #tpu.memory_space<smem>>
    %c1_245 = arith.constant 1 : index
    %c18_246 = arith.constant 18 : index
    %784 = memref.load %arg8[%c1_245, %c18_246] : memref<4x32xf32, #tpu.memory_space<smem>>
    %785 = vector.broadcast %783 : f32 to vector<8x8xf32>
    %786 = arith.mulf %3, %785 : vector<8x8xf32>
    %787 = vector.broadcast %784 : f32 to vector<8x8xf32>
    %788 = arith.addf %786, %787 : vector<8x8xf32>
    %cst_247 = arith.constant 0.000000e+00 : f32
    %789 = vector.broadcast %cst_247 : f32 to vector<8x8xf32>
    %790 = arith.maximumf %788, %789 : vector<8x8xf32>
    %791 = vector.extract_strided_slice %749 {offsets = [0, 2], sizes = [8, 1], strides = [1, 1]} : vector<8x8xf32> to vector<8x1xf32>
    %792 = vector.broadcast %791 : vector<8x1xf32> to vector<8x8xf32>
    %793 = arith.mulf %792, %790 : vector<8x8xf32>
    %794 = arith.addf %782, %793 : vector<8x8xf32>
    %c0_248 = arith.constant 0 : index
    %c19 = arith.constant 19 : index
    %795 = memref.load %arg8[%c0_248, %c19] : memref<4x32xf32, #tpu.memory_space<smem>>
    %c1_249 = arith.constant 1 : index
    %c19_250 = arith.constant 19 : index
    %796 = memref.load %arg8[%c1_249, %c19_250] : memref<4x32xf32, #tpu.memory_space<smem>>
    %797 = vector.broadcast %795 : f32 to vector<8x8xf32>
    %798 = arith.mulf %3, %797 : vector<8x8xf32>
    %799 = vector.broadcast %796 : f32 to vector<8x8xf32>
    %800 = arith.addf %798, %799 : vector<8x8xf32>
    %cst_251 = arith.constant 0.000000e+00 : f32
    %801 = vector.broadcast %cst_251 : f32 to vector<8x8xf32>
    %802 = arith.maximumf %800, %801 : vector<8x8xf32>
    %803 = vector.extract_strided_slice %749 {offsets = [0, 3], sizes = [8, 1], strides = [1, 1]} : vector<8x8xf32> to vector<8x1xf32>
    %804 = vector.broadcast %803 : vector<8x1xf32> to vector<8x8xf32>
    %805 = arith.mulf %804, %802 : vector<8x8xf32>
    %806 = arith.addf %794, %805 : vector<8x8xf32>
    %c0_252 = arith.constant 0 : index
    %c20 = arith.constant 20 : index
    %807 = memref.load %arg8[%c0_252, %c20] : memref<4x32xf32, #tpu.memory_space<smem>>
    %c1_253 = arith.constant 1 : index
    %c20_254 = arith.constant 20 : index
    %808 = memref.load %arg8[%c1_253, %c20_254] : memref<4x32xf32, #tpu.memory_space<smem>>
    %809 = vector.broadcast %807 : f32 to vector<8x8xf32>
    %810 = arith.mulf %3, %809 : vector<8x8xf32>
    %811 = vector.broadcast %808 : f32 to vector<8x8xf32>
    %812 = arith.addf %810, %811 : vector<8x8xf32>
    %cst_255 = arith.constant 0.000000e+00 : f32
    %813 = vector.broadcast %cst_255 : f32 to vector<8x8xf32>
    %814 = arith.maximumf %812, %813 : vector<8x8xf32>
    %815 = vector.extract_strided_slice %749 {offsets = [0, 4], sizes = [8, 1], strides = [1, 1]} : vector<8x8xf32> to vector<8x1xf32>
    %816 = vector.broadcast %815 : vector<8x1xf32> to vector<8x8xf32>
    %817 = arith.mulf %816, %814 : vector<8x8xf32>
    %818 = arith.addf %806, %817 : vector<8x8xf32>
    %c0_256 = arith.constant 0 : index
    %c21 = arith.constant 21 : index
    %819 = memref.load %arg8[%c0_256, %c21] : memref<4x32xf32, #tpu.memory_space<smem>>
    %c1_257 = arith.constant 1 : index
    %c21_258 = arith.constant 21 : index
    %820 = memref.load %arg8[%c1_257, %c21_258] : memref<4x32xf32, #tpu.memory_space<smem>>
    %821 = vector.broadcast %819 : f32 to vector<8x8xf32>
    %822 = arith.mulf %3, %821 : vector<8x8xf32>
    %823 = vector.broadcast %820 : f32 to vector<8x8xf32>
    %824 = arith.addf %822, %823 : vector<8x8xf32>
    %cst_259 = arith.constant 0.000000e+00 : f32
    %825 = vector.broadcast %cst_259 : f32 to vector<8x8xf32>
    %826 = arith.maximumf %824, %825 : vector<8x8xf32>
    %827 = vector.extract_strided_slice %749 {offsets = [0, 5], sizes = [8, 1], strides = [1, 1]} : vector<8x8xf32> to vector<8x1xf32>
    %828 = vector.broadcast %827 : vector<8x1xf32> to vector<8x8xf32>
    %829 = arith.mulf %828, %826 : vector<8x8xf32>
    %830 = arith.addf %818, %829 : vector<8x8xf32>
    %c0_260 = arith.constant 0 : index
    %c22 = arith.constant 22 : index
    %831 = memref.load %arg8[%c0_260, %c22] : memref<4x32xf32, #tpu.memory_space<smem>>
    %c1_261 = arith.constant 1 : index
    %c22_262 = arith.constant 22 : index
    %832 = memref.load %arg8[%c1_261, %c22_262] : memref<4x32xf32, #tpu.memory_space<smem>>
    %833 = vector.broadcast %831 : f32 to vector<8x8xf32>
    %834 = arith.mulf %3, %833 : vector<8x8xf32>
    %835 = vector.broadcast %832 : f32 to vector<8x8xf32>
    %836 = arith.addf %834, %835 : vector<8x8xf32>
    %cst_263 = arith.constant 0.000000e+00 : f32
    %837 = vector.broadcast %cst_263 : f32 to vector<8x8xf32>
    %838 = arith.maximumf %836, %837 : vector<8x8xf32>
    %839 = vector.extract_strided_slice %749 {offsets = [0, 6], sizes = [8, 1], strides = [1, 1]} : vector<8x8xf32> to vector<8x1xf32>
    %840 = vector.broadcast %839 : vector<8x1xf32> to vector<8x8xf32>
    %841 = arith.mulf %840, %838 : vector<8x8xf32>
    %842 = arith.addf %830, %841 : vector<8x8xf32>
    %c0_264 = arith.constant 0 : index
    %c23 = arith.constant 23 : index
    %843 = memref.load %arg8[%c0_264, %c23] : memref<4x32xf32, #tpu.memory_space<smem>>
    %c1_265 = arith.constant 1 : index
    %c23_266 = arith.constant 23 : index
    %844 = memref.load %arg8[%c1_265, %c23_266] : memref<4x32xf32, #tpu.memory_space<smem>>
    %845 = vector.broadcast %843 : f32 to vector<8x8xf32>
    %846 = arith.mulf %3, %845 : vector<8x8xf32>
    %847 = vector.broadcast %844 : f32 to vector<8x8xf32>
    %848 = arith.addf %846, %847 : vector<8x8xf32>
    %cst_267 = arith.constant 0.000000e+00 : f32
    %849 = vector.broadcast %cst_267 : f32 to vector<8x8xf32>
    %850 = arith.maximumf %848, %849 : vector<8x8xf32>
    %851 = vector.extract_strided_slice %749 {offsets = [0, 7], sizes = [8, 1], strides = [1, 1]} : vector<8x8xf32> to vector<8x1xf32>
    %852 = vector.broadcast %851 : vector<8x1xf32> to vector<8x8xf32>
    %853 = arith.mulf %852, %850 : vector<8x8xf32>
    %854 = arith.addf %842, %853 : vector<8x8xf32>
    %cst_268 = arith.constant dense<0xFF800000> : vector<8xf32>
    %855 = vector.multi_reduction <maximumf>, %854, %cst_268 [1] : vector<8x8xf32> to vector<8xf32>
    %856 = vector.shape_cast %855 : vector<8xf32> to vector<8x1xf32>
    %857 = vector.broadcast %856 : vector<8x1xf32> to vector<8x8xf32>
    %858 = arith.subf %854, %857 : vector<8x8xf32>
    %859 = math.exp %858 : vector<8x8xf32>
    %cst_269 = arith.constant dense<0.000000e+00> : vector<8xf32>
    %860 = vector.multi_reduction <add>, %859, %cst_269 [1] : vector<8x8xf32> to vector<8xf32>
    %861 = vector.shape_cast %860 : vector<8xf32> to vector<8x1xf32>
    %862 = tpu.reciprocal %861 {approx = true} : vector<8x1xf32> -> vector<8x1xf32>
    %863 = arith.mulf %861, %862 : vector<8x1xf32>
    %cst_270 = arith.constant 2.000000e+00 : f32
    %864 = vector.broadcast %cst_270 : f32 to vector<8x1xf32>
    %865 = arith.subf %864, %863 : vector<8x1xf32>
    %866 = arith.mulf %862, %865 : vector<8x1xf32>
    %867 = vector.broadcast %866 : vector<8x1xf32> to vector<8x8xf32>
    %868 = arith.mulf %859, %867 : vector<8x8xf32>
    %869 = arith.mulf %868, %3 : vector<8x8xf32>
    %cst_271 = arith.constant dense<0.000000e+00> : vector<8xf32>
    %870 = vector.multi_reduction <add>, %869, %cst_271 [1] : vector<8x8xf32> to vector<8xf32>
    %871 = vector.shape_cast %870 : vector<8xf32> to vector<8x1xf32>
    %cst_272 = arith.constant 9.900000e-01 : f32
    %872 = vector.broadcast %cst_272 : f32 to vector<8x8xf32>
    %873 = arith.mulf %869, %872 : vector<8x8xf32>
    %cst_273 = arith.constant 9.900000e-01 : f32
    %874 = vector.broadcast %cst_273 : f32 to vector<8x8xf32>
    %875 = arith.mulf %868, %874 : vector<8x8xf32>
    %c2_274 = arith.constant 2 : index
    %c16_275 = arith.constant 16 : index
    %876 = memref.load %arg8[%c2_274, %c16_275] : memref<4x32xf32, #tpu.memory_space<smem>>
    %c3_276 = arith.constant 3 : index
    %c16_277 = arith.constant 16 : index
    %877 = memref.load %arg8[%c3_276, %c16_277] : memref<4x32xf32, #tpu.memory_space<smem>>
    %878 = vector.broadcast %876 : f32 to vector<8x8xf32>
    %879 = arith.mulf %873, %878 : vector<8x8xf32>
    %880 = vector.broadcast %877 : f32 to vector<8x8xf32>
    %881 = arith.mulf %875, %880 : vector<8x8xf32>
    %882 = arith.addf %879, %881 : vector<8x8xf32>
    %cst_278 = arith.constant 0.000000e+00 : f32
    %883 = vector.broadcast %cst_278 : f32 to vector<8x8xf32>
    %884 = arith.maximumf %882, %883 : vector<8x8xf32>
    %cst_279 = arith.constant dense<0.000000e+00> : vector<8xf32>
    %885 = vector.multi_reduction <add>, %884, %cst_279 [1] : vector<8x8xf32> to vector<8xf32>
    %886 = vector.shape_cast %885 : vector<8xf32> to vector<8x1xf32>
    %887 = vector.broadcast %876 : f32 to vector<8x1xf32>
    %888 = arith.mulf %871, %887 : vector<8x1xf32>
    %889 = vector.broadcast %877 : f32 to vector<8x1xf32>
    %890 = arith.addf %888, %889 : vector<8x1xf32>
    %cst_280 = arith.constant 0.00999999977 : f32
    %891 = vector.broadcast %cst_280 : f32 to vector<8x1xf32>
    %892 = arith.mulf %891, %890 : vector<8x1xf32>
    %893 = arith.addf %886, %892 : vector<8x1xf32>
    %c16_i32 = arith.constant 16 : i32
    %894 = vector.broadcast %c16_i32 : i32 to vector<1x32xi32>
    %895 = arith.cmpi eq, %7, %894 : vector<1x32xi32>
    %cst_281 = arith.constant 0.000000e+00 : f32
    %896 = vector.shape_cast %895 : vector<1x32xi1> to vector<1x32xi1>
    %897 = vector.broadcast %896 : vector<1x32xi1> to vector<8x32xi1>
    %898 = vector.shape_cast %893 : vector<8x1xf32> to vector<8x1xf32>
    %899 = vector.broadcast %898 : vector<8x1xf32> to vector<8x32xf32>
    %900 = vector.broadcast %cst_281 : f32 to vector<8x32xf32>
    %901 = arith.select %897, %899, %900 : vector<8x32xi1>, vector<8x32xf32>
    %902 = arith.addf %730, %901 : vector<8x32xf32>
    %c2_282 = arith.constant 2 : index
    %c17_283 = arith.constant 17 : index
    %903 = memref.load %arg8[%c2_282, %c17_283] : memref<4x32xf32, #tpu.memory_space<smem>>
    %c3_284 = arith.constant 3 : index
    %c17_285 = arith.constant 17 : index
    %904 = memref.load %arg8[%c3_284, %c17_285] : memref<4x32xf32, #tpu.memory_space<smem>>
    %905 = vector.broadcast %903 : f32 to vector<8x8xf32>
    %906 = arith.mulf %873, %905 : vector<8x8xf32>
    %907 = vector.broadcast %904 : f32 to vector<8x8xf32>
    %908 = arith.mulf %875, %907 : vector<8x8xf32>
    %909 = arith.addf %906, %908 : vector<8x8xf32>
    %cst_286 = arith.constant 0.000000e+00 : f32
    %910 = vector.broadcast %cst_286 : f32 to vector<8x8xf32>
    %911 = arith.maximumf %909, %910 : vector<8x8xf32>
    %cst_287 = arith.constant dense<0.000000e+00> : vector<8xf32>
    %912 = vector.multi_reduction <add>, %911, %cst_287 [1] : vector<8x8xf32> to vector<8xf32>
    %913 = vector.shape_cast %912 : vector<8xf32> to vector<8x1xf32>
    %914 = vector.broadcast %903 : f32 to vector<8x1xf32>
    %915 = arith.mulf %871, %914 : vector<8x1xf32>
    %916 = vector.broadcast %904 : f32 to vector<8x1xf32>
    %917 = arith.addf %915, %916 : vector<8x1xf32>
    %cst_288 = arith.constant 0.00999999977 : f32
    %918 = vector.broadcast %cst_288 : f32 to vector<8x1xf32>
    %919 = arith.mulf %918, %917 : vector<8x1xf32>
    %920 = arith.addf %913, %919 : vector<8x1xf32>
    %c17_i32 = arith.constant 17 : i32
    %921 = vector.broadcast %c17_i32 : i32 to vector<1x32xi32>
    %922 = arith.cmpi eq, %7, %921 : vector<1x32xi32>
    %cst_289 = arith.constant 0.000000e+00 : f32
    %923 = vector.shape_cast %922 : vector<1x32xi1> to vector<1x32xi1>
    %924 = vector.broadcast %923 : vector<1x32xi1> to vector<8x32xi1>
    %925 = vector.shape_cast %920 : vector<8x1xf32> to vector<8x1xf32>
    %926 = vector.broadcast %925 : vector<8x1xf32> to vector<8x32xf32>
    %927 = vector.broadcast %cst_289 : f32 to vector<8x32xf32>
    %928 = arith.select %924, %926, %927 : vector<8x32xi1>, vector<8x32xf32>
    %929 = arith.addf %902, %928 : vector<8x32xf32>
    %c2_290 = arith.constant 2 : index
    %c18_291 = arith.constant 18 : index
    %930 = memref.load %arg8[%c2_290, %c18_291] : memref<4x32xf32, #tpu.memory_space<smem>>
    %c3_292 = arith.constant 3 : index
    %c18_293 = arith.constant 18 : index
    %931 = memref.load %arg8[%c3_292, %c18_293] : memref<4x32xf32, #tpu.memory_space<smem>>
    %932 = vector.broadcast %930 : f32 to vector<8x8xf32>
    %933 = arith.mulf %873, %932 : vector<8x8xf32>
    %934 = vector.broadcast %931 : f32 to vector<8x8xf32>
    %935 = arith.mulf %875, %934 : vector<8x8xf32>
    %936 = arith.addf %933, %935 : vector<8x8xf32>
    %cst_294 = arith.constant 0.000000e+00 : f32
    %937 = vector.broadcast %cst_294 : f32 to vector<8x8xf32>
    %938 = arith.maximumf %936, %937 : vector<8x8xf32>
    %cst_295 = arith.constant dense<0.000000e+00> : vector<8xf32>
    %939 = vector.multi_reduction <add>, %938, %cst_295 [1] : vector<8x8xf32> to vector<8xf32>
    %940 = vector.shape_cast %939 : vector<8xf32> to vector<8x1xf32>
    %941 = vector.broadcast %930 : f32 to vector<8x1xf32>
    %942 = arith.mulf %871, %941 : vector<8x1xf32>
    %943 = vector.broadcast %931 : f32 to vector<8x1xf32>
    %944 = arith.addf %942, %943 : vector<8x1xf32>
    %cst_296 = arith.constant 0.00999999977 : f32
    %945 = vector.broadcast %cst_296 : f32 to vector<8x1xf32>
    %946 = arith.mulf %945, %944 : vector<8x1xf32>
    %947 = arith.addf %940, %946 : vector<8x1xf32>
    %c18_i32 = arith.constant 18 : i32
    %948 = vector.broadcast %c18_i32 : i32 to vector<1x32xi32>
    %949 = arith.cmpi eq, %7, %948 : vector<1x32xi32>
    %cst_297 = arith.constant 0.000000e+00 : f32
    %950 = vector.shape_cast %949 : vector<1x32xi1> to vector<1x32xi1>
    %951 = vector.broadcast %950 : vector<1x32xi1> to vector<8x32xi1>
    %952 = vector.shape_cast %947 : vector<8x1xf32> to vector<8x1xf32>
    %953 = vector.broadcast %952 : vector<8x1xf32> to vector<8x32xf32>
    %954 = vector.broadcast %cst_297 : f32 to vector<8x32xf32>
    %955 = arith.select %951, %953, %954 : vector<8x32xi1>, vector<8x32xf32>
    %956 = arith.addf %929, %955 : vector<8x32xf32>
    %c2_298 = arith.constant 2 : index
    %c19_299 = arith.constant 19 : index
    %957 = memref.load %arg8[%c2_298, %c19_299] : memref<4x32xf32, #tpu.memory_space<smem>>
    %c3_300 = arith.constant 3 : index
    %c19_301 = arith.constant 19 : index
    %958 = memref.load %arg8[%c3_300, %c19_301] : memref<4x32xf32, #tpu.memory_space<smem>>
    %959 = vector.broadcast %957 : f32 to vector<8x8xf32>
    %960 = arith.mulf %873, %959 : vector<8x8xf32>
    %961 = vector.broadcast %958 : f32 to vector<8x8xf32>
    %962 = arith.mulf %875, %961 : vector<8x8xf32>
    %963 = arith.addf %960, %962 : vector<8x8xf32>
    %cst_302 = arith.constant 0.000000e+00 : f32
    %964 = vector.broadcast %cst_302 : f32 to vector<8x8xf32>
    %965 = arith.maximumf %963, %964 : vector<8x8xf32>
    %cst_303 = arith.constant dense<0.000000e+00> : vector<8xf32>
    %966 = vector.multi_reduction <add>, %965, %cst_303 [1] : vector<8x8xf32> to vector<8xf32>
    %967 = vector.shape_cast %966 : vector<8xf32> to vector<8x1xf32>
    %968 = vector.broadcast %957 : f32 to vector<8x1xf32>
    %969 = arith.mulf %871, %968 : vector<8x1xf32>
    %970 = vector.broadcast %958 : f32 to vector<8x1xf32>
    %971 = arith.addf %969, %970 : vector<8x1xf32>
    %cst_304 = arith.constant 0.00999999977 : f32
    %972 = vector.broadcast %cst_304 : f32 to vector<8x1xf32>
    %973 = arith.mulf %972, %971 : vector<8x1xf32>
    %974 = arith.addf %967, %973 : vector<8x1xf32>
    %c19_i32 = arith.constant 19 : i32
    %975 = vector.broadcast %c19_i32 : i32 to vector<1x32xi32>
    %976 = arith.cmpi eq, %7, %975 : vector<1x32xi32>
    %cst_305 = arith.constant 0.000000e+00 : f32
    %977 = vector.shape_cast %976 : vector<1x32xi1> to vector<1x32xi1>
    %978 = vector.broadcast %977 : vector<1x32xi1> to vector<8x32xi1>
    %979 = vector.shape_cast %974 : vector<8x1xf32> to vector<8x1xf32>
    %980 = vector.broadcast %979 : vector<8x1xf32> to vector<8x32xf32>
    %981 = vector.broadcast %cst_305 : f32 to vector<8x32xf32>
    %982 = arith.select %978, %980, %981 : vector<8x32xi1>, vector<8x32xf32>
    %983 = arith.addf %956, %982 : vector<8x32xf32>
    %c2_306 = arith.constant 2 : index
    %c20_307 = arith.constant 20 : index
    %984 = memref.load %arg8[%c2_306, %c20_307] : memref<4x32xf32, #tpu.memory_space<smem>>
    %c3_308 = arith.constant 3 : index
    %c20_309 = arith.constant 20 : index
    %985 = memref.load %arg8[%c3_308, %c20_309] : memref<4x32xf32, #tpu.memory_space<smem>>
    %986 = vector.broadcast %984 : f32 to vector<8x8xf32>
    %987 = arith.mulf %873, %986 : vector<8x8xf32>
    %988 = vector.broadcast %985 : f32 to vector<8x8xf32>
    %989 = arith.mulf %875, %988 : vector<8x8xf32>
    %990 = arith.addf %987, %989 : vector<8x8xf32>
    %cst_310 = arith.constant 0.000000e+00 : f32
    %991 = vector.broadcast %cst_310 : f32 to vector<8x8xf32>
    %992 = arith.maximumf %990, %991 : vector<8x8xf32>
    %cst_311 = arith.constant dense<0.000000e+00> : vector<8xf32>
    %993 = vector.multi_reduction <add>, %992, %cst_311 [1] : vector<8x8xf32> to vector<8xf32>
    %994 = vector.shape_cast %993 : vector<8xf32> to vector<8x1xf32>
    %995 = vector.broadcast %984 : f32 to vector<8x1xf32>
    %996 = arith.mulf %871, %995 : vector<8x1xf32>
    %997 = vector.broadcast %985 : f32 to vector<8x1xf32>
    %998 = arith.addf %996, %997 : vector<8x1xf32>
    %cst_312 = arith.constant 0.00999999977 : f32
    %999 = vector.broadcast %cst_312 : f32 to vector<8x1xf32>
    %1000 = arith.mulf %999, %998 : vector<8x1xf32>
    %1001 = arith.addf %994, %1000 : vector<8x1xf32>
    %c20_i32 = arith.constant 20 : i32
    %1002 = vector.broadcast %c20_i32 : i32 to vector<1x32xi32>
    %1003 = arith.cmpi eq, %7, %1002 : vector<1x32xi32>
    %cst_313 = arith.constant 0.000000e+00 : f32
    %1004 = vector.shape_cast %1003 : vector<1x32xi1> to vector<1x32xi1>
    %1005 = vector.broadcast %1004 : vector<1x32xi1> to vector<8x32xi1>
    %1006 = vector.shape_cast %1001 : vector<8x1xf32> to vector<8x1xf32>
    %1007 = vector.broadcast %1006 : vector<8x1xf32> to vector<8x32xf32>
    %1008 = vector.broadcast %cst_313 : f32 to vector<8x32xf32>
    %1009 = arith.select %1005, %1007, %1008 : vector<8x32xi1>, vector<8x32xf32>
    %1010 = arith.addf %983, %1009 : vector<8x32xf32>
    %c2_314 = arith.constant 2 : index
    %c21_315 = arith.constant 21 : index
    %1011 = memref.load %arg8[%c2_314, %c21_315] : memref<4x32xf32, #tpu.memory_space<smem>>
    %c3_316 = arith.constant 3 : index
    %c21_317 = arith.constant 21 : index
    %1012 = memref.load %arg8[%c3_316, %c21_317] : memref<4x32xf32, #tpu.memory_space<smem>>
    %1013 = vector.broadcast %1011 : f32 to vector<8x8xf32>
    %1014 = arith.mulf %873, %1013 : vector<8x8xf32>
    %1015 = vector.broadcast %1012 : f32 to vector<8x8xf32>
    %1016 = arith.mulf %875, %1015 : vector<8x8xf32>
    %1017 = arith.addf %1014, %1016 : vector<8x8xf32>
    %cst_318 = arith.constant 0.000000e+00 : f32
    %1018 = vector.broadcast %cst_318 : f32 to vector<8x8xf32>
    %1019 = arith.maximumf %1017, %1018 : vector<8x8xf32>
    %cst_319 = arith.constant dense<0.000000e+00> : vector<8xf32>
    %1020 = vector.multi_reduction <add>, %1019, %cst_319 [1] : vector<8x8xf32> to vector<8xf32>
    %1021 = vector.shape_cast %1020 : vector<8xf32> to vector<8x1xf32>
    %1022 = vector.broadcast %1011 : f32 to vector<8x1xf32>
    %1023 = arith.mulf %871, %1022 : vector<8x1xf32>
    %1024 = vector.broadcast %1012 : f32 to vector<8x1xf32>
    %1025 = arith.addf %1023, %1024 : vector<8x1xf32>
    %cst_320 = arith.constant 0.00999999977 : f32
    %1026 = vector.broadcast %cst_320 : f32 to vector<8x1xf32>
    %1027 = arith.mulf %1026, %1025 : vector<8x1xf32>
    %1028 = arith.addf %1021, %1027 : vector<8x1xf32>
    %c21_i32 = arith.constant 21 : i32
    %1029 = vector.broadcast %c21_i32 : i32 to vector<1x32xi32>
    %1030 = arith.cmpi eq, %7, %1029 : vector<1x32xi32>
    %cst_321 = arith.constant 0.000000e+00 : f32
    %1031 = vector.shape_cast %1030 : vector<1x32xi1> to vector<1x32xi1>
    %1032 = vector.broadcast %1031 : vector<1x32xi1> to vector<8x32xi1>
    %1033 = vector.shape_cast %1028 : vector<8x1xf32> to vector<8x1xf32>
    %1034 = vector.broadcast %1033 : vector<8x1xf32> to vector<8x32xf32>
    %1035 = vector.broadcast %cst_321 : f32 to vector<8x32xf32>
    %1036 = arith.select %1032, %1034, %1035 : vector<8x32xi1>, vector<8x32xf32>
    %1037 = arith.addf %1010, %1036 : vector<8x32xf32>
    %c2_322 = arith.constant 2 : index
    %c22_323 = arith.constant 22 : index
    %1038 = memref.load %arg8[%c2_322, %c22_323] : memref<4x32xf32, #tpu.memory_space<smem>>
    %c3_324 = arith.constant 3 : index
    %c22_325 = arith.constant 22 : index
    %1039 = memref.load %arg8[%c3_324, %c22_325] : memref<4x32xf32, #tpu.memory_space<smem>>
    %1040 = vector.broadcast %1038 : f32 to vector<8x8xf32>
    %1041 = arith.mulf %873, %1040 : vector<8x8xf32>
    %1042 = vector.broadcast %1039 : f32 to vector<8x8xf32>
    %1043 = arith.mulf %875, %1042 : vector<8x8xf32>
    %1044 = arith.addf %1041, %1043 : vector<8x8xf32>
    %cst_326 = arith.constant 0.000000e+00 : f32
    %1045 = vector.broadcast %cst_326 : f32 to vector<8x8xf32>
    %1046 = arith.maximumf %1044, %1045 : vector<8x8xf32>
    %cst_327 = arith.constant dense<0.000000e+00> : vector<8xf32>
    %1047 = vector.multi_reduction <add>, %1046, %cst_327 [1] : vector<8x8xf32> to vector<8xf32>
    %1048 = vector.shape_cast %1047 : vector<8xf32> to vector<8x1xf32>
    %1049 = vector.broadcast %1038 : f32 to vector<8x1xf32>
    %1050 = arith.mulf %871, %1049 : vector<8x1xf32>
    %1051 = vector.broadcast %1039 : f32 to vector<8x1xf32>
    %1052 = arith.addf %1050, %1051 : vector<8x1xf32>
    %cst_328 = arith.constant 0.00999999977 : f32
    %1053 = vector.broadcast %cst_328 : f32 to vector<8x1xf32>
    %1054 = arith.mulf %1053, %1052 : vector<8x1xf32>
    %1055 = arith.addf %1048, %1054 : vector<8x1xf32>
    %c22_i32 = arith.constant 22 : i32
    %1056 = vector.broadcast %c22_i32 : i32 to vector<1x32xi32>
    %1057 = arith.cmpi eq, %7, %1056 : vector<1x32xi32>
    %cst_329 = arith.constant 0.000000e+00 : f32
    %1058 = vector.shape_cast %1057 : vector<1x32xi1> to vector<1x32xi1>
    %1059 = vector.broadcast %1058 : vector<1x32xi1> to vector<8x32xi1>
    %1060 = vector.shape_cast %1055 : vector<8x1xf32> to vector<8x1xf32>
    %1061 = vector.broadcast %1060 : vector<8x1xf32> to vector<8x32xf32>
    %1062 = vector.broadcast %cst_329 : f32 to vector<8x32xf32>
    %1063 = arith.select %1059, %1061, %1062 : vector<8x32xi1>, vector<8x32xf32>
    %1064 = arith.addf %1037, %1063 : vector<8x32xf32>
    %c2_330 = arith.constant 2 : index
    %c23_331 = arith.constant 23 : index
    %1065 = memref.load %arg8[%c2_330, %c23_331] : memref<4x32xf32, #tpu.memory_space<smem>>
    %c3_332 = arith.constant 3 : index
    %c23_333 = arith.constant 23 : index
    %1066 = memref.load %arg8[%c3_332, %c23_333] : memref<4x32xf32, #tpu.memory_space<smem>>
    %1067 = vector.broadcast %1065 : f32 to vector<8x8xf32>
    %1068 = arith.mulf %873, %1067 : vector<8x8xf32>
    %1069 = vector.broadcast %1066 : f32 to vector<8x8xf32>
    %1070 = arith.mulf %875, %1069 : vector<8x8xf32>
    %1071 = arith.addf %1068, %1070 : vector<8x8xf32>
    %cst_334 = arith.constant 0.000000e+00 : f32
    %1072 = vector.broadcast %cst_334 : f32 to vector<8x8xf32>
    %1073 = arith.maximumf %1071, %1072 : vector<8x8xf32>
    %cst_335 = arith.constant dense<0.000000e+00> : vector<8xf32>
    %1074 = vector.multi_reduction <add>, %1073, %cst_335 [1] : vector<8x8xf32> to vector<8xf32>
    %1075 = vector.shape_cast %1074 : vector<8xf32> to vector<8x1xf32>
    %1076 = vector.broadcast %1065 : f32 to vector<8x1xf32>
    %1077 = arith.mulf %871, %1076 : vector<8x1xf32>
    %1078 = vector.broadcast %1066 : f32 to vector<8x1xf32>
    %1079 = arith.addf %1077, %1078 : vector<8x1xf32>
    %cst_336 = arith.constant 0.00999999977 : f32
    %1080 = vector.broadcast %cst_336 : f32 to vector<8x1xf32>
    %1081 = arith.mulf %1080, %1079 : vector<8x1xf32>
    %1082 = arith.addf %1075, %1081 : vector<8x1xf32>
    %c23_i32 = arith.constant 23 : i32
    %1083 = vector.broadcast %c23_i32 : i32 to vector<1x32xi32>
    %1084 = arith.cmpi eq, %7, %1083 : vector<1x32xi32>
    %cst_337 = arith.constant 0.000000e+00 : f32
    %1085 = vector.shape_cast %1084 : vector<1x32xi1> to vector<1x32xi1>
    %1086 = vector.broadcast %1085 : vector<1x32xi1> to vector<8x32xi1>
    %1087 = vector.shape_cast %1082 : vector<8x1xf32> to vector<8x1xf32>
    %1088 = vector.broadcast %1087 : vector<8x1xf32> to vector<8x32xf32>
    %1089 = vector.broadcast %cst_337 : f32 to vector<8x32xf32>
    %1090 = arith.select %1086, %1088, %1089 : vector<8x32xi1>, vector<8x32xf32>
    %1091 = arith.addf %1064, %1090 : vector<8x32xf32>
    %1092 = vector.extract_strided_slice %6 {offsets = [0, 24], sizes = [8, 8], strides = [1, 1]} : vector<8x96xf32> to vector<8x8xf32>
    %cst_338 = arith.constant 0.353553385 : f32
    %1093 = vector.broadcast %cst_338 : f32 to vector<8x8xf32>
    %1094 = arith.mulf %1092, %1093 : vector<8x8xf32>
    %1095 = vector.extract_strided_slice %6 {offsets = [0, 56], sizes = [8, 8], strides = [1, 1]} : vector<8x96xf32> to vector<8x8xf32>
    %1096 = vector.extract_strided_slice %4 {offsets = [0, 24], sizes = [1, 8], strides = [1, 1]} : vector<4x32xf32> to vector<1x8xf32>
    %1097 = vector.extract_strided_slice %4 {offsets = [1, 24], sizes = [1, 8], strides = [1, 1]} : vector<4x32xf32> to vector<1x8xf32>
    %1098 = arith.mulf %1094, %1095 : vector<8x8xf32>
    %cst_339 = arith.constant dense<0.000000e+00> : vector<8xf32>
    %1099 = vector.multi_reduction <add>, %1098, %cst_339 [1] : vector<8x8xf32> to vector<8xf32>
    %1100 = vector.shape_cast %1099 : vector<8xf32> to vector<8x1xf32>
    %1101 = vector.broadcast %1096 : vector<1x8xf32> to vector<8x8xf32>
    %1102 = arith.mulf %1094, %1101 : vector<8x8xf32>
    %cst_340 = arith.constant dense<0.000000e+00> : vector<8xf32>
    %1103 = vector.multi_reduction <add>, %1102, %cst_340 [1] : vector<8x8xf32> to vector<8xf32>
    %1104 = vector.shape_cast %1103 : vector<8xf32> to vector<8x1xf32>
    %1105 = vector.broadcast %1097 : vector<1x8xf32> to vector<8x8xf32>
    %1106 = arith.mulf %1094, %1105 : vector<8x8xf32>
    %cst_341 = arith.constant dense<0.000000e+00> : vector<8xf32>
    %1107 = vector.multi_reduction <add>, %1106, %cst_341 [1] : vector<8x8xf32> to vector<8xf32>
    %1108 = vector.shape_cast %1107 : vector<8xf32> to vector<8x1xf32>
    %cst_342 = arith.constant 9.900000e-01 : f32
    %1109 = vector.broadcast %cst_342 : f32 to vector<8x8xf32>
    %1110 = arith.mulf %1094, %1109 : vector<8x8xf32>
    %cst_343 = arith.constant 0.00999999977 : f32
    %1111 = vector.broadcast %cst_343 : f32 to vector<8x1xf32>
    %1112 = arith.mulf %1111, %1104 : vector<8x1xf32>
    %1113 = vector.broadcast %1112 : vector<8x1xf32> to vector<8x8xf32>
    %1114 = arith.mulf %3, %1113 : vector<8x8xf32>
    %cst_344 = arith.constant 0.00999999977 : f32
    %1115 = vector.broadcast %cst_344 : f32 to vector<8x1xf32>
    %1116 = arith.mulf %1115, %1108 : vector<8x1xf32>
    %1117 = arith.addf %1100, %1116 : vector<8x1xf32>
    %1118 = vector.broadcast %1117 : vector<8x1xf32> to vector<8x8xf32>
    %1119 = arith.addf %1114, %1118 : vector<8x8xf32>
    %c0_345 = arith.constant 0 : index
    %c24 = arith.constant 24 : index
    %1120 = memref.load %arg8[%c0_345, %c24] : memref<4x32xf32, #tpu.memory_space<smem>>
    %c1_346 = arith.constant 1 : index
    %c24_347 = arith.constant 24 : index
    %1121 = memref.load %arg8[%c1_346, %c24_347] : memref<4x32xf32, #tpu.memory_space<smem>>
    %1122 = vector.broadcast %1120 : f32 to vector<8x8xf32>
    %1123 = arith.mulf %3, %1122 : vector<8x8xf32>
    %1124 = vector.broadcast %1121 : f32 to vector<8x8xf32>
    %1125 = arith.addf %1123, %1124 : vector<8x8xf32>
    %cst_348 = arith.constant 0.000000e+00 : f32
    %1126 = vector.broadcast %cst_348 : f32 to vector<8x8xf32>
    %1127 = arith.maximumf %1125, %1126 : vector<8x8xf32>
    %1128 = vector.extract_strided_slice %1110 {offsets = [0, 0], sizes = [8, 1], strides = [1, 1]} : vector<8x8xf32> to vector<8x1xf32>
    %1129 = vector.broadcast %1128 : vector<8x1xf32> to vector<8x8xf32>
    %1130 = arith.mulf %1129, %1127 : vector<8x8xf32>
    %1131 = arith.addf %1119, %1130 : vector<8x8xf32>
    %c0_349 = arith.constant 0 : index
    %c25 = arith.constant 25 : index
    %1132 = memref.load %arg8[%c0_349, %c25] : memref<4x32xf32, #tpu.memory_space<smem>>
    %c1_350 = arith.constant 1 : index
    %c25_351 = arith.constant 25 : index
    %1133 = memref.load %arg8[%c1_350, %c25_351] : memref<4x32xf32, #tpu.memory_space<smem>>
    %1134 = vector.broadcast %1132 : f32 to vector<8x8xf32>
    %1135 = arith.mulf %3, %1134 : vector<8x8xf32>
    %1136 = vector.broadcast %1133 : f32 to vector<8x8xf32>
    %1137 = arith.addf %1135, %1136 : vector<8x8xf32>
    %cst_352 = arith.constant 0.000000e+00 : f32
    %1138 = vector.broadcast %cst_352 : f32 to vector<8x8xf32>
    %1139 = arith.maximumf %1137, %1138 : vector<8x8xf32>
    %1140 = vector.extract_strided_slice %1110 {offsets = [0, 1], sizes = [8, 1], strides = [1, 1]} : vector<8x8xf32> to vector<8x1xf32>
    %1141 = vector.broadcast %1140 : vector<8x1xf32> to vector<8x8xf32>
    %1142 = arith.mulf %1141, %1139 : vector<8x8xf32>
    %1143 = arith.addf %1131, %1142 : vector<8x8xf32>
    %c0_353 = arith.constant 0 : index
    %c26 = arith.constant 26 : index
    %1144 = memref.load %arg8[%c0_353, %c26] : memref<4x32xf32, #tpu.memory_space<smem>>
    %c1_354 = arith.constant 1 : index
    %c26_355 = arith.constant 26 : index
    %1145 = memref.load %arg8[%c1_354, %c26_355] : memref<4x32xf32, #tpu.memory_space<smem>>
    %1146 = vector.broadcast %1144 : f32 to vector<8x8xf32>
    %1147 = arith.mulf %3, %1146 : vector<8x8xf32>
    %1148 = vector.broadcast %1145 : f32 to vector<8x8xf32>
    %1149 = arith.addf %1147, %1148 : vector<8x8xf32>
    %cst_356 = arith.constant 0.000000e+00 : f32
    %1150 = vector.broadcast %cst_356 : f32 to vector<8x8xf32>
    %1151 = arith.maximumf %1149, %1150 : vector<8x8xf32>
    %1152 = vector.extract_strided_slice %1110 {offsets = [0, 2], sizes = [8, 1], strides = [1, 1]} : vector<8x8xf32> to vector<8x1xf32>
    %1153 = vector.broadcast %1152 : vector<8x1xf32> to vector<8x8xf32>
    %1154 = arith.mulf %1153, %1151 : vector<8x8xf32>
    %1155 = arith.addf %1143, %1154 : vector<8x8xf32>
    %c0_357 = arith.constant 0 : index
    %c27 = arith.constant 27 : index
    %1156 = memref.load %arg8[%c0_357, %c27] : memref<4x32xf32, #tpu.memory_space<smem>>
    %c1_358 = arith.constant 1 : index
    %c27_359 = arith.constant 27 : index
    %1157 = memref.load %arg8[%c1_358, %c27_359] : memref<4x32xf32, #tpu.memory_space<smem>>
    %1158 = vector.broadcast %1156 : f32 to vector<8x8xf32>
    %1159 = arith.mulf %3, %1158 : vector<8x8xf32>
    %1160 = vector.broadcast %1157 : f32 to vector<8x8xf32>
    %1161 = arith.addf %1159, %1160 : vector<8x8xf32>
    %cst_360 = arith.constant 0.000000e+00 : f32
    %1162 = vector.broadcast %cst_360 : f32 to vector<8x8xf32>
    %1163 = arith.maximumf %1161, %1162 : vector<8x8xf32>
    %1164 = vector.extract_strided_slice %1110 {offsets = [0, 3], sizes = [8, 1], strides = [1, 1]} : vector<8x8xf32> to vector<8x1xf32>
    %1165 = vector.broadcast %1164 : vector<8x1xf32> to vector<8x8xf32>
    %1166 = arith.mulf %1165, %1163 : vector<8x8xf32>
    %1167 = arith.addf %1155, %1166 : vector<8x8xf32>
    %c0_361 = arith.constant 0 : index
    %c28 = arith.constant 28 : index
    %1168 = memref.load %arg8[%c0_361, %c28] : memref<4x32xf32, #tpu.memory_space<smem>>
    %c1_362 = arith.constant 1 : index
    %c28_363 = arith.constant 28 : index
    %1169 = memref.load %arg8[%c1_362, %c28_363] : memref<4x32xf32, #tpu.memory_space<smem>>
    %1170 = vector.broadcast %1168 : f32 to vector<8x8xf32>
    %1171 = arith.mulf %3, %1170 : vector<8x8xf32>
    %1172 = vector.broadcast %1169 : f32 to vector<8x8xf32>
    %1173 = arith.addf %1171, %1172 : vector<8x8xf32>
    %cst_364 = arith.constant 0.000000e+00 : f32
    %1174 = vector.broadcast %cst_364 : f32 to vector<8x8xf32>
    %1175 = arith.maximumf %1173, %1174 : vector<8x8xf32>
    %1176 = vector.extract_strided_slice %1110 {offsets = [0, 4], sizes = [8, 1], strides = [1, 1]} : vector<8x8xf32> to vector<8x1xf32>
    %1177 = vector.broadcast %1176 : vector<8x1xf32> to vector<8x8xf32>
    %1178 = arith.mulf %1177, %1175 : vector<8x8xf32>
    %1179 = arith.addf %1167, %1178 : vector<8x8xf32>
    %c0_365 = arith.constant 0 : index
    %c29 = arith.constant 29 : index
    %1180 = memref.load %arg8[%c0_365, %c29] : memref<4x32xf32, #tpu.memory_space<smem>>
    %c1_366 = arith.constant 1 : index
    %c29_367 = arith.constant 29 : index
    %1181 = memref.load %arg8[%c1_366, %c29_367] : memref<4x32xf32, #tpu.memory_space<smem>>
    %1182 = vector.broadcast %1180 : f32 to vector<8x8xf32>
    %1183 = arith.mulf %3, %1182 : vector<8x8xf32>
    %1184 = vector.broadcast %1181 : f32 to vector<8x8xf32>
    %1185 = arith.addf %1183, %1184 : vector<8x8xf32>
    %cst_368 = arith.constant 0.000000e+00 : f32
    %1186 = vector.broadcast %cst_368 : f32 to vector<8x8xf32>
    %1187 = arith.maximumf %1185, %1186 : vector<8x8xf32>
    %1188 = vector.extract_strided_slice %1110 {offsets = [0, 5], sizes = [8, 1], strides = [1, 1]} : vector<8x8xf32> to vector<8x1xf32>
    %1189 = vector.broadcast %1188 : vector<8x1xf32> to vector<8x8xf32>
    %1190 = arith.mulf %1189, %1187 : vector<8x8xf32>
    %1191 = arith.addf %1179, %1190 : vector<8x8xf32>
    %c0_369 = arith.constant 0 : index
    %c30 = arith.constant 30 : index
    %1192 = memref.load %arg8[%c0_369, %c30] : memref<4x32xf32, #tpu.memory_space<smem>>
    %c1_370 = arith.constant 1 : index
    %c30_371 = arith.constant 30 : index
    %1193 = memref.load %arg8[%c1_370, %c30_371] : memref<4x32xf32, #tpu.memory_space<smem>>
    %1194 = vector.broadcast %1192 : f32 to vector<8x8xf32>
    %1195 = arith.mulf %3, %1194 : vector<8x8xf32>
    %1196 = vector.broadcast %1193 : f32 to vector<8x8xf32>
    %1197 = arith.addf %1195, %1196 : vector<8x8xf32>
    %cst_372 = arith.constant 0.000000e+00 : f32
    %1198 = vector.broadcast %cst_372 : f32 to vector<8x8xf32>
    %1199 = arith.maximumf %1197, %1198 : vector<8x8xf32>
    %1200 = vector.extract_strided_slice %1110 {offsets = [0, 6], sizes = [8, 1], strides = [1, 1]} : vector<8x8xf32> to vector<8x1xf32>
    %1201 = vector.broadcast %1200 : vector<8x1xf32> to vector<8x8xf32>
    %1202 = arith.mulf %1201, %1199 : vector<8x8xf32>
    %1203 = arith.addf %1191, %1202 : vector<8x8xf32>
    %c0_373 = arith.constant 0 : index
    %c31 = arith.constant 31 : index
    %1204 = memref.load %arg8[%c0_373, %c31] : memref<4x32xf32, #tpu.memory_space<smem>>
    %c1_374 = arith.constant 1 : index
    %c31_375 = arith.constant 31 : index
    %1205 = memref.load %arg8[%c1_374, %c31_375] : memref<4x32xf32, #tpu.memory_space<smem>>
    %1206 = vector.broadcast %1204 : f32 to vector<8x8xf32>
    %1207 = arith.mulf %3, %1206 : vector<8x8xf32>
    %1208 = vector.broadcast %1205 : f32 to vector<8x8xf32>
    %1209 = arith.addf %1207, %1208 : vector<8x8xf32>
    %cst_376 = arith.constant 0.000000e+00 : f32
    %1210 = vector.broadcast %cst_376 : f32 to vector<8x8xf32>
    %1211 = arith.maximumf %1209, %1210 : vector<8x8xf32>
    %1212 = vector.extract_strided_slice %1110 {offsets = [0, 7], sizes = [8, 1], strides = [1, 1]} : vector<8x8xf32> to vector<8x1xf32>
    %1213 = vector.broadcast %1212 : vector<8x1xf32> to vector<8x8xf32>
    %1214 = arith.mulf %1213, %1211 : vector<8x8xf32>
    %1215 = arith.addf %1203, %1214 : vector<8x8xf32>
    %cst_377 = arith.constant dense<0xFF800000> : vector<8xf32>
    %1216 = vector.multi_reduction <maximumf>, %1215, %cst_377 [1] : vector<8x8xf32> to vector<8xf32>
    %1217 = vector.shape_cast %1216 : vector<8xf32> to vector<8x1xf32>
    %1218 = vector.broadcast %1217 : vector<8x1xf32> to vector<8x8xf32>
    %1219 = arith.subf %1215, %1218 : vector<8x8xf32>
    %1220 = math.exp %1219 : vector<8x8xf32>
    %cst_378 = arith.constant dense<0.000000e+00> : vector<8xf32>
    %1221 = vector.multi_reduction <add>, %1220, %cst_378 [1] : vector<8x8xf32> to vector<8xf32>
    %1222 = vector.shape_cast %1221 : vector<8xf32> to vector<8x1xf32>
    %1223 = tpu.reciprocal %1222 {approx = true} : vector<8x1xf32> -> vector<8x1xf32>
    %1224 = arith.mulf %1222, %1223 : vector<8x1xf32>
    %cst_379 = arith.constant 2.000000e+00 : f32
    %1225 = vector.broadcast %cst_379 : f32 to vector<8x1xf32>
    %1226 = arith.subf %1225, %1224 : vector<8x1xf32>
    %1227 = arith.mulf %1223, %1226 : vector<8x1xf32>
    %1228 = vector.broadcast %1227 : vector<8x1xf32> to vector<8x8xf32>
    %1229 = arith.mulf %1220, %1228 : vector<8x8xf32>
    %1230 = arith.mulf %1229, %3 : vector<8x8xf32>
    %cst_380 = arith.constant dense<0.000000e+00> : vector<8xf32>
    %1231 = vector.multi_reduction <add>, %1230, %cst_380 [1] : vector<8x8xf32> to vector<8xf32>
    %1232 = vector.shape_cast %1231 : vector<8xf32> to vector<8x1xf32>
    %cst_381 = arith.constant 9.900000e-01 : f32
    %1233 = vector.broadcast %cst_381 : f32 to vector<8x8xf32>
    %1234 = arith.mulf %1230, %1233 : vector<8x8xf32>
    %cst_382 = arith.constant 9.900000e-01 : f32
    %1235 = vector.broadcast %cst_382 : f32 to vector<8x8xf32>
    %1236 = arith.mulf %1229, %1235 : vector<8x8xf32>
    %c2_383 = arith.constant 2 : index
    %c24_384 = arith.constant 24 : index
    %1237 = memref.load %arg8[%c2_383, %c24_384] : memref<4x32xf32, #tpu.memory_space<smem>>
    %c3_385 = arith.constant 3 : index
    %c24_386 = arith.constant 24 : index
    %1238 = memref.load %arg8[%c3_385, %c24_386] : memref<4x32xf32, #tpu.memory_space<smem>>
    %1239 = vector.broadcast %1237 : f32 to vector<8x8xf32>
    %1240 = arith.mulf %1234, %1239 : vector<8x8xf32>
    %1241 = vector.broadcast %1238 : f32 to vector<8x8xf32>
    %1242 = arith.mulf %1236, %1241 : vector<8x8xf32>
    %1243 = arith.addf %1240, %1242 : vector<8x8xf32>
    %cst_387 = arith.constant 0.000000e+00 : f32
    %1244 = vector.broadcast %cst_387 : f32 to vector<8x8xf32>
    %1245 = arith.maximumf %1243, %1244 : vector<8x8xf32>
    %cst_388 = arith.constant dense<0.000000e+00> : vector<8xf32>
    %1246 = vector.multi_reduction <add>, %1245, %cst_388 [1] : vector<8x8xf32> to vector<8xf32>
    %1247 = vector.shape_cast %1246 : vector<8xf32> to vector<8x1xf32>
    %1248 = vector.broadcast %1237 : f32 to vector<8x1xf32>
    %1249 = arith.mulf %1232, %1248 : vector<8x1xf32>
    %1250 = vector.broadcast %1238 : f32 to vector<8x1xf32>
    %1251 = arith.addf %1249, %1250 : vector<8x1xf32>
    %cst_389 = arith.constant 0.00999999977 : f32
    %1252 = vector.broadcast %cst_389 : f32 to vector<8x1xf32>
    %1253 = arith.mulf %1252, %1251 : vector<8x1xf32>
    %1254 = arith.addf %1247, %1253 : vector<8x1xf32>
    %c24_i32 = arith.constant 24 : i32
    %1255 = vector.broadcast %c24_i32 : i32 to vector<1x32xi32>
    %1256 = arith.cmpi eq, %7, %1255 : vector<1x32xi32>
    %cst_390 = arith.constant 0.000000e+00 : f32
    %1257 = vector.shape_cast %1256 : vector<1x32xi1> to vector<1x32xi1>
    %1258 = vector.broadcast %1257 : vector<1x32xi1> to vector<8x32xi1>
    %1259 = vector.shape_cast %1254 : vector<8x1xf32> to vector<8x1xf32>
    %1260 = vector.broadcast %1259 : vector<8x1xf32> to vector<8x32xf32>
    %1261 = vector.broadcast %cst_390 : f32 to vector<8x32xf32>
    %1262 = arith.select %1258, %1260, %1261 : vector<8x32xi1>, vector<8x32xf32>
    %1263 = arith.addf %1091, %1262 : vector<8x32xf32>
    %c2_391 = arith.constant 2 : index
    %c25_392 = arith.constant 25 : index
    %1264 = memref.load %arg8[%c2_391, %c25_392] : memref<4x32xf32, #tpu.memory_space<smem>>
    %c3_393 = arith.constant 3 : index
    %c25_394 = arith.constant 25 : index
    %1265 = memref.load %arg8[%c3_393, %c25_394] : memref<4x32xf32, #tpu.memory_space<smem>>
    %1266 = vector.broadcast %1264 : f32 to vector<8x8xf32>
    %1267 = arith.mulf %1234, %1266 : vector<8x8xf32>
    %1268 = vector.broadcast %1265 : f32 to vector<8x8xf32>
    %1269 = arith.mulf %1236, %1268 : vector<8x8xf32>
    %1270 = arith.addf %1267, %1269 : vector<8x8xf32>
    %cst_395 = arith.constant 0.000000e+00 : f32
    %1271 = vector.broadcast %cst_395 : f32 to vector<8x8xf32>
    %1272 = arith.maximumf %1270, %1271 : vector<8x8xf32>
    %cst_396 = arith.constant dense<0.000000e+00> : vector<8xf32>
    %1273 = vector.multi_reduction <add>, %1272, %cst_396 [1] : vector<8x8xf32> to vector<8xf32>
    %1274 = vector.shape_cast %1273 : vector<8xf32> to vector<8x1xf32>
    %1275 = vector.broadcast %1264 : f32 to vector<8x1xf32>
    %1276 = arith.mulf %1232, %1275 : vector<8x1xf32>
    %1277 = vector.broadcast %1265 : f32 to vector<8x1xf32>
    %1278 = arith.addf %1276, %1277 : vector<8x1xf32>
    %cst_397 = arith.constant 0.00999999977 : f32
    %1279 = vector.broadcast %cst_397 : f32 to vector<8x1xf32>
    %1280 = arith.mulf %1279, %1278 : vector<8x1xf32>
    %1281 = arith.addf %1274, %1280 : vector<8x1xf32>
    %c25_i32 = arith.constant 25 : i32
    %1282 = vector.broadcast %c25_i32 : i32 to vector<1x32xi32>
    %1283 = arith.cmpi eq, %7, %1282 : vector<1x32xi32>
    %cst_398 = arith.constant 0.000000e+00 : f32
    %1284 = vector.shape_cast %1283 : vector<1x32xi1> to vector<1x32xi1>
    %1285 = vector.broadcast %1284 : vector<1x32xi1> to vector<8x32xi1>
    %1286 = vector.shape_cast %1281 : vector<8x1xf32> to vector<8x1xf32>
    %1287 = vector.broadcast %1286 : vector<8x1xf32> to vector<8x32xf32>
    %1288 = vector.broadcast %cst_398 : f32 to vector<8x32xf32>
    %1289 = arith.select %1285, %1287, %1288 : vector<8x32xi1>, vector<8x32xf32>
    %1290 = arith.addf %1263, %1289 : vector<8x32xf32>
    %c2_399 = arith.constant 2 : index
    %c26_400 = arith.constant 26 : index
    %1291 = memref.load %arg8[%c2_399, %c26_400] : memref<4x32xf32, #tpu.memory_space<smem>>
    %c3_401 = arith.constant 3 : index
    %c26_402 = arith.constant 26 : index
    %1292 = memref.load %arg8[%c3_401, %c26_402] : memref<4x32xf32, #tpu.memory_space<smem>>
    %1293 = vector.broadcast %1291 : f32 to vector<8x8xf32>
    %1294 = arith.mulf %1234, %1293 : vector<8x8xf32>
    %1295 = vector.broadcast %1292 : f32 to vector<8x8xf32>
    %1296 = arith.mulf %1236, %1295 : vector<8x8xf32>
    %1297 = arith.addf %1294, %1296 : vector<8x8xf32>
    %cst_403 = arith.constant 0.000000e+00 : f32
    %1298 = vector.broadcast %cst_403 : f32 to vector<8x8xf32>
    %1299 = arith.maximumf %1297, %1298 : vector<8x8xf32>
    %cst_404 = arith.constant dense<0.000000e+00> : vector<8xf32>
    %1300 = vector.multi_reduction <add>, %1299, %cst_404 [1] : vector<8x8xf32> to vector<8xf32>
    %1301 = vector.shape_cast %1300 : vector<8xf32> to vector<8x1xf32>
    %1302 = vector.broadcast %1291 : f32 to vector<8x1xf32>
    %1303 = arith.mulf %1232, %1302 : vector<8x1xf32>
    %1304 = vector.broadcast %1292 : f32 to vector<8x1xf32>
    %1305 = arith.addf %1303, %1304 : vector<8x1xf32>
    %cst_405 = arith.constant 0.00999999977 : f32
    %1306 = vector.broadcast %cst_405 : f32 to vector<8x1xf32>
    %1307 = arith.mulf %1306, %1305 : vector<8x1xf32>
    %1308 = arith.addf %1301, %1307 : vector<8x1xf32>
    %c26_i32 = arith.constant 26 : i32
    %1309 = vector.broadcast %c26_i32 : i32 to vector<1x32xi32>
    %1310 = arith.cmpi eq, %7, %1309 : vector<1x32xi32>
    %cst_406 = arith.constant 0.000000e+00 : f32
    %1311 = vector.shape_cast %1310 : vector<1x32xi1> to vector<1x32xi1>
    %1312 = vector.broadcast %1311 : vector<1x32xi1> to vector<8x32xi1>
    %1313 = vector.shape_cast %1308 : vector<8x1xf32> to vector<8x1xf32>
    %1314 = vector.broadcast %1313 : vector<8x1xf32> to vector<8x32xf32>
    %1315 = vector.broadcast %cst_406 : f32 to vector<8x32xf32>
    %1316 = arith.select %1312, %1314, %1315 : vector<8x32xi1>, vector<8x32xf32>
    %1317 = arith.addf %1290, %1316 : vector<8x32xf32>
    %c2_407 = arith.constant 2 : index
    %c27_408 = arith.constant 27 : index
    %1318 = memref.load %arg8[%c2_407, %c27_408] : memref<4x32xf32, #tpu.memory_space<smem>>
    %c3_409 = arith.constant 3 : index
    %c27_410 = arith.constant 27 : index
    %1319 = memref.load %arg8[%c3_409, %c27_410] : memref<4x32xf32, #tpu.memory_space<smem>>
    %1320 = vector.broadcast %1318 : f32 to vector<8x8xf32>
    %1321 = arith.mulf %1234, %1320 : vector<8x8xf32>
    %1322 = vector.broadcast %1319 : f32 to vector<8x8xf32>
    %1323 = arith.mulf %1236, %1322 : vector<8x8xf32>
    %1324 = arith.addf %1321, %1323 : vector<8x8xf32>
    %cst_411 = arith.constant 0.000000e+00 : f32
    %1325 = vector.broadcast %cst_411 : f32 to vector<8x8xf32>
    %1326 = arith.maximumf %1324, %1325 : vector<8x8xf32>
    %cst_412 = arith.constant dense<0.000000e+00> : vector<8xf32>
    %1327 = vector.multi_reduction <add>, %1326, %cst_412 [1] : vector<8x8xf32> to vector<8xf32>
    %1328 = vector.shape_cast %1327 : vector<8xf32> to vector<8x1xf32>
    %1329 = vector.broadcast %1318 : f32 to vector<8x1xf32>
    %1330 = arith.mulf %1232, %1329 : vector<8x1xf32>
    %1331 = vector.broadcast %1319 : f32 to vector<8x1xf32>
    %1332 = arith.addf %1330, %1331 : vector<8x1xf32>
    %cst_413 = arith.constant 0.00999999977 : f32
    %1333 = vector.broadcast %cst_413 : f32 to vector<8x1xf32>
    %1334 = arith.mulf %1333, %1332 : vector<8x1xf32>
    %1335 = arith.addf %1328, %1334 : vector<8x1xf32>
    %c27_i32 = arith.constant 27 : i32
    %1336 = vector.broadcast %c27_i32 : i32 to vector<1x32xi32>
    %1337 = arith.cmpi eq, %7, %1336 : vector<1x32xi32>
    %cst_414 = arith.constant 0.000000e+00 : f32
    %1338 = vector.shape_cast %1337 : vector<1x32xi1> to vector<1x32xi1>
    %1339 = vector.broadcast %1338 : vector<1x32xi1> to vector<8x32xi1>
    %1340 = vector.shape_cast %1335 : vector<8x1xf32> to vector<8x1xf32>
    %1341 = vector.broadcast %1340 : vector<8x1xf32> to vector<8x32xf32>
    %1342 = vector.broadcast %cst_414 : f32 to vector<8x32xf32>
    %1343 = arith.select %1339, %1341, %1342 : vector<8x32xi1>, vector<8x32xf32>
    %1344 = arith.addf %1317, %1343 : vector<8x32xf32>
    %c2_415 = arith.constant 2 : index
    %c28_416 = arith.constant 28 : index
    %1345 = memref.load %arg8[%c2_415, %c28_416] : memref<4x32xf32, #tpu.memory_space<smem>>
    %c3_417 = arith.constant 3 : index
    %c28_418 = arith.constant 28 : index
    %1346 = memref.load %arg8[%c3_417, %c28_418] : memref<4x32xf32, #tpu.memory_space<smem>>
    %1347 = vector.broadcast %1345 : f32 to vector<8x8xf32>
    %1348 = arith.mulf %1234, %1347 : vector<8x8xf32>
    %1349 = vector.broadcast %1346 : f32 to vector<8x8xf32>
    %1350 = arith.mulf %1236, %1349 : vector<8x8xf32>
    %1351 = arith.addf %1348, %1350 : vector<8x8xf32>
    %cst_419 = arith.constant 0.000000e+00 : f32
    %1352 = vector.broadcast %cst_419 : f32 to vector<8x8xf32>
    %1353 = arith.maximumf %1351, %1352 : vector<8x8xf32>
    %cst_420 = arith.constant dense<0.000000e+00> : vector<8xf32>
    %1354 = vector.multi_reduction <add>, %1353, %cst_420 [1] : vector<8x8xf32> to vector<8xf32>
    %1355 = vector.shape_cast %1354 : vector<8xf32> to vector<8x1xf32>
    %1356 = vector.broadcast %1345 : f32 to vector<8x1xf32>
    %1357 = arith.mulf %1232, %1356 : vector<8x1xf32>
    %1358 = vector.broadcast %1346 : f32 to vector<8x1xf32>
    %1359 = arith.addf %1357, %1358 : vector<8x1xf32>
    %cst_421 = arith.constant 0.00999999977 : f32
    %1360 = vector.broadcast %cst_421 : f32 to vector<8x1xf32>
    %1361 = arith.mulf %1360, %1359 : vector<8x1xf32>
    %1362 = arith.addf %1355, %1361 : vector<8x1xf32>
    %c28_i32 = arith.constant 28 : i32
    %1363 = vector.broadcast %c28_i32 : i32 to vector<1x32xi32>
    %1364 = arith.cmpi eq, %7, %1363 : vector<1x32xi32>
    %cst_422 = arith.constant 0.000000e+00 : f32
    %1365 = vector.shape_cast %1364 : vector<1x32xi1> to vector<1x32xi1>
    %1366 = vector.broadcast %1365 : vector<1x32xi1> to vector<8x32xi1>
    %1367 = vector.shape_cast %1362 : vector<8x1xf32> to vector<8x1xf32>
    %1368 = vector.broadcast %1367 : vector<8x1xf32> to vector<8x32xf32>
    %1369 = vector.broadcast %cst_422 : f32 to vector<8x32xf32>
    %1370 = arith.select %1366, %1368, %1369 : vector<8x32xi1>, vector<8x32xf32>
    %1371 = arith.addf %1344, %1370 : vector<8x32xf32>
    %c2_423 = arith.constant 2 : index
    %c29_424 = arith.constant 29 : index
    %1372 = memref.load %arg8[%c2_423, %c29_424] : memref<4x32xf32, #tpu.memory_space<smem>>
    %c3_425 = arith.constant 3 : index
    %c29_426 = arith.constant 29 : index
    %1373 = memref.load %arg8[%c3_425, %c29_426] : memref<4x32xf32, #tpu.memory_space<smem>>
    %1374 = vector.broadcast %1372 : f32 to vector<8x8xf32>
    %1375 = arith.mulf %1234, %1374 : vector<8x8xf32>
    %1376 = vector.broadcast %1373 : f32 to vector<8x8xf32>
    %1377 = arith.mulf %1236, %1376 : vector<8x8xf32>
    %1378 = arith.addf %1375, %1377 : vector<8x8xf32>
    %cst_427 = arith.constant 0.000000e+00 : f32
    %1379 = vector.broadcast %cst_427 : f32 to vector<8x8xf32>
    %1380 = arith.maximumf %1378, %1379 : vector<8x8xf32>
    %cst_428 = arith.constant dense<0.000000e+00> : vector<8xf32>
    %1381 = vector.multi_reduction <add>, %1380, %cst_428 [1] : vector<8x8xf32> to vector<8xf32>
    %1382 = vector.shape_cast %1381 : vector<8xf32> to vector<8x1xf32>
    %1383 = vector.broadcast %1372 : f32 to vector<8x1xf32>
    %1384 = arith.mulf %1232, %1383 : vector<8x1xf32>
    %1385 = vector.broadcast %1373 : f32 to vector<8x1xf32>
    %1386 = arith.addf %1384, %1385 : vector<8x1xf32>
    %cst_429 = arith.constant 0.00999999977 : f32
    %1387 = vector.broadcast %cst_429 : f32 to vector<8x1xf32>
    %1388 = arith.mulf %1387, %1386 : vector<8x1xf32>
    %1389 = arith.addf %1382, %1388 : vector<8x1xf32>
    %c29_i32 = arith.constant 29 : i32
    %1390 = vector.broadcast %c29_i32 : i32 to vector<1x32xi32>
    %1391 = arith.cmpi eq, %7, %1390 : vector<1x32xi32>
    %cst_430 = arith.constant 0.000000e+00 : f32
    %1392 = vector.shape_cast %1391 : vector<1x32xi1> to vector<1x32xi1>
    %1393 = vector.broadcast %1392 : vector<1x32xi1> to vector<8x32xi1>
    %1394 = vector.shape_cast %1389 : vector<8x1xf32> to vector<8x1xf32>
    %1395 = vector.broadcast %1394 : vector<8x1xf32> to vector<8x32xf32>
    %1396 = vector.broadcast %cst_430 : f32 to vector<8x32xf32>
    %1397 = arith.select %1393, %1395, %1396 : vector<8x32xi1>, vector<8x32xf32>
    %1398 = arith.addf %1371, %1397 : vector<8x32xf32>
    %c2_431 = arith.constant 2 : index
    %c30_432 = arith.constant 30 : index
    %1399 = memref.load %arg8[%c2_431, %c30_432] : memref<4x32xf32, #tpu.memory_space<smem>>
    %c3_433 = arith.constant 3 : index
    %c30_434 = arith.constant 30 : index
    %1400 = memref.load %arg8[%c3_433, %c30_434] : memref<4x32xf32, #tpu.memory_space<smem>>
    %1401 = vector.broadcast %1399 : f32 to vector<8x8xf32>
    %1402 = arith.mulf %1234, %1401 : vector<8x8xf32>
    %1403 = vector.broadcast %1400 : f32 to vector<8x8xf32>
    %1404 = arith.mulf %1236, %1403 : vector<8x8xf32>
    %1405 = arith.addf %1402, %1404 : vector<8x8xf32>
    %cst_435 = arith.constant 0.000000e+00 : f32
    %1406 = vector.broadcast %cst_435 : f32 to vector<8x8xf32>
    %1407 = arith.maximumf %1405, %1406 : vector<8x8xf32>
    %cst_436 = arith.constant dense<0.000000e+00> : vector<8xf32>
    %1408 = vector.multi_reduction <add>, %1407, %cst_436 [1] : vector<8x8xf32> to vector<8xf32>
    %1409 = vector.shape_cast %1408 : vector<8xf32> to vector<8x1xf32>
    %1410 = vector.broadcast %1399 : f32 to vector<8x1xf32>
    %1411 = arith.mulf %1232, %1410 : vector<8x1xf32>
    %1412 = vector.broadcast %1400 : f32 to vector<8x1xf32>
    %1413 = arith.addf %1411, %1412 : vector<8x1xf32>
    %cst_437 = arith.constant 0.00999999977 : f32
    %1414 = vector.broadcast %cst_437 : f32 to vector<8x1xf32>
    %1415 = arith.mulf %1414, %1413 : vector<8x1xf32>
    %1416 = arith.addf %1409, %1415 : vector<8x1xf32>
    %c30_i32 = arith.constant 30 : i32
    %1417 = vector.broadcast %c30_i32 : i32 to vector<1x32xi32>
    %1418 = arith.cmpi eq, %7, %1417 : vector<1x32xi32>
    %cst_438 = arith.constant 0.000000e+00 : f32
    %1419 = vector.shape_cast %1418 : vector<1x32xi1> to vector<1x32xi1>
    %1420 = vector.broadcast %1419 : vector<1x32xi1> to vector<8x32xi1>
    %1421 = vector.shape_cast %1416 : vector<8x1xf32> to vector<8x1xf32>
    %1422 = vector.broadcast %1421 : vector<8x1xf32> to vector<8x32xf32>
    %1423 = vector.broadcast %cst_438 : f32 to vector<8x32xf32>
    %1424 = arith.select %1420, %1422, %1423 : vector<8x32xi1>, vector<8x32xf32>
    %1425 = arith.addf %1398, %1424 : vector<8x32xf32>
    %c2_439 = arith.constant 2 : index
    %c31_440 = arith.constant 31 : index
    %1426 = memref.load %arg8[%c2_439, %c31_440] : memref<4x32xf32, #tpu.memory_space<smem>>
    %c3_441 = arith.constant 3 : index
    %c31_442 = arith.constant 31 : index
    %1427 = memref.load %arg8[%c3_441, %c31_442] : memref<4x32xf32, #tpu.memory_space<smem>>
    %1428 = vector.broadcast %1426 : f32 to vector<8x8xf32>
    %1429 = arith.mulf %1234, %1428 : vector<8x8xf32>
    %1430 = vector.broadcast %1427 : f32 to vector<8x8xf32>
    %1431 = arith.mulf %1236, %1430 : vector<8x8xf32>
    %1432 = arith.addf %1429, %1431 : vector<8x8xf32>
    %cst_443 = arith.constant 0.000000e+00 : f32
    %1433 = vector.broadcast %cst_443 : f32 to vector<8x8xf32>
    %1434 = arith.maximumf %1432, %1433 : vector<8x8xf32>
    %cst_444 = arith.constant dense<0.000000e+00> : vector<8xf32>
    %1435 = vector.multi_reduction <add>, %1434, %cst_444 [1] : vector<8x8xf32> to vector<8xf32>
    %1436 = vector.shape_cast %1435 : vector<8xf32> to vector<8x1xf32>
    %1437 = vector.broadcast %1426 : f32 to vector<8x1xf32>
    %1438 = arith.mulf %1232, %1437 : vector<8x1xf32>
    %1439 = vector.broadcast %1427 : f32 to vector<8x1xf32>
    %1440 = arith.addf %1438, %1439 : vector<8x1xf32>
    %cst_445 = arith.constant 0.00999999977 : f32
    %1441 = vector.broadcast %cst_445 : f32 to vector<8x1xf32>
    %1442 = arith.mulf %1441, %1440 : vector<8x1xf32>
    %1443 = arith.addf %1436, %1442 : vector<8x1xf32>
    %c31_i32 = arith.constant 31 : i32
    %1444 = vector.broadcast %c31_i32 : i32 to vector<1x32xi32>
    %1445 = arith.cmpi eq, %7, %1444 : vector<1x32xi32>
    %cst_446 = arith.constant 0.000000e+00 : f32
    %1446 = vector.shape_cast %1445 : vector<1x32xi1> to vector<1x32xi1>
    %1447 = vector.broadcast %1446 : vector<1x32xi1> to vector<8x32xi1>
    %1448 = vector.shape_cast %1443 : vector<8x1xf32> to vector<8x1xf32>
    %1449 = vector.broadcast %1448 : vector<8x1xf32> to vector<8x32xf32>
    %1450 = vector.broadcast %cst_446 : f32 to vector<8x32xf32>
    %1451 = arith.select %1447, %1449, %1450 : vector<8x32xi1>, vector<8x32xf32>
    %1452 = arith.addf %1425, %1451 : vector<8x32xf32>
    %1453 = vector.extract_strided_slice %6 {offsets = [0, 64], sizes = [8, 32], strides = [1, 1]} : vector<8x96xf32> to vector<8x32xf32>
    %1454 = arith.addf %1453, %1452 : vector<8x32xf32>
    %c0_447 = arith.constant 0 : index
    %c0_448 = arith.constant 0 : index
    %1455 = vector.load %arg5[%c0_447, %c0_448] : memref<32x32xf32, #tpu.memory_space<vmem>>, vector<32x32xf32>
    %cst_449 = arith.constant dense<0.000000e+00> : vector<8x32xf32>
    %1456 = tpu.matmul %1454, %1455, %cst_449 {dimension_numbers = #tpu.dot_dimension_numbers<[1], [0], [0], [1], [0, 0, 1, 1], [], []>, precision = #tpu.contract_precision<fp32>} : vector<8x32xf32>, vector<32x32xf32>, vector<8x32xf32> -> vector<8x32xf32>
    %c0_450 = arith.constant 0 : index
    %c0_451 = arith.constant 0 : index
    %1457 = vector.load %arg6[%c0_450, %c0_451] : memref<1x32xf32, #tpu.memory_space<vmem>>, vector<1x32xf32>
    %1458 = vector.broadcast %1457 : vector<1x32xf32> to vector<8x32xf32>
    %1459 = arith.addf %1456, %1458 : vector<8x32xf32>
    %c0_452 = arith.constant 0 : index
    %c0_453 = arith.constant 0 : index
    %c0_454 = arith.constant 0 : index
    %1460 = vector.load %arg9[%c0_452, %c0_453, %c0_454] : memref<1x8x32xf32, #tpu.memory_space<vmem>>, vector<1x8x32xf32>
    %1461 = vector.shape_cast %1460 : vector<1x8x32xf32> to vector<8x32xf32>
    %1462 = vector.shape_cast %1459 : vector<8x32xf32> to vector<1x8x32xf32>
    tpu.vector_store %arg9[%c0_452, %c0_453, %c0_454], %1462 {strides = array<i32>} : memref<1x8x32xf32, #tpu.memory_space<vmem>>, vector<1x8x32xf32>,
    return
  }
  func.func @transform_0(%arg0: i32, %arg1: i32) -> (i32, i32, i32) {
    %c0_i32 = arith.constant 0 : i32
    %c0_i32_0 = arith.constant 0 : i32
    return %arg0, %arg1, %c0_i32 : i32, i32, i32
  }
  func.func @transform_1(%arg0: i32, %arg1: i32) -> (i32, i32, i32) {
    %c0_i32 = arith.constant 0 : i32
    %c0_i32_0 = arith.constant 0 : i32
    return %arg0, %arg1, %c0_i32 : i32, i32, i32
  }
  func.func @transform_2(%arg0: i32, %arg1: i32) -> (i32, i32) {
    %c0_i32 = arith.constant 0 : i32
    %c0_i32_0 = arith.constant 0 : i32
    %c0_i32_1 = arith.constant 0 : i32
    return %c0_i32, %c0_i32_0 : i32, i32
  }
  func.func @transform_3(%arg0: i32, %arg1: i32) -> (i32, i32) {
    %c0_i32 = arith.constant 0 : i32
    %c0_i32_0 = arith.constant 0 : i32
    %c0_i32_1 = arith.constant 0 : i32
    return %c0_i32, %c0_i32_0 : i32, i32
  }
  func.func @transform_4(%arg0: i32, %arg1: i32) -> (i32, i32) {
    %c0_i32 = arith.constant 0 : i32
    %c0_i32_0 = arith.constant 0 : i32
    %c0_i32_1 = arith.constant 0 : i32
    return %c0_i32, %c0_i32_0 : i32, i32
  }
  func.func @transform_5(%arg0: i32, %arg1: i32) -> (i32, i32) {
    %c0_i32 = arith.constant 0 : i32
    %c0_i32_0 = arith.constant 0 : i32
    %c0_i32_1 = arith.constant 0 : i32
    return %c0_i32, %c0_i32_0 : i32, i32
  }
  func.func @transform_6(%arg0: i32, %arg1: i32) -> (i32, i32) {
    %c0_i32 = arith.constant 0 : i32
    %c0_i32_0 = arith.constant 0 : i32
    %c0_i32_1 = arith.constant 0 : i32
    return %c0_i32, %c0_i32_0 : i32, i32
  }
  func.func @transform_7(%arg0: i32, %arg1: i32) -> (i32, i32, i32) {
    %c0_i32 = arith.constant 0 : i32
    %c0_i32_0 = arith.constant 0 : i32
    return %arg0, %arg1, %c0_i32 : i32, i32, i32
  }
}

</mosaic_0001>

<bundles_post_ra>
// kernel: tpu_custom_call.1
= control target key start
LH: loop header
LB: loop body
LE: loop exit
PB: predicated region body
PF: predicated region fallthrough
CT: control target
= control target key end

     0   :  { %s4130_s0 = inlined_call_operand.hbm [shape: f32[2,8,32], index: 0, kind: input, shape index: {}]   ;;  %s4131_s1 = inlined_call_operand.hbm [shape: f32[2,8,8], index: 1, kind: input, shape index: {}]   ;;  %s4132_s2 = inlined_call_operand.hbm [shape: f32[32,96], index: 2, kind: input, shape index: {}]   ;;  %s4133_s3 = inlined_call_operand.hbm [shape: f32[32,32], index: 3, kind: input, shape index: {}]   ;;  %s4134_s4 = inlined_call_operand.hbm [shape: f32[1,32], index: 4, kind: input, shape index: {}]   ;;  %s4135_s5 = inlined_call_operand.vmem [shape: f32[4,32], index: 5, kind: input, shape index: {}]   ;;  %s4136_s6 = inlined_call_operand.hbm [shape: f32[4,32], index: 6, kind: input, shape index: {}]   ;;  %s4137_s7 = inlined_call_operand.hbm [shape: f32[2,8,32], index: 7, kind: output, shape index: {}]  }
   0x1   :  { %4207 = sst [smem:[#allocation65_spill]] %s4130_s0 }
   0x2   :  { %4208 = sst [smem:[#allocation66_spill]] %s4131_s1 }
   0x3   :  { %4209 = sst [smem:[#allocation67_spill]] %s4132_s2 }
   0x4   :  { %4210 = sst [smem:[#allocation68_spill]] %s4133_s3 }
   0x5   :  { %4211 = sst [smem:[#allocation69_spill]] %s4134_s4 }
   0x6   :  { %4212 = sst [smem:[#allocation70_spill]] %s4135_s5 }
   0x7   :  { %4213 = sst [smem:[#allocation71_spill]] %s4136_s6 }
   0x8   :  { %4214 = sst [smem:[#allocation72_spill]] %s4137_s7 }
   0x9   :  { %12 = vsyncpa [#allocation3], 0 }
   0xa   :  { %14 = vsyncpa [#allocation3 + $0x1], 0 }
   0xb   :  { %15 = vsyncpa [#allocation7], 0 }
   0xc   :  { %17 = vsyncpa [#allocation7 + $0x1], 0 }
   0xd   :  { %18 = vsyncpa [#allocation10], 0 }
   0xe   :  { %19 = vsyncpa [#allocation5], 0 }
   0xf   :  { %20 = vsyncpa [#allocation4], 0 }
  0x10   :  { %22 = vsyncpa [#allocation4 + $0x1], 0  ;;  %s2911_s24 = smov 0   ;;  %s2913_s25 = smov 0  }
  0x11   :  { %s2915_s26 = smov 0   ;;  %s2917_s27 = smov 0  }
  0x12   :  { %s2919_s28 = smov 0   ;;  %s2921_s29 = smov 0  }
  0x13 LB: > { %4215 = sst [smem:[#allocation20_spill]] %s2806_s24  ;;  %s2942_s30 = sadd.s32 4294967295, %s2826_s29   ;;  %s2826_s29 = sphi %s2921_s29, %s28_s29   ;;  %s2822_s28 = sphi %s2919_s28, %s4341_s28   ;;  %s2818_s27 = sphi %s2917_s27, %s4340_s27   ;;  %s2814_s26 = sphi %s2915_s26, %s4339_s26   ;;  %s2810_s25 = sphi %s2913_s25, %s4338_s25   ;;  %s2806_s24 = sphi %s2911_s24, %s4337_s24  }
  0x14   : > { %4216 = sst [smem:[#allocation21_spill]] %s2810_s25  ;;  %p2216_p0 = scmp.ge.s32.totalorder %s2826_s29, 1 }
  0x15   : > { %4217 = sst [smem:[#allocation22_spill]] %s2814_s26  ;;  %p63_p1 = scmp.eq.s32.totalorder %s2942_s30, 0 }
  0x16   : > { %4218 = sst [smem:[#allocation23_spill]] %s2818_s27  ;;  %p234_p2 = scmp.lt.s32.totalorder %s2826_s29, 3 }
  0x17   : > { %4219 = sst [smem:[#allocation24_spill]] %s2822_s28  ;;  %s2828_s12 = smov [#allocation8]  }
  0x18   : > { %4220 = sst [smem:[#allocation25_spill]] %s2826_s29  ;;  %p2950_p3 = pnand %p2216_p0, %p234_p2 }
  0x19   : > { %s4221_s2 = sld [smem:[#allocation67_spill]]  ;;  %s247_s13 = sshll.u32 %s2828_s12, 4  ;;  %s248_s13 = int_to_ptr.vmem [resolvable:$true] %s247_s13 }
  0x1a   : > { %p2387_p4 = pneg %p2950_p3  ;;  %p2221_p6 = scmp.ge.s32.totalorder %s2826_s29, 2 }
  0x1b   : > { %s4224_s3 = sld [smem:[#allocation68_spill]]  ;;  %s2829_s18 = smov 128  }
  0x1c   : > { %p2958_p5 = pnand %p2387_p4, %p63_p1  ;;  %s2830_s19 = smov 8  }
  0x1d   : > { %s2831_s20 = smov [#allocation9]   ;;  %s4225_s4 = sld [smem:[#allocation69_spill]] }
  0x1e   : > { %s261_s21 = sshll.u32 %s2831_s20, 4  ;;  %s4226_s6 = sld [smem:[#allocation71_spill]]  ;;  %s262_s21 = int_to_ptr.vmem [resolvable:$true] %s261_s21 }
  0x1f   : > { %s245_s10 = sshll.u32 %s4221_s2, 4  ;;  %s2833_s16 = smov [#allocation12]   ;;  %s246_s10 = int_to_ptr.hbm [resolvable:$true] %s245_s10 }
  0x20   : > { %2390 = dma.hbm_to_vmem [thread:$0]  (!%p2958_p5), %s246_s10, 512, %s248_s13, [#allocation7], %s2829_s18, %s2829_s18, %s2830_s19  }
  0x21   : > { %s259_s17 = sshll.u32 %s4224_s3, 4  ;;  %s2832_s10 = smov [#allocation11]   ;;  %s260_s17 = int_to_ptr.hbm [resolvable:$true] %s259_s17 }
  0x22   : > { %2393 = dma.hbm_to_vmem [thread:$0]  (!%p2958_p5), %s260_s17, 512, %s262_s21, [#allocation10], %s2829_s18, %s2829_s18, %s2830_s19  }
  0x23   : > { %s274_s8 = sshll.u32 %s4225_s4, 4  ;;  %s276_s13 = sshll.u32 %s2832_s10, 4  ;;  %s275_s8 = int_to_ptr.hbm [resolvable:$true] %s274_s8  ;;  %s277_s13 = int_to_ptr.vmem [resolvable:$true] %s276_s13 }
  0x24   : > { %s289_s15 = sshll.u32 %s4226_s6, 4  ;;  %s2215_s17 = sadd.s32 4294967294, %s2826_s29   ;;  %s290_s15 = int_to_ptr.hbm [resolvable:$true] %s289_s15 }
  0x25   : > { %2396 = dma.hbm_to_vmem [thread:$0]  (!%p2958_p5), %s275_s8, 16, %s277_s13, [#allocation10]  }
  0x26   : > { %2399 = dma.hbm_to_smem (!%p2958_p5), %s290_s15, 64, %s2833_s16, [#allocation5]  }
  0x27   : > { %s40_s18 = sadd.s32 1, %s2822_s28  ;;  %s49_s19 = sadd.s32 1, %s2814_s26 }
  0x28   : > { %p42_p7 = scmp.ge.s32.totalorder %s40_s18, 2  ;;  %p56_p8 = scmp.ne.s32.totalorder %s2814_s26, %s2810_s25 }
  0x29   : > { %p57_p9 = scmp.eq.s32.totalorder %s2826_s29, 0  ;;  %p62_p11 = scmp.ne.s32.totalorder %s2810_s25, %s2806_s24 }
  0x2a   : > { %s4343_s18 = smov (%p42_p7, %s40_s18), 0  ;;  %p221_p12 = scmp.eq.s32.totalorder %s2942_s30, 1 }
  0x2b   : > { %4227 = sst [smem:[#allocation26_spill]] %s4343_s18  ;;  %p2988_p10 = por %p57_p9, %p56_p8 }
  0x2c   : > { %s44_s14 = ssub.s32 %s2822_s28, %s4343_s18  ;;  %p2999_p0 = por %p63_p1, %p62_p11 }
  0x2d   : > { %p47_p13 = scmp.eq.s32.totalorder %s44_s14, 0  ;;  %p3003_p2 = por %p221_p12, %p56_p8 }
  0x2e   : > { %p227_p4 = scmp.eq.s32.totalorder %s2215_s17, 1  ;;  %p2415_p7 = scmp.lt.s32.totalorder %s2826_s29, 2 }
  0x2f   : > { %s4230_s22 = scalar_select %p3003_p2, 1, 0 }
  0x30   : > { %s3008_s23 = scalar_select %p47_p13, %s2814_s26, %s49_s19  }
  0x31   : > { %4231 = sst [smem:[#allocation27_spill]] %s4230_s22  ;;  %p3010_p5 = por %p227_p4, %p62_p11 }
  0x32   : > { %4232 = sst [smem:[#allocation28_spill]] %s3008_s23  ;;  %s300_s9 = sand.u32 1, %s2814_s26  }
  0x33   : > { %s4233_s8 = scalar_select %p3010_p5, 1, 0 }
  0x34   : > { %s2223_s12 = sshll.u32 %s2822_s28, 3  ;;  %s2222_s15 = sshll.u32 %s300_s9, 3 }
  0x35   : > { %4234 = sst [smem:[#allocation29_spill]] %s4233_s8  ;;  %s304_s2 = scalar_lea.vmem [#allocation2], %s2222_s15 }
  0x36   : > { %s4235_s0 = sld [smem:[#allocation65_spill]]  ;;  %s313_s3 = sshll.u32 %s304_s2, 4  ;;  %s314_s3 = int_to_ptr.vmem [resolvable:$true] %s313_s3 }
  0x37   : > { %p2401_p8 = pnand %p2415_p7, %p2988_p10  ;;  %s4236_s1 = sld [smem:[#allocation66_spill]] }
  0x38   : > { %s320_s6 = sand.u32 1, %s2826_s29   ;;  %s301_s18 = scalar_lea.sflag [#allocation3], %s300_s9 }
  0x39   : > { %s324_s23 = scalar_lea.vmem [#allocation6], %s2222_s15  ;;  %s321_s10 = scalar_lea.sflag [#allocation7], %s320_s6 }
  0x3a   : > { %s333_s26 = sshll.u32 %s324_s23, 4  ;;  %s334_s26 = int_to_ptr.vmem [resolvable:$true] %s333_s26 }
  0x3c   : > { %s309_s16 = scalar_lea.hbm %s4235_s0, %s2223_s12  ;;  %342 = sbr.rel (%p2950_p3) target bundleno = 1476 (0x5c4), region = 48 }
  0x3d   : > { %s311_s14 = sshll.u32 %s309_s16, 4  ;;  %s329_s4 = scalar_lea.hbm %s4236_s1, %s2223_s12  ;;  %s312_s14 = int_to_ptr.hbm [resolvable:$true] %s311_s14 }
  0x3e   : > { %2403 = dma.hbm_to_vmem [thread:$0]  (!%p2401_p8), %s312_s14, 128, %s314_s3, %s301_s18  }
  0x3f   : > { %s331_s28 = sshll.u32 %s329_s4, 4  ;;  %s332_s28 = int_to_ptr.hbm [resolvable:$true] %s331_s28 }
  0x40   : > { %2406 = dma.hbm_to_vmem [thread:$0]  (!%p2401_p8), %s332_s28, 128, %s334_s26, %s321_s10  }
  0x41   : > { %s3029_s2 = sand.u32 1, %s2810_s25  }
  0x42   : > { %4237 = sst [smem:[#allocation30_spill]] %s3029_s2  ;;  %s3032_s20 = sshll.u32 %s3029_s2, 3 }
  0x43   : > { %4238 = sst [smem:[#allocation31_spill]] %s3032_s20  ;;  %s345_s3 = scalar_lea.sflag [#allocation3], %s3029_s2 }
  0x44   : > { %s348_s4 = scalar_lea.vmem [#allocation2], %s3032_s20 }
  0x45   : > { %2781 = dma.done.wait (%p2999_p0), %s345_s3, 128  }
  0x46   : > { %2783 = vsyncadd (%p2999_p0), %s345_s3, 4294967168  ;;  %s354_s6 = sand.u32 1, %s2942_s30   ;;  %s4141_s28 = scalar_lea.vmem [#allocation6], %s3032_s20 }
  0x47   : > { %s355_s26 = scalar_lea.sflag [#allocation7], %s354_s6 }
  0x48   : > { %2785 = dma.done.wait (%p2999_p0), %s355_s26, 128  }
  0x49   : > { %2787 = vsyncadd (%p2999_p0), %s355_s26, 4294967168 }
  0x4a   : > { %2789 = dma.done.wait (%p63_p1), [#allocation7], 512  }
  0x4b   : > { %2791 = vsyncadd (%p63_p1), [#allocation7], 4294966784 }
  0x4c   : > { %2793 = dma.done.wait (%p63_p1), [#allocation10], 528  }
  0x4d   : > { %2795 = vsyncadd (%p63_p1), [#allocation10], 4294966768 }
  0x4e   : > { %2797 = dma.done.wait (%p63_p1), [#allocation5], 64  }
  0x4f   : > { %2799 = vsyncadd (%p63_p1), [#allocation5], 4294967232 }
  0x50   : > { %384 = sfence }
  0x51   : > { %v422_v0 = vld [vmem:[#allocation8 + $0x18] sm:$0xff]  ;;  %v421_v1 = vld [vmem:[#allocation8 + $0x10] sm:$0xff]  ;;  %v420_v2 = vld [vmem:[#allocation8 + $0x8] sm:$0xff]  ;;  %vm423_vm0 = vcmask 261120   ;;  %v2834_v31 = vmov 2   ;;  %v2835_v32 = vmov 0  }
  0x52   : > { %v439_v3 = vand.u32 4294901760, %v422_v0  ;;  %v441_v4 = vand.u32 4294901760, %v421_v1  ;;  %v443_v5 = vand.u32 4294901760, %v420_v2  ;;  %v419_v6 = vld [vmem:[#allocation8] sm:$0xff]  ;;  %2514 = vset.pattern.permute.xlu1 %v2834_v31  ;;  %2512 = vset.pattern.permute.xlu2 %v2835_v32  ;;  %v2836_v33 = vmov 9   ;;  %s4239_s5 = sld [smem:[#allocation70_spill]] }
  0x53   : > { %v416_v7 = vld [vmem:[%s348_s4] sm:$0xff]  ;;  %v445_v8 = vand.u32 4294901760, %v419_v6  ;;  %2521 = vset.pattern.permute.xlu0 %v2836_v33  ;;  %s2837_s18 = smov 96   ;;  %s2838_s21 = smov 104   ;;  %v2839_v50 = vmov 7   ;;  %v2840_v51 = vmov 1  }
  0x54   : > { %v425_v9 = vsel %vm423_vm0, %v416_v7, 0  ;;  %v469_v10 = vsub.f32 %v422_v0, %v439_v3  ;;  %440 = vmatpush.msra.mxu0 %v439_v3  ;;  %v475_v11 = vsub.f32 %v421_v1, %v441_v4  ;;  %540 = vmatpush.msra.mxu3 %v439_v3  ;;  %v481_v12 = vsub.f32 %v420_v2, %v443_v5  ;;  %s2842_s23 = smov 120   ;;  %s2845_s9 = smov 112  }
  0x55   : > { %v447_v13 = vand.u32 4294901760, %v425_v9  ;;  %v487_v14 = vsub.f32 %v419_v6, %v445_v8  ;;  %v2841_v52 = vmov 3   ;;  %v2843_v53 = vmov 11   ;;  %s640_s12 = sld [smem:[#allocation12]] }
  0x56   : > { %511 = vmatpush.msra.mxu2 %v469_v10  ;;  %442 = vmatpush.msra.mxu0 %v441_v4  ;;  %v470_v15 = vand.u32 4294901760, %v469_v10  ;;  %v476_v16 = vand.u32 4294901760, %v475_v11  ;;  %v482_v18 = vand.u32 4294901760, %v481_v12  ;;  %v2844_v55 = vmov 14   ;;  %s2235_s15 = sld [smem:[#allocation12 + $0x1]] }
  0x57   : > { %v448_v17 = vsub.f32 %v425_v9, %v447_v13  ;;  %542 = vmatpush.msra.mxu3 %v441_v4  ;;  %v488_v19 = vand.u32 4294901760, %v487_v14  ;;  %v2846_v57 = vmov 4   ;;  %v2847_v58 = vmov 19   ;;  %s2234_s13 = sld [smem:[#allocation12 + $0x80]] }
  0x58   : > { %514 = vmatpush.msra.mxu2 %v475_v11  ;;  %v471_v20 = vsub.f32 %v469_v10, %v470_v15  ;;  %444 = vmatpush.msra.mxu0 %v443_v5  ;;  %v477_v21 = vsub.f32 %v475_v11, %v476_v16  ;;  %v483_v22 = vsub.f32 %v481_v12, %v482_v18  ;;  %v418_v45 = vld [vmem:[%s4239_s5] sm:$0xf]  ;;  %v2848_v59 = vmov 5   ;;  %s2237_s16 = sld [smem:[#allocation12 + $0x2]] }
  0x59   : > { %v449_v23 = vand.u32 4294901760, %v448_v17  ;;  %544 = vmatpush.msra.mxu3 %v443_v5  ;;  %v489_v27 = vsub.f32 %v487_v14, %v488_v19  ;;  %v629_v48 = vperm.slane %v418_v45, 1  ;;  %v624_v54 = vperm.slane %v418_v45, 0  ;;  %s2239_s14 = sld [smem:[#allocation12 + $0x3]] }
  0x5a   : > { %v472_v24 = vand.u32 4294901760, %v471_v20  ;;  %517 = vmatpush.msra.mxu2 %v481_v12  ;;  %v478_v25 = vand.u32 4294901760, %v477_v21  ;;  %446 = vmatpush.msra.mxu0 %v445_v8  ;;  %v484_v28 = vand.u32 4294901760, %v483_v22  ;;  %v2849_v60 = vmov 22   ;;  %s2236_s17 = sld [smem:[#allocation12 + $0x81]] }
  0x5b   : > { %v450_v26 = vsub.f32 %v448_v17, %v449_v23  ;;  %546 = vmatpush.msra.mxu3 %v445_v8  ;;  %v490_v30 = vand.u32 4294901760, %v489_v27  ;;  %v2850_v61 = vmov 6   ;;  %v2851_v62 = vmov 8   ;;  %s2241_s19 = sld [smem:[#allocation12 + $0x4]] }
  0x5c   : > { %569 = vmatpush.msrb.mxu0 %v470_v15  ;;  %473 = vmatpush.msra.mxu1 %v472_v24  ;;  %v2852_v63 = vmov 16   ;;  %v2853_v0 = vmov 18   ;;  %v2854_v1 = vmov 10   ;;  %v2855_v2 = vmov 21   ;;  %s2238_s10 = sld [smem:[#allocation12 + $0x82]] }
  0x5d   : > { %520 = vmatpush.msra.mxu2 %v487_v14  ;;  %v451_v29 = vand.u32 4294901760, %v450_v26  ;;  %550 = vmatmul.f32.vlgmr.msra.gmra.mxu3 %v449_v23  ;;  %v2859_v6 = vmov 17   ;;  %v2860_v11 = vmov 20   ;;  %vm620_vm1 = vcmask 64512   ;;  %s3172_s3 = sld [smem:[#allocation12 + $0x83]] }
  0x5e   : > { %523 = vmatmul.f32.vlgmr.msra.gmra.mxu2 %v448_v17  ;;  %479 = vmatpush.msra.mxu1 %v478_v25  ;;  %v2861_v22 = vmov 25   ;;  %v2862_v25 = vmov 24   ;;  %v2866_v45 = vmov 29   ;;  %s3176_s4 = sld [smem:[#allocation12 + $0x5]] }
  0x5f   : > { %452 = vmatmul.f32.vlgmr.msra.gmra.mxu0 %v451_v29  ;;  %s3179_s6 = sld [smem:[#allocation12 + $0x84]] }
  0x60   : > { %573 = vmatpush.msrb.mxu0 %v476_v16  ;;  %485 = vmatpush.msra.mxu1 %v484_v28  ;;  %s3181_s26 = sld [smem:[#allocation12 + $0x6]] }
  0x61   : > { %s3184_s30 = sld [smem:[#allocation12 + $0x7]] }
  0x62   : > { %577 = vmatpush.msrb.mxu0 %v482_v18  ;;  %491 = vmatpush.msra.mxu1 %v490_v30  ;;  %s3186_s11 = sld [smem:[#allocation12 + $0x85]] }
  0x63   : > { %493 = vmatmul.f32.vlgmr.msra.gmra.mxu1 %v447_v13  ;;  %s3268_s0 = sld [smem:[#allocation12 + $0x8d]] }
  0x64   : > { %581 = vmatpush.msrb.mxu0 %v488_v19  ;;  %600 = vmatpush.msrb.mxu1 %v439_v3  ;;  %v2856_v3 = vmov 12   ;;  %s3538_s1 = sld [smem:[#allocation12 + $0x10d]] }
  0x65   : > { %s3540_s5 = sld [smem:[#allocation12 + $0x10c]] }
  0x66   : > { %602 = vmatpush.msrb.mxu1 %v441_v4  ;;  %v2857_v4 = vmov 13   ;;  %s3542_s25 = sld [smem:[#allocation12 + $0x18d]] }
  0x67   : > { %583 = vmatmul.f32.vlgmr.msrb.gmra.mxu0 %v447_v13  ;;  %s3544_s29 = sld [smem:[#allocation12 + $0x18c]] }
  0x68   : > { %604 = vmatpush.msrb.mxu1 %v443_v5  ;;  %v2858_v5 = vmov 15   ;;  %s3550_s8 = sld [smem:[#allocation12 + $0x10f]] }
  0x69   : > { %s3556_s24 = sld [smem:[#allocation12 + $0x18f]] }
  0x6a   : > { %606 = vmatpush.msrb.mxu1 %v445_v8  ;;  %4241 = sst [smem:[#allocation33_spill]] %s3538_s1 }
  0x6b   : > { %608 = vmatmul.f32.vlgmr.msrb.gmra.mxu1 %v447_v13  ;;  %4242 = sst [smem:[#allocation34_spill]] %s3540_s5 }
  0x6c   : > { %4243 = sst [smem:[#allocation35_spill]] %s3542_s25 }
  0x6d   : > { %4244 = sst [smem:[#allocation36_spill]] %s3544_s29 }
  0x6e   : > { %4245 = sst [smem:[#allocation37_spill]] %s3550_s8 }
  0x6f   : > { %4246 = sst [smem:[#allocation38_spill]] %s3556_s24 }
  0x70   : > { %s3561_s22 = sld [smem:[#allocation12 + $0x10e]] }
  0x71   : > { %s3566_s7 = sld [smem:[#allocation12 + $0x18e]] }
  0x72   : > { %s3580_s2 = sld [smem:[#allocation12 + $0x10b]] }
  0x73   : > { %s3584_s27 = sld [smem:[#allocation12 + $0x18b]] }
  0x76   : > { %4247 = sst [smem:[#allocation39_spill]] %s3561_s22 }
  0x77   : > { %4248 = sst [smem:[#allocation40_spill]] %s3566_s7 }
  0x78   : > { %4249 = sst [smem:[#allocation41_spill]] %s3580_s2 }
  0x79   : > { %4250 = sst [smem:[#allocation42_spill]] %s3584_s27 }
  0xdc   : > { %v453_v34 = vpop.f32.mrf.mxu0 }
  0xe0   : > { %v494_v35 = vpop.f32.mrf.mxu1  ;;  %v551_v38 = vpop.f32.mrf.mxu3 }
  0xe1   : > { %v524_v36 = vpop.f32.mrf.mxu2  ;;  %v495_v37 = vadd.f32 %v494_v35, %v453_v34  ;;  %v2863_v34 = vmov 28   ;;  %v2864_v35 = vmov 23  }
  0xe3   : > { %v525_v39 = vadd.f32 %v524_v36, %v495_v37  ;;  %v2865_v36 = vmov 26  }
  0xe4   : > { %v584_v40 = vpop.f32.mrf.mxu0 }
  0xe5   : > { %v552_v41 = vadd.f32 %v551_v38, %v525_v39 }
  0xe7   : > { %v585_v42 = vadd.f32 %v584_v40, %v552_v41 }
  0xe8   : > { %v609_v43 = vpop.f32.mrf.mxu1 }
  0xe9   : > { %v3059_v44 = vadd.f32 %v609_v43, %v585_v42 }
  0xeb   : > { %v3065_v46 = vmul.f32 0.35355338, %v3059_v44  ;;  %616 = vrot.lane.b32.xlu0 %v3059_v44, %s2837_s18  ;;  %s3190_s18 = sld [smem:[#allocation12 + $0x86]] }
  0xed   : > { %v3069_v47 = vmul.f32 0.99, %v3065_v46  ;;  %v3074_v49 = vmul.f32 %v629_v48, %v3065_v46  ;;  %v625_v56 = vmul.f32 %v624_v54, %v3065_v46 }
  0xef   : > { %675 = vperm.xlu1 %2514, %v3069_v47   ;;  %649 = vperm.xlu2 %2512, %v3069_v47   ;;  %v626_v13 = vsel %vm620_vm1, %v625_v56, 0.0  ;;  %v631_v15 = vsel %vm620_vm1, %v3074_v49, 0.0 }
  0xf3   : > { %1554 = vrot.lane.b32.xlu0 %v3074_v49, %s2838_s21 }
  0xf7   : > { %2519 = vset.pattern.permute.xlu1 %v2839_v50  ;;  %2513 = vset.pattern.permute.xlu2 %v2840_v51 }
  0xf8   : > { %740 = vperm.xlu1 %2519, %v3069_v47   ;;  %662 = vperm.xlu2 %2513, %v3069_v47  }
  0xfb   : > { %972 = vperm.xlu0 %2521, %v3069_v47  }
 0x100   : > { %2515 = vset.pattern.permute.xlu2 %v2841_v52  ;;  %940 = vrot.lane.b32.xlu1 %v3074_v49, %s2842_s23 }
 0x101   : > { %688 = vperm.xlu2 %2515, %v3069_v47   ;;  %2523 = vset.pattern.permute.xlu1 %v2843_v53  ;;  %v2867_v53 = vmov 27  }
 0x103   : > { %2526 = vset.pattern.permute.xlu0 %v2844_v55 }
 0x104   : > { %1037 = vperm.xlu0 %2526, %v3069_v47  }
 0x108   : > { %1241 = vrot.lane.b32.xlu1 %v625_v56, %s2845_s9 }
 0x109   : > { %2516 = vset.pattern.permute.xlu2 %v2846_v57 }
 0x10a   : > { %701 = vperm.xlu2 %2516, %v3069_v47  }
 0x10c   : > { %2531 = vset.pattern.permute.xlu0 %v2847_v58 }
 0x10d   : > { %1305 = vperm.xlu0 %2531, %v3069_v47  }
 0x110   : > { %1247 = vrot.lane.b32.xlu1 %v3074_v49, %s2845_s9 }
 0x112   : > { %2517 = vset.pattern.permute.xlu2 %v2848_v59 }
 0x113   : > { %714 = vperm.xlu2 %2517, %v3069_v47  }
 0x115   : > { %2534 = vset.pattern.permute.xlu0 %v2849_v60  ;;  %v3169_v60 = vld [vmem:[%s4141_s28] sm:$0xff]  ;;  %s3265_s28 = sld [smem:[#allocation12 + $0xd]] }
 0x116   : > { %1344 = vperm.xlu0 %2534, %v3069_v47  }
 0x118   : > { %1548 = vrot.lane.b32.xlu1 %v625_v56, %s2838_s21 }
 0x11b   : > { %2518 = vset.pattern.permute.xlu2 %v2850_v61  ;;  %v642_v61 = vstv %s640_s12  ;;  %s3231_s12 = sld [smem:[#allocation12 + $0xe]] }
 0x11c   : > { %727 = vperm.xlu2 %2518, %v3069_v47  }
 0x11e   : > { %2536 = vset.pattern.permute.xlu0 %v2862_v25 }
 0x120   : > { %998 = vperm.xlu1 %2523, %v3069_v47  }
 0x124   : > { %933 = vrot.lane.b32.xlu2 %v625_v56, %s2842_s23  ;;  %v2868_v56 = vmov 30  }
 0x125   : > { %2520 = vset.pattern.permute.xlu2 %v2851_v62 }
 0x128   : > { %2528 = vset.pattern.permute.xlu1 %v2852_v63 }
 0x129   : > { %1266 = vperm.xlu1 %2528, %v3069_v47  }
 0x12c   : > { %959 = vperm.xlu2 %2520, %v3069_v47  }
 0x131   : > { %2530 = vset.pattern.permute.xlu1 %v2853_v0  ;;  %v656_v0 = vstv %s2235_s15  ;;  %s3233_s15 = sld [smem:[#allocation12 + $0x8e]] }
 0x132   : > { %1292 = vperm.xlu1 %2530, %v3069_v47  }
 0x134   : > { %2522 = vset.pattern.permute.xlu2 %v2854_v1  ;;  %v643_v1 = vmul.f32 %v642_v61, %v3169_v60 }
 0x135   : > { %985 = vperm.xlu2 %2522, %v3069_v47  }
 0x13a   : > { %2533 = vset.pattern.permute.xlu1 %v2855_v2  ;;  %v644_v2 = vstv %s2234_s13  ;;  %s2303_s13 = sld [smem:[#allocation12 + $0x13]] }
 0x13b   : > { %1331 = vperm.xlu1 %2533, %v3069_v47  }
 0x13d   : > { %2524 = vset.pattern.permute.xlu2 %v2856_v3  ;;  %v669_v3 = vstv %s2237_s16  ;;  %s3235_s16 = sld [smem:[#allocation12 + $0x93]] }
 0x13e   : > { %1011 = vperm.xlu2 %2524, %v3069_v47  }
 0x143   : > { %2535 = vset.pattern.permute.xlu1 %v2864_v35 }
 0x146   : > { %2525 = vset.pattern.permute.xlu2 %v2857_v4  ;;  %v657_v4 = vmul.f32 %v656_v0, %v3169_v60 }
 0x147   : > { %1024 = vperm.xlu2 %2525, %v3069_v47  }
 0x149   : > { %v3106_v7 = vpop.permute.xlu2 %649 }
 0x14f   : > { %2527 = vset.pattern.permute.xlu2 %v2858_v5  ;;  %v682_v5 = vstv %s2239_s14  ;;  %s2265_s14 = sld [smem:[#allocation12 + $0x8]] }
 0x150   : > { %1050 = vperm.xlu2 %2527, %v3069_v47  }
 0x152   : > { %v3113_v12 = vpop.permute.xlu2 %662 }
 0x158   : > { %2529 = vset.pattern.permute.xlu2 %v2859_v6  ;;  %v658_v6 = vstv %s2236_s17  ;;  %s3240_s17 = sld [smem:[#allocation12 + $0x88]] }
 0x159   : > { %1279 = vperm.xlu2 %2529, %v3069_v47  }
 0x15b   : > { %v3121_v16 = vpop.permute.xlu2 %688 }
 0x15d   : > { %v617_v8 = vpop.permute.xlu0 %616 }
 0x15e   : > { %v619_v9 = vmul.f32 %v617_v8, %v3065_v46  ;;  %v645_v8 = vadd.f32 %v644_v2, %v643_v1 }
 0x160   : > { %926 = vrot.lane.b32.xlu0 %v619_v9, %s2842_s23  ;;  %v621_v27 = vsel %vm620_vm1, %v619_v9, 0.0  ;;  %v646_v25 = vmax.f32 %v645_v8, 0.0  ;;  %s2267_s23 = sld [smem:[#allocation12 + $0x9]] }
 0x161   : > { %v3110_v10 = vpop.permute.xlu1 %675  ;;  %2532 = vset.pattern.permute.xlu2 %v2860_v11  ;;  %v695_v11 = vstv %s2241_s19  ;;  %s3242_s19 = sld [smem:[#allocation12 + $0x16]] }
 0x162   : > { %1318 = vperm.xlu2 %2532, %v3069_v47  }
 0x164   : > { %v3123_v18 = vpop.permute.xlu2 %701 }
 0x165   : > { %627 = vadd.xlane.f32.xlu1 %v626_v13  ;;  %v1555_v31 = vpop.permute.xlu0 %1554  ;;  %v683_v13 = vmul.f32 %v682_v5, %v3169_v60  ;;  %v2869_v5 = vmov 31  }
 0x166   : > { %v1557_v39 = vsel %vm620_vm1, %v1555_v31, 0.0  ;;  %v721_v31 = vstv %s3181_s26  ;;  %s3252_s26 = sld [smem:[#allocation12 + $0x8b]] }
 0x168   : > { %1235 = vrot.lane.b32.xlu0 %v619_v9, %s2845_s9  ;;  %s3229_s9 = sld [smem:[#allocation12 + $0x89]] }
 0x16a   : > { %v3117_v14 = vpop.permute.xlu1 %740  ;;  %2537 = vset.pattern.permute.xlu2 %v2861_v22  ;;  %v696_v22 = vmul.f32 %v695_v11, %v3169_v60 }
 0x16d   : > { %632 = vadd.xlane.f32.xlu1 %v631_v15  ;;  %v3125_v20 = vpop.permute.xlu2 %714  ;;  %v3135_v32 = vpop.permute.xlu0 %972  ;;  %v671_v15 = vstv %s2238_s10  ;;  %s3244_s10 = sld [smem:[#allocation12 + $0x96]] }
 0x172   : > { %v941_v17 = vpop.permute.xlu1 %940 }
 0x173   : > { %v943_v33 = vsel %vm620_vm1, %v941_v17, 0.0  ;;  %v659_v17 = vadd.f32 %v658_v6, %v657_v4 }
 0x176   : > { %v3129_v24 = vpop.permute.xlu2 %727  ;;  %v3140_v37 = vpop.permute.xlu0 %1037 }
 0x17a   : > { %v1242_v19 = vpop.permute.xlu1 %1241 }
 0x17b   : > { %v1244_v23 = vsel %vm620_vm1, %v1242_v19, 0.0  ;;  %v684_v19 = vstv %s3172_s3  ;;  %s2269_s3 = sld [smem:[#allocation12 + $0xa]] }
 0x17e   : > { %v934_v29 = vpop.permute.xlu2 %933 }
 0x17f   : > { %v936_v30 = vsel %vm620_vm1, %v934_v29, 0.0  ;;  %v3147_v41 = vpop.permute.xlu0 %1305 }
 0x182   : > { %v1248_v21 = vpop.permute.xlu1 %1247 }
 0x183   : > { %v1250_v38 = vsel %vm620_vm1, %v1248_v21, 0.0 }
 0x186   : > { %1542 = vrot.lane.b32.xlu1 %v619_v9, %s2838_s21  ;;  %v3161_v54 = vpop.permute.xlu2 %959  ;;  %v670_v9 = vmul.f32 %v669_v3, %v3169_v60  ;;  %s3194_s21 = sld [smem:[#allocation12 + $0x87]] }
 0x188   : > { %v3151_v43 = vpop.permute.xlu0 %1344 }
 0x18a   : > { %v1549_v26 = vpop.permute.xlu1 %1548 }
 0x18b   : > { %1245 = vadd.xlane.f32.xlu2 %v1244_v23  ;;  %v1551_v28 = vsel %vm620_vm1, %v1549_v26, 0.0  ;;  %v708_v23 = vstv %s3176_s4  ;;  %v672_v26 = vadd.f32 %v671_v15, %v670_v9  ;;  %s3246_s4 = sld [smem:[#allocation12 + $0x8a]] }
 0x18c   : > { %v709_v35 = vmul.f32 %v708_v23, %v3169_v60  ;;  %v736_v1 = vstv %s3194_s21  ;;  %s3262_s21 = sld [smem:[#allocation12 + $0x90]] }
 0x18f   : > { %v3164_v57 = vpop.permute.xlu2 %985 }
 0x192   : > { %622 = vadd.xlane.f32.xlu0 %v621_v27  ;;  %v3145_v40 = vpop.permute.xlu1 %998  ;;  %v697_v27 = vstv %s3179_s6  ;;  %s3248_s6 = sld [smem:[#allocation12 + $0xb]] }
 0x193   : > { %1552 = vadd.xlane.f32.xlu2 %v1551_v28 }
 0x198   : > { %v3174_v63 = vpop.permute.xlu2 %1011 }
 0x19a   : > { %937 = vadd.xlane.f32.xlu0 %v936_v30  ;;  %v685_v30 = vadd.f32 %v684_v19, %v683_v13 }
 0x19b   : > { %v3149_v42 = vpop.permute.xlu1 %1266 }
 0x1a1   : > { %v3198_v28 = vpop.permute.xlu2 %1024 }
 0x1a4   : > { %v3153_v48 = vpop.permute.xlu1 %1292 }
 0x1aa   : > { %v3213_v9 = vpop.permute.xlu2 %1050 }
 0x1ab   : > { %1586 = vperm.xlu2 %2537, %v3069_v47  }
 0x1ad   : > { %v3157_v51 = vpop.permute.xlu1 %1331 }
 0x1ae   : > { %1573 = vperm.xlu0 %2536, %v3069_v47  }
 0x1b0   : > { %944 = vadd.xlane.f32.xlu1 %v943_v33 }
 0x1b3   : > { %2540 = vset.pattern.permute.xlu2 %v2863_v34  ;;  %v660_v34 = vmax.f32 %v659_v17, 0.0 }
 0x1b4   : > { %1625 = vperm.xlu2 %2540, %v3069_v47  }
 0x1b6   : > { %2538 = vset.pattern.permute.xlu0 %v2865_v36 }
 0x1b7   : > { %1599 = vperm.xlu0 %2538, %v3069_v47  }
 0x1b8   : > { %1251 = vadd.xlane.f32.xlu1 %v1250_v38 }
 0x1bc   : > { %2543 = vset.pattern.permute.xlu2 %v2869_v5 }
 0x1bf   : > { %2541 = vset.pattern.permute.xlu0 %v2866_v45  ;;  %v734_v45 = vstv %s3184_s30  ;;  %s3254_s30 = sld [smem:[#allocation12 + $0xc]] }
 0x1c0   : > { %1558 = vadd.xlane.f32.xlu1 %v1557_v39  ;;  %v698_v39 = vadd.f32 %v697_v27, %v696_v22 }
 0x1c2   : > { %v699_v0 = vmax.f32 %v698_v39, 0.0 }
 0x1c4   : > { %v704_v11 = vmul.f32 %v3123_v18, %v699_v0 }
 0x1d2   : > { %v927_v46 = vpop.permute.xlu0 %926 }
 0x1d3   : > { %v929_v49 = vsel %vm620_vm1, %v927_v46, 0.0  ;;  %v710_v46 = vstv %s3186_s11  ;;  %s3256_s11 = sld [smem:[#allocation12 + $0x8c]] }
 0x1d4   : > { %v711_v61 = vadd.f32 %v710_v46, %v709_v35  ;;  %v1031_v35 = vstv %s3231_s12  ;;  %s3286_s12 = sld [smem:[#allocation12 + $0xf]] }
 0x1d6   : > { %v712_v8 = vmax.f32 %v711_v61, 0.0 }
 0x1d8   : > { %v628_v55 = vpop.xlane.xlu1 %627  ;;  %v717_v19 = vmul.f32 %v3125_v20, %v712_v8  ;;  %v1005_v8 = vstv %s3254_s30  ;;  %s3377_s30 = sld [smem:[#allocation12 + $0x99]] }
 0x1d9   : > { %1357 = vperm.xlu1 %2535, %v3069_v47   ;;  %v635_v21 = vmul.f32 0.01, %v628_v55  ;;  %v686_v55 = vmax.f32 %v685_v30, 0.0  ;;  %v1299_v30 = vstv %s2303_s13  ;;  %s3277_s13 = sld [smem:[#allocation12 + $0x12]] }
 0x1da   : > { %v1236_v50 = vpop.permute.xlu0 %1235 }
 0x1db   : > { %v1238_v52 = vsel %vm620_vm1, %v1236_v50, 0.0  ;;  %v636_v36 = vmul.f32 %v635_v21, %v3169_v60  ;;  %v673_v50 = vmax.f32 %v672_v26, 0.0 }
 0x1dd   : > { %930 = vadd.xlane.f32.xlu2 %v929_v49  ;;  %v652_v49 = vmul.f32 %v3106_v7, %v646_v25  ;;  %v678_v2 = vmul.f32 %v3110_v10, %v673_v50  ;;  %v691_v7 = vmul.f32 %v3121_v16, %v686_v55  ;;  %v3219_v16 = vpop.permute.xlu2 %1279  ;;  %v1032_v50 = vmul.f32 %v1031_v35, %v3169_v60 }
 0x1de   : > { %v992_v55 = vstv %s3248_s6  ;;  %s3367_s6 = sld [smem:[#allocation12 + $0x19]] }
 0x1e0   : > { %v633_v58 = vpop.xlane.xlu1 %632 }
 0x1e1   : > { %2539 = vset.pattern.permute.xlu1 %v2867_v53  ;;  %1239 = vadd.xlane.f32.xlu0 %v1238_v52  ;;  %v637_v29 = vmul.f32 0.01, %v633_v58  ;;  %v722_v52 = vmul.f32 %v721_v31, %v3169_v60  ;;  %v665_v58 = vmul.f32 %v3113_v12, %v660_v34  ;;  %v953_v34 = vstv %s2265_s14  ;;  %s3296_s14 = sld [smem:[#allocation12 + $0x15]] }
 0x1e2   : > { %1612 = vperm.xlu1 %2539, %v3069_v47  }
 0x1e5   : > { %v3225_v18 = vpop.permute.xlu2 %1318 }
 0x1ea   : > { %2542 = vset.pattern.permute.xlu1 %v2868_v56  ;;  %v723_v56 = vstv %s3190_s18  ;;  %s3258_s18 = sld [smem:[#allocation12 + $0x10]] }
 0x1eb   : > { %1651 = vperm.xlu1 %2542, %v3069_v47   ;;  %v724_v3 = vadd.f32 %v723_v56, %v722_v52  ;;  %v955_v52 = vstv %s3240_s17  ;;  %v1033_v56 = vstv %s3233_s15  ;;  %s3299_s15 = sld [smem:[#allocation12 + $0x14]] }
 0x1ec   : > { %s3312_s17 = sld [smem:[#allocation12 + $0x8f]] }
 0x1ed   : > { %v725_v13 = vmax.f32 %v724_v3, 0.0  ;;  %v993_v3 = vmul.f32 %v992_v55, %v3169_v60  ;;  %v1325_v55 = vstv %s3296_s14  ;;  %s2343_s14 = sld [smem:[#allocation12 + $0x1f]] }
 0x1ef   : > { %v730_v21 = vmul.f32 %v3129_v24, %v725_v13 }
 0x1f0   : > { %v1260_v0 = vstv %s3258_s18  ;;  %s3385_s18 = sld [smem:[#allocation12 + $0x1c]] }
 0x1f1   : > { %v1261_v13 = vmul.f32 %v1260_v0, %v3169_v60 }
 0x1f5   : > { %1638 = vperm.xlu0 %2541, %v3069_v47  }
 0x1f8   : > { %v1543_v59 = vpop.permute.xlu1 %1542 }
 0x1f9   : > { %v1545_v62 = vsel %vm620_vm1, %v1543_v59, 0.0  ;;  %v735_v59 = vmul.f32 %v734_v45, %v3169_v60  ;;  %v1301_v45 = vstv %s3235_s16  ;;  %s3292_s16 = sld [smem:[#allocation12 + $0x91]] }
 0x1fa   : > { %1546 = vadd.xlane.f32.xlu2 %v1545_v62 }
 0x1fb   : > { %v737_v6 = vadd.f32 %v736_v1, %v735_v59  ;;  %v981_v59 = vstv %s3246_s4  ;;  %s3357_s4 = sld [smem:[#allocation12 + $0x18]] }
 0x1fd   : > { %2544 = vset.pattern.permute.xlu0 %v2869_v5  ;;  %v738_v17 = vmax.f32 %v737_v6, 0.0  ;;  %v3303_v5 = vadd.f32 %v1033_v56, %v1032_v50  ;;  %v994_v6 = vstv %s3252_s26  ;;  %v1312_v56 = vstv %s3299_s15  ;;  %s3372_s26 = sld [smem:[#allocation12 + $0x98]] }
 0x1fe   : > { %s2342_s15 = sld [smem:[#allocation12 + $0x9e]] }
 0x1ff   : > { %v743_v23 = vmul.f32 %v3117_v14, %v738_v17  ;;  %v1340_v17 = vstv %s3244_s10  ;;  %s3375_s10 = sld [smem:[#allocation12 + $0x1a]] }
 0x205   : > { %v623_v33 = vpop.xlane.xlu0 %622 }
 0x206   : > { %v638_v38 = vadd.f32 %v637_v29, %v623_v33  ;;  %v3227_v29 = vpop.xlane.xlu2 %1245  ;;  %v968_v33 = vstv %s3229_s9  ;;  %s3280_s9 = sld [smem:[#allocation12 + $0x92]] }
 0x207   : > { %v1253_v0 = vmul.f32 0.01, %v3227_v29  ;;  %v1326_v29 = vmul.f32 %v1325_v55, %v3169_v60 }
 0x208   : > { %v639_v53 = vadd.f32 %v638_v38, %v636_v36  ;;  %v1300_v36 = vmul.f32 %v1299_v30, %v3169_v60  ;;  %v979_v38 = vstv %s2269_s3  ;;  %s3323_s3 = sld [smem:[#allocation12 + $0x94]] }
 0x20a   : > { %v653_v62 = vadd.f32 %v652_v49, %v639_v53  ;;  %v954_v49 = vmul.f32 %v953_v34, %v3169_v60  ;;  %v980_v53 = vmul.f32 %v979_v38, %v3169_v60  ;;  %v1275_v38 = vstv %s3292_s16  ;;  %s2340_s16 = sld [smem:[#allocation12 + $0x9d]] }
 0x20c   : > { %v666_v4 = vadd.f32 %v665_v58, %v653_v62  ;;  %v3289_v58 = vadd.f32 %v1301_v45, %v1300_v36  ;;  %v1338_v62 = vstv %s3242_s19  ;;  %s3319_s19 = sld [smem:[#allocation12 + $0x95]]  ;;  %v1020_v45 = vstv %s3268_s0 }
 0x20d   : > { %v3250_v20 = vpop.xlane.xlu0 %937  ;;  %s3343_s0 = sld [smem:[#allocation12 + $0x97]] }
 0x20e   : > { %v679_v12 = vadd.f32 %v678_v2, %v666_v4  ;;  %v3238_v14 = vpop.xlane.xlu2 %1552  ;;  %v956_v2 = vadd.f32 %v955_v52, %v954_v49  ;;  %v946_v34 = vmul.f32 0.01, %v3250_v20  ;;  %v1044_v49 = vstv %s3286_s12  ;;  %s2341_s12 = sld [smem:[#allocation12 + $0x1e]] }
 0x210   : > { %v692_v15 = vadd.f32 %v691_v7, %v679_v12  ;;  %v982_v7 = vadd.f32 %v981_v59, %v980_v53  ;;  %v1303_v12 = vmax.f32 %v3289_v58, 0.0 }
 0x212   : > { %v705_v10 = vadd.f32 %v704_v11, %v692_v15  ;;  %v3309_v11 = vmul.f32 %v1338_v62, %v3169_v60  ;;  %v983_v30 = vmax.f32 %v982_v7, 0.0 }
 0x214   : > { %v718_v22 = vadd.f32 %v717_v19, %v705_v10  ;;  %v1262_v19 = vstv %s3262_s21  ;;  %v1018_v10 = vstv %s3265_s28  ;;  %s3333_s28 = sld [smem:[#allocation12 + $0x17]] }
 0x215   : > { %v1263_v35 = vadd.f32 %v1262_v19, %v1261_v13  ;;  %v1313_v13 = vmul.f32 %v1312_v56, %v3169_v60  ;;  %s3388_s21 = sld [smem:[#allocation12 + $0x9a]] }
 0x216   : > { %v731_v25 = vadd.f32 %v730_v21, %v718_v22  ;;  %v3260_v24 = vpop.permute.xlu2 %1586  ;;  %v1286_v21 = vstv %s3277_s13  ;;  %s2338_s13 = sld [smem:[#allocation12 + $0x9c]] }
 0x217   : > { %v1287_v36 = vmul.f32 %v1286_v21, %v3169_v60  ;;  %v1327_v21 = vstv %s3319_s19  ;;  %s3436_s19 = sld [smem:[#allocation12 + $0x182]] }
 0x218   : > { %v3221_v26 = vadd.f32 %v743_v23, %v731_v25  ;;  %v957_v23 = vmax.f32 %v956_v2, 0.0  ;;  %v995_v25 = vadd.f32 %v994_v6, %v993_v3  ;;  %v1264_v3 = vmax.f32 %v1263_v35, 0.0 }
 0x21a   : > { %v745_v27 = vsel %vm620_vm1, %v3221_v26, -inf  ;;  %v996_v52 = vmax.f32 %v995_v25, 0.0  ;;  %v1314_v25 = vstv %s3323_s3  ;;  %s3438_s3 = sld [smem:[#allocation12 + $0x180]] }
 0x21b   : > { %746 = vmax.xlane.f32.xlu2 %v745_v27  ;;  %v1006_v27 = vmul.f32 %v1005_v8, %v3169_v60  ;;  %v962_v8 = vmul.f32 %v3161_v54, %v957_v23  ;;  %v1351_v23 = vstv %s3333_s28  ;;  %s3440_s28 = sld [smem:[#allocation12 + $0x102]] }
 0x21e   : > { %v3301_v4 = vpop.permute.xlu2 %1625 }
 0x220   : > { %v3274_v39 = vpop.permute.xlu0 %1573 }
 0x223   : > { %v945_v61 = vpop.xlane.xlu1 %944 }
 0x224   : > { %v948_v50 = vmul.f32 0.01, %v945_v61  ;;  %v1045_v61 = vmul.f32 %v1044_v49, %v3169_v60 }
 0x22b   : > { %v1252_v59 = vpop.xlane.xlu1 %1251 }
 0x233   : > { %1664 = vperm.xlu2 %2543, %v3069_v47   ;;  %v966_v47 = vstv %s2267_s23  ;;  %s3272_s23 = sld [smem:[#allocation12 + $0x11]] }
 0x234   : > { %v967_v31 = vmul.f32 %v966_v47, %v3169_v60  ;;  %v3325_v47 = vpop.permute.xlu0 %1599 }
 0x236   : > { %v969_v46 = vadd.f32 %v968_v33, %v967_v31  ;;  %v1007_v31 = vstv %s3256_s11  ;;  %s3381_s11 = sld [smem:[#allocation12 + $0x1b]] }
 0x237   : > { %v1008_v53 = vadd.f32 %v1007_v31, %v1006_v27 }
 0x238   : > { %v970_v1 = vmax.f32 %v969_v46, 0.0  ;;  %v1288_v46 = vstv %s3280_s9  ;;  %s2339_s9 = sld [smem:[#allocation12 + $0x1d]] }
 0x239   : > { %v1273_v15 = vstv %s3272_s23  ;;  %v1289_v6 = vadd.f32 %v1288_v46, %v1287_v36  ;;  %v1009_v36 = vmax.f32 %v1008_v53, 0.0  ;;  %s3392_s23 = sld [smem:[#allocation12 + $0x9b]] }
 0x23a   : > { %v975_v22 = vmul.f32 %v3135_v32, %v970_v1  ;;  %v1274_v33 = vmul.f32 %v1273_v15, %v3169_v60  ;;  %v1019_v32 = vmul.f32 %v1018_v10, %v3169_v60  ;;  %v947_v1 = vmul.f32 %v946_v34, %v3169_v60 }
 0x23b   : > { %v1255_v15 = vmul.f32 0.01, %v1252_v59  ;;  %v1046_v10 = vstv %s3312_s17  ;;  %v1290_v54 = vmax.f32 %v1289_v6, 0.0  ;;  %v1328_v59 = vadd.f32 %v1327_v21, %v1326_v29  ;;  %s2344_s17 = sld [smem:[#allocation12 + $0x9f]] }
 0x23c   : > { %v1276_v20 = vadd.f32 %v1275_v38, %v1274_v33  ;;  %v1021_v7 = vadd.f32 %v1020_v45, %v1019_v32  ;;  %v1254_v33 = vmul.f32 %v1253_v0, %v3169_v60  ;;  %v988_v32 = vmul.f32 %v3164_v57, %v983_v30  ;;  %v1559_v0 = vpop.xlane.xlu1 %1558 }
 0x23d   : > { %v1269_v38 = vmul.f32 %v3149_v42, %v1264_v3  ;;  %v1315_v45 = vadd.f32 %v1314_v25, %v1313_v13  ;;  %v1047_v56 = vadd.f32 %v1046_v10, %v1045_v61  ;;  %v1352_v57 = vmul.f32 %v1351_v23, %v3169_v60 }
 0x23e   : > { %v1277_v31 = vmax.f32 %v1276_v20, 0.0  ;;  %v1022_v55 = vmax.f32 %v1021_v7, 0.0  ;;  %v1035_v20 = vmax.f32 %v3303_v5, 0.0  ;;  %v1341_v42 = vadd.f32 %v1340_v17, %v3309_v11 }
 0x23f   : > { %v1308_v3 = vmul.f32 %v3147_v41, %v1303_v12  ;;  %v1048_v7 = vmax.f32 %v1047_v56, 0.0  ;;  %v1329_v5 = vmax.f32 %v1328_v59, 0.0  ;;  %v1567_v13 = vstv %s3357_s4  ;;  %s3444_s4 = sld [smem:[#allocation12 + $0x101]] }
 0x240   : > { %v1342_v6 = vmax.f32 %v1341_v42, 0.0  ;;  %v1040_v58 = vmul.f32 %v3140_v37, %v1035_v20  ;;  %v1580_v29 = vstv %s3367_s6  ;;  %v1568_v21 = vmul.f32 %v1567_v13, %v3169_v60  ;;  %s3446_s6 = sld [smem:[#allocation12 + $0x181]] }
 0x241   : > { %v1569_v25 = vstv %s3372_s26  ;;  %v1608_v56 = vstv %s3392_s23  ;;  %s3448_s26 = sld [smem:[#allocation12 + $0x105]] }
 0x242   : > { %v1347_v10 = vmul.f32 %v3151_v43, %v1342_v6  ;;  %v1581_v43 = vmul.f32 %v1580_v29, %v3169_v60  ;;  %s3480_s23 = sld [smem:[#allocation12 + $0x107]] }
 0x250   : > { %v931_v62 = vpop.xlane.xlu2 %930 }
 0x251   : > { %v949_v2 = vadd.f32 %v948_v50, %v931_v62  ;;  %v1001_v50 = vmul.f32 %v3145_v40, %v996_v52  ;;  %v1282_v62 = vmul.f32 %v3219_v16, %v1277_v31  ;;  %v1353_v40 = vstv %s3343_s0  ;;  %s3442_s0 = sld [smem:[#allocation12 + $0x100]] }
 0x252   : > { %v1295_v52 = vmul.f32 %v3153_v48, %v1290_v54  ;;  %v1354_v11 = vadd.f32 %v1353_v40, %v1352_v57  ;;  %v1570_v54 = vadd.f32 %v1569_v25, %v1568_v21 }
 0x253   : > { %v950_v19 = vadd.f32 %v949_v2, %v947_v1  ;;  %v1316_v1 = vmax.f32 %v1315_v45, 0.0  ;;  %v1595_v45 = vstv %s3388_s21  ;;  %s3462_s21 = sld [smem:[#allocation12 + $0x184]] }
 0x254   : > { %v1240_v27 = vpop.xlane.xlu0 %1239 }
 0x255   : > { %v963_v34 = vadd.f32 %v962_v8, %v950_v19  ;;  %v1256_v35 = vadd.f32 %v1255_v15, %v1240_v27  ;;  %v1321_v41 = vmul.f32 %v3225_v18, %v1316_v1  ;;  %v1334_v8 = vmul.f32 %v3157_v51, %v1329_v5  ;;  %v1358_v18 = vpop.permute.xlu1 %1357 }
 0x256   : > { %v1355_v15 = vmax.f32 %v1354_v11, 0.0  ;;  %v1593_v27 = vstv %s3375_s10  ;;  %s3450_s10 = sld [smem:[#allocation12 + $0x185]] }
 0x257   : > { %v976_v46 = vadd.f32 %v975_v22, %v963_v34  ;;  %v1257_v49 = vadd.f32 %v1256_v35, %v1254_v33  ;;  %v1014_v22 = vmul.f32 %v3174_v63, %v1009_v36  ;;  %v1027_v63 = vmul.f32 %v3198_v28, %v1022_v55 }
 0x258   : > { %v1053_v28 = vmul.f32 %v3213_v9, %v1048_v7  ;;  %v1360_v31 = vmul.f32 %v1358_v18, %v1355_v15  ;;  %v1582_v35 = vstv %s3377_s30  ;;  %v1594_v23 = vmul.f32 %v1593_v27, %v3169_v60  ;;  %s3452_s30 = sld [smem:[#allocation12 + $0x103]] }
 0x259   : > { %v989_v30 = vadd.f32 %v988_v32, %v976_v46  ;;  %v1270_v53 = vadd.f32 %v1269_v38, %v1257_v49  ;;  %v1606_v32 = vstv %s3381_s11  ;;  %v1619_v38 = vstv %s3385_s18  ;;  %s3454_s11 = sld [smem:[#allocation12 + $0x104]] }
 0x25a   : > { %v1560_v49 = vmul.f32 0.01, %v3238_v14  ;;  %v1607_v55 = vmul.f32 %v1606_v32, %v3169_v60  ;;  %v1620_v59 = vmul.f32 %v1619_v38, %v3169_v60  ;;  %v1596_v57 = vadd.f32 %v1595_v45, %v1594_v23  ;;  %s3458_s18 = sld [smem:[#allocation12 + $0x183]] }
 0x25b   : > { %v1283_v16 = vadd.f32 %v1282_v62, %v1270_v53  ;;  %v1002_v2 = vadd.f32 %v1001_v50, %v989_v30  ;;  %v1583_v50 = vadd.f32 %v1582_v35, %v1581_v43  ;;  %v1571_v62 = vmax.f32 %v1570_v54, 0.0 }
 0x25c   : > { %v1562_v30 = vmul.f32 0.01, %v1559_v0  ;;  %v1621_v53 = vstv %s2338_s13  ;;  %v1561_v42 = vmul.f32 %v1560_v49, %v3169_v60  ;;  %v1609_v40 = vadd.f32 %v1608_v56, %v1607_v55  ;;  %s3490_s13 = sld [smem:[#allocation12 + $0x106]] }
 0x25d   : > { %v1296_v48 = vadd.f32 %v1295_v52, %v1283_v16  ;;  %v1015_v17 = vadd.f32 %v1014_v22, %v1002_v2  ;;  %v1584_v22 = vmax.f32 %v1583_v50, 0.0  ;;  %v1622_v1 = vadd.f32 %v1621_v53, %v1620_v59 }
 0x25e   : > { %v1576_v14 = vmul.f32 %v3274_v39, %v1571_v62  ;;  %v1597_v16 = vmax.f32 %v1596_v57, 0.0  ;;  %v1610_v7 = vmax.f32 %v1609_v40, 0.0  ;;  %v1632_v39 = vstv %s2339_s9  ;;  %s3496_s9 = sld [smem:[#allocation12 + $0x187]] }
 0x25f   : > { %v1028_v12 = vadd.f32 %v1027_v63, %v1015_v17  ;;  %v1309_v61 = vadd.f32 %v1308_v3, %v1296_v48  ;;  %v1589_v3 = vmul.f32 %v3260_v24, %v1584_v22  ;;  %v1613_v63 = vpop.permute.xlu1 %1612  ;;  %v1623_v11 = vmax.f32 %v1622_v1, 0.0 }
 0x260   : > { %v1602_v0 = vmul.f32 %v3325_v47, %v1597_v16  ;;  %v1615_v17 = vmul.f32 %v1613_v63, %v1610_v7  ;;  %v1633_v24 = vmul.f32 %v1632_v39, %v3169_v60  ;;  %v1647_v15 = vstv %s2342_s15  ;;  %s3534_s15 = sld [smem:[#allocation12 + $0x109]] }
 0x261   : > { %v1041_v19 = vadd.f32 %v1040_v58, %v1028_v12  ;;  %v1322_v37 = vadd.f32 %v1321_v41, %v1309_v61  ;;  %v1628_v58 = vmul.f32 %v3301_v4, %v1623_v11  ;;  %v1645_v61 = vstv %s2341_s12  ;;  %s3500_s12 = sld [smem:[#allocation12 + $0x186]] }
 0x262   : > { %v1646_v47 = vmul.f32 %v1645_v61, %v3169_v60  ;;  %v809_v63 = vstv %s3436_s19  ;;  %v769_v11 = vstv %s3438_s3  ;;  %v869_v39 = vstv %s3450_s10 }
 0x263   : > { %v3394_v9 = vadd.f32 %v1053_v28, %v1041_v19  ;;  %v1335_v51 = vadd.f32 %v1334_v8, %v1322_v37  ;;  %v1634_v28 = vstv %s2340_s16  ;;  %v1658_v8 = vstv %s2343_s14  ;;  %s3530_s16 = sld [smem:[#allocation12 + $0x18a]] }
 0x264   : > { %v1635_v13 = vadd.f32 %v1634_v28, %v1633_v24  ;;  %v1659_v4 = vmul.f32 %v1658_v8, %v3169_v60  ;;  %v1660_v19 = vstv %s2344_s17  ;;  %v1648_v37 = vadd.f32 %v1647_v15, %v1646_v47  ;;  %s3532_s14 = sld [smem:[#allocation12 + $0x10a]] }
 0x265   : > { %v1055_v33 = vsel %vm620_vm1, %v3394_v9, -inf  ;;  %v1348_v34 = vadd.f32 %v1347_v10, %v1335_v51  ;;  %v827_v28 = vstv %s3452_s30  ;;  %v847_v8 = vstv %s3454_s11  ;;  %s3536_s17 = sld [smem:[#allocation12 + $0x189]] }
 0x266   : > { %1056 = vmax.xlane.f32.xlu1 %v1055_v33  ;;  %v1636_v18 = vmax.f32 %v1635_v13, 0.0  ;;  %v1661_v21 = vadd.f32 %v1660_v19, %v1659_v4  ;;  %v1649_v25 = vmax.f32 %v1648_v37, 0.0  ;;  %v829_v37 = vstv %s3458_s18  ;;  %s4332_s30 = sld [smem:[#allocation72_spill]] }
 0x267   : > { %v3404_v36 = vadd.f32 %v1360_v31, %v1348_v34  ;;  %v1639_v10 = vpop.permute.xlu0 %1638  ;;  %v1652_v33 = vpop.permute.xlu1 %1651 }
 0x268   : > { %v1641_v27 = vmul.f32 %v1639_v10, %v1636_v18  ;;  %v1662_v34 = vmax.f32 %v1661_v21, 0.0  ;;  %v1654_v35 = vmul.f32 %v1652_v33, %v1649_v25  ;;  %v849_v18 = vstv %s3462_s21 }
 0x269   : > { %v1362_v46 = vsel %vm620_vm1, %v3404_v36, -inf  ;;  %4240 = sst [smem:[#allocation32_spill]] %s3530_s16 }
 0x26a   : > { %1363 = vmax.xlane.f32.xlu2 %v1362_v46 }
 0x26d   : > { %v1547_v20 = vpop.xlane.xlu2 %1546 }
 0x26e   : > { %v1563_v52 = vadd.f32 %v1562_v30, %v1547_v20 }
 0x270   : > { %v1564_v2 = vadd.f32 %v1563_v52, %v1561_v42 }
 0x272   : > { %v1577_v5 = vadd.f32 %v1576_v14, %v1564_v2 }
 0x274   : > { %v1590_v48 = vadd.f32 %v1589_v3, %v1577_v5 }
 0x276   : > { %v1603_v6 = vadd.f32 %v1602_v0, %v1590_v48  ;;  %v807_v0 = vstv %s3440_s28  ;;  %v767_v48 = vstv %s3442_s0 }
 0x278   : > { %v1616_v41 = vadd.f32 %v1615_v17, %v1603_v6  ;;  %v787_v17 = vstv %s3444_s4  ;;  %v789_v6 = vstv %s3446_s6  ;;  %s4331_s6 = sld [smem:[#allocation30_spill]] }
 0x27a   : > { %v1629_v12 = vadd.f32 %v1628_v58, %v1616_v41 }
 0x27c   : > { %v1642_v43 = vadd.f32 %v1641_v27, %v1629_v12  ;;  %v867_v12 = vstv %s3448_s26 }
 0x27e   : > { %v1655_v23 = vadd.f32 %v1654_v35, %v1642_v43 }
 0x28e   : > { %v747_v29 = vpop.xlane.xlu2 %746 }
 0x28f   : > { %v748_v51 = vsub.f32 %v3221_v26, %v747_v29 }
 0x291   : > { %v749_v31 = vmul.f32 1.442695, %v748_v51 }
 0x293   : > { %2546 = vpow2.f32 %v749_v31 }
 0x296   : > { %v1665_v32 = vpop.permute.xlu2 %1664 }
 0x297   : > { %v1667_v54 = vmul.f32 %v1665_v32, %v1662_v34 }
 0x299   : > { %v2547_v38 = vpop.eup %2546  ;;  %v1668_v45 = vadd.f32 %v1667_v54, %v1655_v23 }
 0x29a   : > { %v751_v46 = vsel %vm620_vm1, %v2547_v38, 0.0 }
 0x29b   : > { %752 = vadd.xlane.f32.xlu1 %v751_v46  ;;  %v1669_v49 = vsel %vm620_vm1, %v1668_v45, -inf }
 0x29c   : > { %1670 = vmax.xlane.f32.xlu0 %v1669_v49  ;;  %v907_v49 = vstv %s3480_s23 }
 0x2d9   : > { %v1057_v26 = vpop.xlane.xlu1 %1056 }
 0x2da   : > { %v1058_v50 = vsub.f32 %v3394_v9, %v1057_v26  ;;  %v887_v26 = vstv %s3490_s13 }
 0x2dc   : > { %v1059_v55 = vmul.f32 1.442695, %v1058_v50  ;;  %v909_v50 = vstv %s3496_s9  ;;  %s2054_s9 = scalar_lea.sflag [#allocation4], %s4331_s6 }
 0x2dd   : > { %v1364_v56 = vpop.xlane.xlu2 %1363 }
 0x2de   : > { %2548 = vpow2.f32 %v1059_v55  ;;  %v1365_v59 = vsub.f32 %v3404_v36, %v1364_v56 }
 0x2e0   : > { %v1366_v62 = vmul.f32 1.442695, %v1365_v59 }
 0x2e2   : > { %2550 = vpow2.f32 %v1366_v62  ;;  %v889_v62 = vstv %s3500_s12 }
 0x2e4   : > { %v3428_v57 = vpop.eup %2548 }
 0x2e5   : > { %v1061_v30 = vsel %vm620_vm1, %v3428_v57, 0.0 }
 0x2e6   : > { %1062 = vadd.xlane.f32.xlu2 %v1061_v30 }
 0x2e8   : > { %v3432_v53 = vpop.eup %2550 }
 0x2e9   : > { %v1368_v20 = vsel %vm620_vm1, %v3432_v53, 0.0 }
 0x2ea   : > { %1369 = vadd.xlane.f32.xlu0 %v1368_v20 }
 0x30e   : > { %v753_v9 = vpop.xlane.xlu1 %752 }
 0x30f   : > { %2552 = vrcp.f32 %v753_v9  ;;  %v1671_v42 = vpop.xlane.xlu0 %1670 }
 0x310   : > { %v1672_v22 = vsub.f32 %v1668_v45, %v1671_v42 }
 0x312   : > { %v1673_v36 = vmul.f32 1.442695, %v1672_v22 }
 0x314   : > { %2554 = vpow2.f32 %v1673_v36 }
 0x315   : > { %v2553_v40 = vpop.eup %2552 }
 0x316   : > { %v755_v52 = vmul.f32 %v2553_v40, %v753_v9 }
 0x318   : > { %v756_v1 = vsub.f32 2.0, %v755_v52 }
 0x31a   : > { %v3456_v14 = vpop.eup %2554  ;;  %v757_v16 = vmul.f32 %v2553_v40, %v756_v1 }
 0x31b   : > { %v1675_v2 = vsel %vm620_vm1, %v3456_v14, 0.0 }
 0x31c   : > { %1676 = vadd.xlane.f32.xlu1 %v1675_v2  ;;  %v758_v3 = vmul.f32 %v2547_v38, %v757_v16 }
 0x31e   : > { %v759_v7 = vmul.f32 %v758_v3, %v3169_v60  ;;  %v764_v5 = vmul.f32 0.99, %v758_v3 }
 0x320   : > { %v760_v58 = vsel %vm620_vm1, %v759_v7, 0.0  ;;  %v763_v41 = vmul.f32 0.99, %v759_v7  ;;  %v810_v24 = vmul.f32 %v809_v63, %v764_v5  ;;  %v770_v61 = vmul.f32 %v769_v11, %v764_v5 }
 0x321   : > { %761 = vadd.xlane.f32.xlu2 %v760_v58  ;;  %v790_v4 = vmul.f32 %v789_v6, %v764_v5  ;;  %v870_v25 = vmul.f32 %v869_v39, %v764_v5  ;;  %v830_v43 = vmul.f32 %v829_v37, %v764_v5  ;;  %v850_v32 = vmul.f32 %v849_v18, %v764_v5 }
 0x322   : > { %v808_v47 = vmul.f32 %v807_v0, %v763_v41  ;;  %v768_v13 = vmul.f32 %v767_v48, %v763_v41  ;;  %v788_v15 = vmul.f32 %v787_v17, %v763_v41  ;;  %v868_v19 = vmul.f32 %v867_v12, %v763_v41 }
 0x323   : > { %v828_v21 = vmul.f32 %v827_v28, %v763_v41  ;;  %v848_v27 = vmul.f32 %v847_v8, %v763_v41  ;;  %v908_v59 = vmul.f32 %v907_v49, %v763_v41  ;;  %v888_v20 = vmul.f32 %v887_v26, %v763_v41 }
 0x324   : > { %v811_v10 = vadd.f32 %v810_v24, %v808_v47  ;;  %v771_v29 = vadd.f32 %v770_v61, %v768_v13  ;;  %v791_v51 = vadd.f32 %v790_v4, %v788_v15  ;;  %v871_v35 = vadd.f32 %v870_v25, %v868_v19 }
 0x325   : > { %v831_v45 = vadd.f32 %v830_v43, %v828_v21  ;;  %v851_v46 = vadd.f32 %v850_v32, %v848_v27  ;;  %v910_v9 = vmul.f32 %v909_v50, %v764_v5  ;;  %v890_v42 = vmul.f32 %v889_v62, %v764_v5 }
 0x326   : > { %v812_v31 = vmax.f32 %v811_v10, 0.0  ;;  %v772_v33 = vmax.f32 %v771_v29, 0.0  ;;  %v792_v34 = vmax.f32 %v791_v51, 0.0  ;;  %v872_v55 = vmax.f32 %v871_v35, 0.0 }
 0x327   : > { %v832_v56 = vmax.f32 %v831_v45, 0.0  ;;  %v852_v30 = vmax.f32 %v851_v46, 0.0  ;;  %v911_v40 = vadd.f32 %v910_v9, %v908_v59  ;;  %v891_v1 = vadd.f32 %v890_v42, %v888_v20 }
 0x328   : > { %v813_v54 = vsel %vm620_vm1, %v812_v31, 0.0  ;;  %v773_v23 = vsel %vm620_vm1, %v772_v33, 0.0  ;;  %v793_v38 = vsel %vm620_vm1, %v792_v34, 0.0  ;;  %v873_v22 = vsel %vm620_vm1, %v872_v55, 0.0 }
 0x329   : > { %814 = vadd.xlane.f32.xlu2 %v813_v54  ;;  %774 = vadd.xlane.f32.xlu0 %v773_v23  ;;  %v833_v36 = vsel %vm620_vm1, %v832_v56, 0.0  ;;  %v853_v52 = vsel %vm620_vm1, %v852_v30, 0.0  ;;  %v912_v16 = vmax.f32 %v911_v40, 0.0  ;;  %v892_v2 = vmax.f32 %v891_v1, 0.0 }
 0x32a   : > { %794 = vadd.xlane.f32.xlu1 %v793_v38  ;;  %v1117_v21 = vstv %s3532_s14  ;;  %v1119_v25 = vstv %s3530_s16  ;;  %v1097_v27 = vstv %s3534_s15  ;;  %v1099_v31 = vstv %s3536_s17  ;;  %s3612_s16 = sld [smem:[#allocation12 + $0x191]] }
 0x32b   : > { %v913_v3 = vsel %vm620_vm1, %v912_v16, 0.0  ;;  %v893_v7 = vsel %vm620_vm1, %v892_v2, 0.0  ;;  %v1177_v43 = vstv %s3538_s1  ;;  %v1157_v35 = vstv %s3540_s5  ;;  %s3601_s1 = sld [smem:[#allocation12 + $0x112]]  ;;  %s4271_s5 = scalar_lea.vmem [#allocation6], %s3032_s20 }
 0x32c   : > { %v1159_v45 = vstv %s3544_s29  ;;  %v1217_v16 = vstv %s3550_s8  ;;  %v1197_v2 = vstv %s3561_s22  ;;  %s3608_s29 = sld [smem:[#allocation12 + $0x192]] }
 0x32d   : > { %s3648_s8 = sld [smem:[#allocation12 + $0x195]] }
 0x32e   : > { %s3731_s22 = sld [smem:[#allocation12 + $0x19d]] }
 0x32f   : > { %s3770_s20 = sld [smem:[#allocation12 + $0x110]] }
 0x330   : > { %4254 = sst [smem:[#allocation46_spill]] %s3612_s16 }
 0x331   : > { %874 = vadd.xlane.f32.xlu2 %v873_v22  ;;  %834 = vadd.xlane.f32.xlu0 %v833_v36  ;;  %4251 = sst [smem:[#allocation43_spill]] %s3601_s1 }
 0x332   : > { %854 = vadd.xlane.f32.xlu1 %v853_v52  ;;  %4253 = sst [smem:[#allocation45_spill]] %s3608_s29 }
 0x333   : > { %4257 = sst [smem:[#allocation49_spill]] %s3648_s8 }
 0x334   : > { %4269 = sst [smem:[#allocation61_spill]] %s3731_s22 }
 0x335   : > { %s4294_s15 = sld [smem:[#allocation49_spill]] }
 0x336   : > { %s4320_s4 = sld [smem:[#allocation61_spill]] }
 0x339   : > { %914 = vadd.xlane.f32.xlu2 %v913_v3  ;;  %v1219_v3 = vstv %s3556_s24  ;;  %s3638_s24 = sld [smem:[#allocation12 + $0x115]] }
 0x33a   : > { %894 = vadd.xlane.f32.xlu1 %v893_v7  ;;  %v1199_v7 = vstv %s3566_s7  ;;  %s3642_s7 = sld [smem:[#allocation12 + $0x114]] }
 0x33f   : > { %4255 = sst [smem:[#allocation47_spill]] %s3638_s24 }
 0x340   : > { %4256 = sst [smem:[#allocation48_spill]] %s3642_s7 }
 0x359   : > { %v1063_v5 = vpop.xlane.xlu2 %1062 }
 0x35a   : > { %2556 = vrcp.f32 %v1063_v5 }
 0x35d   : > { %v1370_v58 = vpop.xlane.xlu0 %1369 }
 0x35e   : > { %2558 = vrcp.f32 %v1370_v58 }
 0x360   : > { %v2557_v41 = vpop.eup %2556 }
 0x361   : > { %v1065_v24 = vmul.f32 %v2557_v41, %v1063_v5  ;;  %v1137_v5 = vstv %s3580_s2  ;;  %s3734_s2 = sld [smem:[#allocation12 + $0x19c]] }
 0x363   : > { %v1066_v61 = vsub.f32 2.0, %v1065_v24 }
 0x364   : > { %v2559_v47 = vpop.eup %2558 }
 0x365   : > { %v1067_v13 = vmul.f32 %v2557_v41, %v1066_v61  ;;  %v1372_v15 = vmul.f32 %v2559_v47, %v1370_v58  ;;  %v1139_v58 = vstv %s3584_s27  ;;  %s3652_s27 = sld [smem:[#allocation12 + $0x194]] }
 0x367   : > { %v1373_v4 = vsub.f32 2.0, %v1372_v15  ;;  %v1068_v19 = vmul.f32 %v3428_v57, %v1067_v13  ;;  %4270 = sst [smem:[#allocation62_spill]] %s3734_s2 }
 0x369   : > { %v1374_v10 = vmul.f32 %v2559_v47, %v1373_v4  ;;  %v1069_v29 = vmul.f32 %v1068_v19, %v3169_v60  ;;  %v3548_v51 = vmul.f32 0.99, %v1068_v19 }
 0x36b   : > { %v1070_v57 = vsel %vm620_vm1, %v1069_v29, 0.0  ;;  %v3559_v33 = vmul.f32 0.99, %v1069_v29  ;;  %v1375_v34 = vmul.f32 %v3432_v53, %v1374_v10  ;;  %v1120_v54 = vmul.f32 %v1119_v25, %v3548_v51  ;;  %4258 = sst [smem:[#allocation50_spill]] %s3652_s27 }
 0x36c   : > { %1071 = vadd.xlane.f32.xlu0 %v1070_v57  ;;  %v1100_v38 = vmul.f32 %v1099_v31, %v3548_v51  ;;  %v1179_v53 = vstv %s3542_s25  ;;  %v1160_v22 = vmul.f32 %v1159_v45, %v3548_v51  ;;  %s3606_s25 = sld [smem:[#allocation12 + $0x111]]  ;;  %v1220_v13 = vmul.f32 %v1219_v3, %v3548_v51 }
 0x36d   : > { %v1118_v32 = vmul.f32 %v1117_v21, %v3559_v33  ;;  %v1098_v23 = vmul.f32 %v1097_v27, %v3559_v33  ;;  %v1178_v56 = vmul.f32 %v1177_v43, %v3559_v33  ;;  %v1158_v59 = vmul.f32 %v1157_v35, %v3559_v33 }
 0x36e   : > { %v1376_v30 = vmul.f32 %v1375_v34, %v3169_v60  ;;  %v1180_v42 = vmul.f32 %v1179_v53, %v3548_v51  ;;  %v1218_v61 = vmul.f32 %v1217_v16, %v3559_v33  ;;  %v1198_v47 = vmul.f32 %v1197_v2, %v3559_v33 }
 0x36f   : > { %v1121_v46 = vadd.f32 %v1120_v54, %v1118_v32  ;;  %v1101_v55 = vadd.f32 %v1100_v38, %v1098_v23  ;;  %v1161_v1 = vadd.f32 %v1160_v22, %v1158_v59  ;;  %v1200_v15 = vmul.f32 %v1199_v7, %v3548_v51 }
 0x370   : > { %v1181_v52 = vadd.f32 %v1180_v42, %v1178_v56  ;;  %v1377_v60 = vsel %vm620_vm1, %v1376_v30, 0.0  ;;  %v3628_v4 = vmul.f32 0.99, %v1376_v30  ;;  %v1138_v19 = vmul.f32 %v1137_v5, %v3559_v33 }
 0x371   : > { %v1122_v20 = vmax.f32 %v1121_v46, 0.0  ;;  %v1102_v9 = vmax.f32 %v1101_v55, 0.0  ;;  %v1162_v24 = vmax.f32 %v1161_v1, 0.0  ;;  %v1140_v10 = vmul.f32 %v1139_v58, %v3548_v51 }
 0x372   : > { %4252 = sst [smem:[#allocation44_spill]] %s3606_s25  ;;  %v1182_v41 = vmax.f32 %v1181_v52, 0.0  ;;  %v1221_v32 = vadd.f32 %v1220_v13, %v1218_v61  ;;  %v1201_v54 = vadd.f32 %v1200_v15, %v1198_v47  ;;  %v1424_v23 = vstv %s3601_s1 }
 0x373   : > { %v1123_v36 = vsel %vm620_vm1, %v1122_v20, 0.0  ;;  %v1103_v40 = vsel %vm620_vm1, %v1102_v9, 0.0  ;;  %v1163_v57 = vsel %vm620_vm1, %v1162_v24, 0.0  ;;  %v1404_v38 = vstv %s3606_s25  ;;  %s3668_s1 = sld [smem:[#allocation12 + $0x117]] }
 0x374   : > { %1124 = vadd.xlane.f32.xlu2 %v1123_v36  ;;  %1104 = vadd.xlane.f32.xlu1 %v1103_v40  ;;  %v1183_v29 = vsel %vm620_vm1, %v1182_v41, 0.0  ;;  %v3644_v46 = vadd.f32 %v1140_v10, %v1138_v19  ;;  %v3646_v55 = vmul.f32 0.99, %v1375_v34  ;;  %v1426_v56 = vstv %s3608_s29  ;;  %s3672_s29 = sld [smem:[#allocation12 + $0x116]] }
 0x375   : > { %1378 = vadd.xlane.f32.xlu0 %v1377_v60  ;;  %v1406_v59 = vstv %s3612_s16  ;;  %v1222_v30 = vmax.f32 %v1221_v32, 0.0  ;;  %v1202_v20 = vmax.f32 %v1201_v54, 0.0  ;;  %v1425_v9 = vmul.f32 %v1424_v23, %v3628_v4  ;;  %s3674_s16 = sld [smem:[#allocation12 + $0x197]] }
 0x376   : > { %v1405_v42 = vmul.f32 %v1404_v38, %v3628_v4  ;;  %v1427_v34 = vmul.f32 %v1426_v56, %v3646_v55  ;;  %v1407_v22 = vmul.f32 %v1406_v59, %v3646_v55  ;;  %v1484_v60 = vstv %s3638_s24  ;;  %s3678_s25 = sld [smem:[#allocation12 + $0x196]] }
 0x377   : > { %v1223_v36 = vsel %vm620_vm1, %v1222_v30, 0.0  ;;  %v1203_v40 = vsel %vm620_vm1, %v1202_v20, 0.0  ;;  %v1464_v41 = vstv %s3642_s7  ;;  %v4204_v24 = vstv %s3648_s8  ;;  %s3712_s8 = sld [smem:[#allocation12 + $0x108]] }
 0x378   : > { %v1428_v52 = vadd.f32 %v1427_v34, %v1425_v9  ;;  %v1408_v1 = vadd.f32 %v1407_v22, %v1405_v42  ;;  %v1466_v61 = vstv %s3652_s27  ;;  %v1485_v15 = vmul.f32 %v1484_v60, %v3628_v4  ;;  %s3722_s27 = sld [smem:[#allocation12 + $0x119]] }
 0x379   : > { %4259 = sst [smem:[#allocation51_spill]] %s3668_s1  ;;  %v1465_v19 = vmul.f32 %v1464_v41, %v3628_v4  ;;  %v1487_v10 = vmul.f32 %v4204_v24, %v3646_v55  ;;  %v4183_v20 = vstv %s3668_s1 }
 0x37a   : > { %4260 = sst [smem:[#allocation52_spill]] %s3672_s29  ;;  %v1429_v47 = vmax.f32 %v1428_v52, 0.0  ;;  %v1409_v13 = vmax.f32 %v1408_v1, 0.0  ;;  %v4206_v9 = vstv %s3672_s29  ;;  %v1525_v52 = vmul.f32 %v4183_v20, %v3628_v4 }
 0x37b   : > { %4261 = sst [smem:[#allocation53_spill]] %s3674_s16  ;;  %v1488_v54 = vadd.f32 %v1487_v10, %v1485_v15  ;;  %v4176_v42 = vstv %s3674_s16  ;;  %v1505_v1 = vmul.f32 %v4206_v9, %v3628_v4 }
 0x37c   : > { %1184 = vadd.xlane.f32.xlu2 %v1183_v29  ;;  %1164 = vadd.xlane.f32.xlu1 %v1163_v57  ;;  %4262 = sst [smem:[#allocation54_spill]] %s3678_s25  ;;  %v1467_v29 = vmul.f32 %v1466_v61, %v3646_v55  ;;  %v1430_v57 = vsel %vm620_vm1, %v1429_v47, 0.0  ;;  %v1410_v32 = vsel %vm620_vm1, %v1409_v13, 0.0  ;;  %v4182_v34 = vstv %s3678_s25 }
 0x37d   : > { %v1527_v47 = vmul.f32 %v4176_v42, %v3646_v55  ;;  %v1507_v13 = vmul.f32 %v4182_v34, %v3646_v55  ;;  %s3714_s1 = sld [smem:[#allocation12 + $0x188]] }
 0x37e   : > { %v1468_v30 = vadd.f32 %v1467_v29, %v1465_v19  ;;  %s3716_s29 = sld [smem:[#allocation12 + $0x19a]] }
 0x37f   : > { %v1528_v10 = vadd.f32 %v1527_v47, %v1525_v52  ;;  %v1508_v29 = vadd.f32 %v1507_v13, %v1505_v1  ;;  %s3718_s16 = sld [smem:[#allocation12 + $0x199]]  ;;  %v1077_v1 = vstv %s3712_s8 }
 0x380   : > { %s3720_s25 = sld [smem:[#allocation12 + $0x11a]] }
 0x381   : > { %s3724_s24 = sld [smem:[#allocation12 + $0x11d]] }
 0x382   : > { %s3726_s7 = sld [smem:[#allocation12 + $0x11c]] }
 0x383   : > { %4263 = sst [smem:[#allocation55_spill]] %s3714_s1  ;;  %v1079_v47 = vstv %s3714_s1 }
 0x384   : > { %1224 = vadd.xlane.f32.xlu2 %v1223_v36  ;;  %1204 = vadd.xlane.f32.xlu1 %v1203_v40  ;;  %v1489_v36 = vmax.f32 %v1488_v54, 0.0  ;;  %v1469_v40 = vmax.f32 %v1468_v30, 0.0  ;;  %4264 = sst [smem:[#allocation56_spill]] %s3716_s29  ;;  %v1529_v54 = vmax.f32 %v1528_v10, 0.0  ;;  %v1509_v30 = vmax.f32 %v1508_v29, 0.0 }
 0x385   : > { %4265 = sst [smem:[#allocation57_spill]] %s3718_s16 }
 0x386   : > { %v1490_v15 = vsel %vm620_vm1, %v1489_v36, 0.0  ;;  %v1470_v19 = vsel %vm620_vm1, %v1469_v40, 0.0  ;;  %4266 = sst [smem:[#allocation58_spill]] %s3720_s25  ;;  %v1530_v52 = vsel %vm620_vm1, %v1529_v54, 0.0  ;;  %v4178_v54 = vstv %s3716_s29 }
 0x387   : > { %4267 = sst [smem:[#allocation59_spill]] %s3724_s24 }
 0x388   : > { %4268 = sst [smem:[#allocation60_spill]] %s3726_s7 }
 0x389   : > { %s3774_s1 = sld [smem:[#allocation12 + $0x19f]] }
 0x38a   : > { %s3782_s29 = sld [smem:[#allocation12 + $0x190]] }
 0x38b   : > { %s4295_s17 = sld [smem:[#allocation51_spill]] }
 0x38c   : > { %1431 = vadd.xlane.f32.xlu2 %v1430_v57  ;;  %1411 = vadd.xlane.f32.xlu1 %v1410_v32  ;;  %s4299_s19 = sld [smem:[#allocation53_spill]] }
 0x38d   : > { %s4307_s3 = sld [smem:[#allocation57_spill]] }
 0x38e   : > { %s4309_s28 = sld [smem:[#allocation60_spill]] }
 0x38f   : > { %v1677_v22 = vpop.xlane.xlu1 %1676  ;;  %4273 = sst [smem:[#allocation64_spill]] %s3774_s1 }
 0x390   : > { %2560 = vrcp.f32 %v1677_v22 }
 0x394   : > { %1491 = vadd.xlane.f32.xlu2 %v1490_v15  ;;  %1471 = vadd.xlane.f32.xlu1 %v1470_v19  ;;  %v1078_v15 = vmul.f32 %v1077_v1, %v3559_v33  ;;  %v2562_v19 = vld [vmem:[%s4271_s5] sm:$0xff]  ;;  %s3756_s5 = sld [smem:[#allocation12 + $0x11f]] }
 0x396   : > { %v2561_v57 = vpop.eup %2560 }
 0x397   : > { %v1679_v32 = vmul.f32 %v2561_v57, %v1677_v22  ;;  %v1510_v22 = vsel %vm620_vm1, %v1509_v30, 0.0  ;;  %v4181_v30 = vstv %s3718_s16  ;;  %s3845_s16 = sld [smem:[#allocation12 + $0x11e]] }
 0x399   : > { %v1680_v36 = vsub.f32 2.0, %v1679_v32  ;;  %v4177_v32 = vstv %s3720_s25  ;;  %s3848_s25 = sld [smem:[#allocation12 + $0x19e]] }
 0x39a   : > { %4272 = sst [smem:[#allocation63_spill]] %s3756_s5 }
 0x39b   : > { %v1681_v40 = vmul.f32 %v2561_v57, %v1680_v36  ;;  %v1080_v57 = vmul.f32 %v1079_v47, %v3548_v51  ;;  %s4318_s0 = sld [smem:[#allocation63_spill]] }
 0x39c   : > { %1531 = vadd.xlane.f32.xlu2 %v1530_v52  ;;  %1511 = vadd.xlane.f32.xlu1 %v1510_v22  ;;  %v4184_v52 = vstv %s3724_s24  ;;  %v4188_v22 = vstv %s3726_s7  ;;  %s3832_s24 = sld [smem:[#allocation12 + $0x11b]] }
 0x39d   : > { %v1682_v13 = vmul.f32 %v3456_v14, %v1681_v40  ;;  %v4180_v14 = vstv %s3722_s27  ;;  %v1081_v40 = vadd.f32 %v1080_v57, %v1078_v15  ;;  %v4186_v15 = vstv %s3731_s22  ;;  %s3795_s22 = sld [smem:[#allocation12 + $0x113]] }
 0x39e   : > { %v4187_v57 = vstv %s3734_s2  ;;  %s3802_s2 = sld [smem:[#allocation12 + $0x193]] }
 0x39f   : > { %v1683_v10 = vmul.f32 %v2562_v19, %v1682_v13  ;;  %v3742_v29 = vmul.f32 0.99, %v1682_v13  ;;  %s3835_s7 = sld [smem:[#allocation12 + $0x19b]] }
 0x3a1   : > { %v1684_v33 = vsel %vm620_vm1, %v1683_v10, 0.0  ;;  %v3752_v36 = vmul.f32 0.99, %v1683_v10  ;;  %v1734_v13 = vmul.f32 %v4178_v54, %v3742_v29  ;;  %v1714_v10 = vmul.f32 %v4181_v30, %v3742_v29 }
 0x3a2   : > { %1685 = vadd.xlane.f32.xlu0 %v1684_v33  ;;  %v1794_v20 = vmul.f32 %v4186_v15, %v3742_v29  ;;  %v4191_v15 = vstv %s3774_s1  ;;  %s3821_s1 = sld [smem:[#allocation12 + $0x198]] }
 0x3a3   : > { %v1732_v51 = vmul.f32 %v4177_v32, %v3752_v36  ;;  %v1712_v19 = vmul.f32 %v4180_v14, %v3752_v36  ;;  %v1792_v32 = vmul.f32 %v4184_v52, %v3752_v36  ;;  %v1772_v54 = vmul.f32 %v4188_v22, %v3752_v36 }
 0x3a4   : > { %v1082_v14 = vmax.f32 %v1081_v40, 0.0  ;;  %v4197_v40 = vstv %s3756_s5  ;;  %s3818_s5 = sld [smem:[#allocation12 + $0x118]] }
 0x3a5   : > { %v1735_v33 = vadd.f32 %v1734_v13, %v1732_v51  ;;  %v1715_v42 = vadd.f32 %v1714_v10, %v1712_v19  ;;  %v1774_v51 = vmul.f32 %v4187_v57, %v3742_v29  ;;  %v1795_v10 = vadd.f32 %v1794_v20, %v1792_v32 }
 0x3a6   : > { %v1832_v20 = vmul.f32 %v4197_v40, %v3752_v36  ;;  %v1142_v32 = vmax.f32 %v3644_v46, 0.0 }
 0x3a7   : > { %v1736_v30 = vmax.f32 %v1735_v33, 0.0  ;;  %v1716_v34 = vmax.f32 %v1715_v42, 0.0  ;;  %v1775_v52 = vadd.f32 %v1774_v51, %v1772_v54  ;;  %v1083_v42 = vsel %vm620_vm1, %v1082_v14, 0.0 }
 0x3a8   : > { %v1384_v33 = vstv %s3770_s20  ;;  %v1796_v57 = vmax.f32 %v1795_v10, 0.0  ;;  %v1834_v14 = vmul.f32 %v4191_v15, %v3742_v29  ;;  %v1143_v46 = vsel %vm620_vm1, %v1142_v32, 0.0 }
 0x3a9   : > { %v1737_v13 = vsel %vm620_vm1, %v1736_v30, 0.0  ;;  %v1717_v19 = vsel %vm620_vm1, %v1716_v34, 0.0  ;;  %v1776_v22 = vmax.f32 %v1775_v52, 0.0  ;;  %v1386_v34 = vstv %s3782_s29  ;;  %s4293_s29 = sld [smem:[#allocation52_spill]] }
 0x3aa   : > { %1738 = vadd.xlane.f32.xlu2 %v1737_v13  ;;  %1718 = vadd.xlane.f32.xlu1 %v1717_v19  ;;  %v1385_v54 = vmul.f32 %v1384_v33, %v3628_v4  ;;  %v1387_v30 = vmul.f32 %v1386_v34, %v3646_v55  ;;  %v1797_v52 = vsel %vm620_vm1, %v1796_v57, 0.0  ;;  %v1835_v13 = vadd.f32 %v1834_v14, %v1832_v20 }
 0x3ab   : > { %1084 = vadd.xlane.f32.xlu0 %v1083_v42  ;;  %v1777_v51 = vsel %vm620_vm1, %v1776_v22, 0.0  ;;  %v1444_v10 = vstv %s3795_s22  ;;  %v4205_v15 = vstv %s3802_s2  ;;  %s4297_s22 = sld [smem:[#allocation54_spill]] }
 0x3ac   : > { %v1388_v19 = vadd.f32 %v1387_v30, %v1385_v54  ;;  %v1836_v42 = vmax.f32 %v1835_v13, 0.0  ;;  %v1445_v22 = vmul.f32 %v1444_v10, %v3628_v4  ;;  %v1447_v20 = vmul.f32 %v4205_v15, %v3646_v55 }
 0x3ad   : > { %v4203_v30 = vstv %s3818_s5 }
 0x3ae   : > { %v1389_v57 = vmax.f32 %v1388_v19, 0.0  ;;  %v1837_v32 = vsel %vm620_vm1, %v1836_v42, 0.0  ;;  %v1448_v14 = vadd.f32 %v1447_v20, %v1445_v22  ;;  %v1692_v55 = vmul.f32 %v4203_v30, %v3752_v36 }
 0x3af   : > { %v4200_v19 = vstv %s3832_s24  ;;  %v4198_v42 = vstv %s3835_s7 }
 0x3b0   : > { %v1390_v54 = vsel %vm620_vm1, %v1389_v57, 0.0  ;;  %v1449_v4 = vmax.f32 %v1448_v14, 0.0  ;;  %v1752_v22 = vmul.f32 %v4200_v19, %v3752_v36  ;;  %v1754_v20 = vmul.f32 %v4198_v42, %v3742_v29 }
 0x3b1   : > { %v4199_v14 = vstv %s3845_s16 }
 0x3b2   : > { %1798 = vadd.xlane.f32.xlu2 %v1797_v52  ;;  %1778 = vadd.xlane.f32.xlu1 %v1777_v51  ;;  %v4202_v52 = vstv %s3821_s1  ;;  %v1450_v13 = vsel %vm620_vm1, %v1449_v4, 0.0  ;;  %v4201_v4 = vstv %s3848_s25 }
 0x3b3   : > { %1144 = vadd.xlane.f32.xlu0 %v1143_v46  ;;  %v1694_v51 = vmul.f32 %v4202_v52, %v3742_v29 }
 0x3b5   : > { %v1695_v46 = vadd.f32 %v1694_v51, %v1692_v55  ;;  %v1812_v51 = vmul.f32 %v4199_v14, %v3752_v36 }
 0x3b7   : > { %v1696_v57 = vmax.f32 %v1695_v46, 0.0 }
 0x3ba   : > { %1838 = vadd.xlane.f32.xlu1 %v1837_v32  ;;  %v1697_v32 = vsel %vm620_vm1, %v1696_v57, 0.0 }
 0x3bb   : > { %1391 = vadd.xlane.f32.xlu0 %v1390_v54  ;;  %v1755_v54 = vadd.f32 %v1754_v20, %v1752_v22  ;;  %v762_v22 = vpop.xlane.xlu2 %761  ;;  %v795_v20 = vpop.xlane.xlu1 %794 }
 0x3bc   : > { %v836_v52 = vmul.f32 %v827_v28, %v762_v22 }
 0x3bd   : > { %v1756_v55 = vmax.f32 %v1755_v54, 0.0  ;;  %v775_v54 = vpop.xlane.xlu0 %774 }
 0x3bf   : > { %v1757_v46 = vsel %vm620_vm1, %v1756_v55, 0.0  ;;  %v776_v55 = vmul.f32 %v767_v48, %v762_v22 }
 0x3c3   : > { %1451 = vadd.xlane.f32.xlu0 %v1450_v13  ;;  %v1814_v13 = vmul.f32 %v4201_v4, %v3742_v29  ;;  %v855_v36 = vpop.xlane.xlu1 %854  ;;  %v796_v29 = vmul.f32 %v787_v17, %v762_v22  ;;  %v816_v4 = vmul.f32 %v807_v0, %v762_v22  ;;  %v856_v0 = vmul.f32 %v847_v8, %v762_v22 }
 0x3c5   : > { %v1815_v40 = vadd.f32 %v1814_v13, %v1812_v51  ;;  %v817_v9 = vadd.f32 %v816_v4, %v809_v63  ;;  %v876_v63 = vmul.f32 %v867_v12, %v762_v22 }
 0x3c7   : > { %v1816_v42 = vmax.f32 %v1815_v40, 0.0  ;;  %v835_v40 = vpop.xlane.xlu0 %834 }
 0x3c9   : > { %v1817_v57 = vsel %vm620_vm1, %v1816_v42, 0.0  ;;  %v612_v42 = vlaneseq }
 0x3cb   : > { %1698 = vadd.xlane.f32.xlu0 %v1697_v32  ;;  %v815_v32 = vpop.xlane.xlu2 %814  ;;  %v895_v19 = vpop.xlane.xlu1 %894  ;;  %v3883_v30 = vand.u32 127, %v612_v42 }
 0x3cd   : > { %vm800_vm2 = vcmp.eq.s32.totalorder %v3883_v30, 1  ;;  %vm780_vm3 = vcmp.eq.s32.totalorder %v3883_v30, 0  ;;  %vm820_vm4 = vcmp.eq.s32.totalorder %v3883_v30, 2  ;;  %vm840_vm5 = vcmp.eq.s32.totalorder %v3883_v30, 3 }
 0x3ce   : > { %vm860_vm6 = vcmp.eq.s32.totalorder %v3883_v30, 4  ;;  %vm880_vm7 = vcmp.eq.s32.totalorder %v3883_v30, 5  ;;  %vm900_vm8 = vcmp.eq.s32.totalorder %v3883_v30, 6  ;;  %vm920_vm9 = vcmp.eq.s32.totalorder %v3883_v30, 7 }
 0x3cf   : > { %vm1090_vm10 = vcmp.eq.s32.totalorder %v3883_v30, 8  ;;  %vm1110_vm11 = vcmp.eq.s32.totalorder %v3883_v30, 9  ;;  %vm1130_vm12 = vcmp.eq.s32.totalorder %v3883_v30, 10  ;;  %vm1150_vm13 = vcmp.eq.s32.totalorder %v3883_v30, 11 }
 0x3d0   : > { %vm1170_vm14 = vcmp.eq.s32.totalorder %v3883_v30, 12  ;;  %vm1190_vm15 = vcmp.eq.s32.totalorder %v3883_v30, 13  ;;  %vm1210_vm1 = vcmp.eq.s32.totalorder %v3883_v30, 14 }
 0x3d3   : > { %1758 = vadd.xlane.f32.xlu0 %v1757_v46  ;;  %v875_v14 = vpop.xlane.xlu2 %874  ;;  %v797_v46 = vadd.f32 %v796_v29, %v789_v6 }
 0x3d5   : > { %v798_v17 = vmul.f32 0.01, %v797_v46 }
 0x3d7   : > { %v799_v6 = vadd.f32 %v798_v17, %v795_v20  ;;  %v896_v20 = vmul.f32 %v887_v26, %v762_v22 }
 0x3d9   : > { %v803_v42 = vsel %vm800_vm2, %v799_v6, 0.0  ;;  %vm1230_vm2 = vcmp.eq.s32.totalorder %v3883_v30, 15 }
 0x3db   : > { %1818 = vadd.xlane.f32.xlu0 %v1817_v57  ;;  %v3871_v51 = vpop.xlane.xlu2 %914  ;;  %v777_v57 = vadd.f32 %v776_v55, %v769_v11  ;;  %v837_v11 = vadd.f32 %v836_v52, %v829_v37  ;;  %v818_v55 = vmul.f32 0.01, %v817_v9  ;;  %v857_v37 = vadd.f32 %v856_v0, %v849_v18 }
 0x3dc   : > { %v877_v9 = vadd.f32 %v876_v63, %v869_v39  ;;  %v897_v18 = vadd.f32 %v896_v20, %v889_v62 }
 0x3dd   : > { %v778_v48 = vmul.f32 0.01, %v777_v57  ;;  %v838_v57 = vmul.f32 0.01, %v837_v11  ;;  %v819_v4 = vadd.f32 %v818_v55, %v815_v32 }
 0x3de   : > { %v898_v39 = vmul.f32 0.01, %v897_v18 }
 0x3df   : > { %v3885_v24 = vpop.xlane.xlu0 %1071  ;;  %v779_v29 = vadd.f32 %v778_v48, %v775_v54  ;;  %v839_v52 = vadd.f32 %v838_v57, %v835_v40  ;;  %v823_v12 = vsel %vm820_vm4, %v819_v4, 0.0  ;;  %v858_v48 = vmul.f32 0.01, %v857_v37 }
 0x3e0   : > { %v916_v40 = vmul.f32 %v907_v49, %v762_v22  ;;  %v1106_v49 = vmul.f32 %v1097_v27, %v3885_v24  ;;  %v1126_v27 = vmul.f32 %v1117_v21, %v3885_v24  ;;  %vm1417_vm4 = vcmp.eq.s32.totalorder %v3883_v30, 17 }
 0x3e1   : > { %v783_v46 = vsel %vm780_vm3, %v779_v29, 0.0  ;;  %v843_v32 = vsel %vm840_vm5, %v839_v52, 0.0  ;;  %v859_v6 = vadd.f32 %v858_v48, %v855_v36  ;;  %v878_v29 = vmul.f32 0.01, %v877_v9 }
 0x3e2   : > { %v804_v54 = vadd.f32 %v803_v42, %v783_v46  ;;  %v917_v62 = vadd.f32 %v916_v40, %v909_v50  ;;  %v899_v46 = vadd.f32 %v898_v39, %v895_v19  ;;  %v1086_v36 = vmul.f32 %v1077_v1, %v3885_v24 }
 0x3e3   : > { %v879_v55 = vadd.f32 %v878_v29, %v875_v14  ;;  %v863_v42 = vsel %vm860_vm6, %v859_v6, 0.0  ;;  %v1107_v4 = vadd.f32 %v1106_v49, %v1099_v31  ;;  %vm1397_vm3 = vcmp.eq.s32.totalorder %v3883_v30, 16 }
 0x3e4   : > { %v824_v26 = vadd.f32 %v823_v12, %v804_v54  ;;  %v918_v14 = vmul.f32 0.01, %v917_v62  ;;  %v903_v19 = vsel %vm900_vm8, %v899_v46, 0.0  ;;  %v1087_v37 = vadd.f32 %v1086_v36, %v1079_v47 }
 0x3e5   : > { %v883_v63 = vsel %vm880_vm7, %v879_v55, 0.0  ;;  %v1166_v54 = vmul.f32 %v1157_v35, %v3885_v24  ;;  %v1127_v12 = vadd.f32 %v1126_v27, %v1119_v25  ;;  %v1108_v21 = vmul.f32 0.01, %v1107_v4 }
 0x3e6   : > { %v844_v11 = vadd.f32 %v843_v32, %v824_v26  ;;  %v919_v1 = vadd.f32 %v918_v14, %v3871_v51  ;;  %v1088_v31 = vmul.f32 0.01, %v1087_v37  ;;  %v1146_v47 = vmul.f32 %v1137_v5, %v3885_v24 }
 0x3e7   : > { %v3873_v13 = vpop.xlane.xlu1 %1104  ;;  %v3887_v15 = vpop.xlane.xlu2 %1124  ;;  %v1186_v51 = vmul.f32 %v1177_v43, %v3885_v24  ;;  %v1206_v25 = vmul.f32 %v1197_v2, %v3885_v24  ;;  %v1128_v40 = vmul.f32 0.01, %v1127_v12  ;;  %v1167_v5 = vadd.f32 %v1166_v54, %v1159_v45 }
 0x3e8   : > { %v3907_v8 = vpop.xlane.xlu0 %1378  ;;  %v864_v57 = vadd.f32 %v863_v42, %v844_v11  ;;  %v923_v35 = vsel %vm920_vm9, %v919_v1, 0.0  ;;  %v1109_v32 = vadd.f32 %v1108_v21, %v3873_v13  ;;  %v1147_v6 = vadd.f32 %v1146_v47, %v1139_v58 }
 0x3e9   : > { %v1187_v29 = vadd.f32 %v1186_v51, %v1179_v53  ;;  %v1226_v13 = vmul.f32 %v1217_v16, %v3885_v24  ;;  %v1129_v55 = vadd.f32 %v1128_v40, %v3887_v15  ;;  %v1168_v45 = vmul.f32 0.01, %v1167_v5 }
 0x3ea   : > { %v884_v52 = vadd.f32 %v883_v63, %v864_v57  ;;  %v1113_v2 = vsel %vm1110_vm11, %v1109_v32, 0.0  ;;  %v1207_v42 = vadd.f32 %v1206_v25, %v1199_v7  ;;  %v1148_v46 = vmul.f32 0.01, %v1147_v6 }
 0x3eb   : > { %v1393_v53 = vmul.f32 %v1384_v33, %v3907_v8  ;;  %v1188_v58 = vmul.f32 0.01, %v1187_v29  ;;  %v1227_v16 = vadd.f32 %v1226_v13, %v1219_v3  ;;  %v1133_v49 = vsel %vm1130_vm12, %v1129_v55, 0.0 }
 0x3ec   : > { %v904_v20 = vadd.f32 %v903_v19, %v884_v52  ;;  %v1413_v7 = vmul.f32 %v1404_v38, %v3907_v8  ;;  %v1433_v3 = vmul.f32 %v1424_v23, %v3907_v8  ;;  %v1208_v14 = vmul.f32 0.01, %v1207_v42 }
 0x3ed   : > { %v1394_v27 = vadd.f32 %v1393_v53, %v1386_v34  ;;  %v1228_v4 = vmul.f32 0.01, %v1227_v16  ;;  %v1473_v34 = vmul.f32 %v1464_v41, %v3907_v8  ;;  %v4298_v25 = vstv %s3802_s2  ;;  %s4304_s2 = sld [smem:[#allocation58_spill]] }
 0x3ee   : > { %v924_v26 = vadd.f32 %v923_v35, %v904_v20  ;;  %v1414_v52 = vadd.f32 %v1413_v7, %v1406_v59  ;;  %v1434_v23 = vadd.f32 %v1433_v3, %v1426_v56  ;;  %v1493_v59 = vmul.f32 %v1484_v60, %v3907_v8 }
 0x3ef   : > { %v3897_v28 = vpop.xlane.xlu1 %1164  ;;  %v3911_v17 = vpop.xlane.xlu2 %1184  ;;  %v1395_v12 = vmul.f32 0.01, %v1394_v27  ;;  %v1474_v51 = vadd.f32 %v1473_v34, %v1466_v61  ;;  %v4300_v40 = vstv %s4294_s15  ;;  %v4301_v5 = vstv %s4295_s17  ;;  %s2748_s15 = scalar_lea.hbm %s4332_s30, 16 }
 0x3f0   : > { %v1169_v36 = vadd.f32 %v1168_v45, %v3897_v28  ;;  %v1189_v63 = vadd.f32 %v1188_v58, %v3911_v17  ;;  %v1415_v41 = vmul.f32 0.01, %v1414_v52  ;;  %v1435_v60 = vmul.f32 0.01, %v1434_v23 }
 0x3f1   : > { %v1494_v61 = vadd.f32 %v1493_v59, %v4300_v40  ;;  %vm1437_vm5 = vcmp.eq.s32.totalorder %v3883_v30, 18  ;;  %v4303_v42 = vstv %s3818_s5  ;;  %v4305_v16 = vstv %s4299_s19  ;;  %s4308_s5 = sld [smem:[#allocation56_spill]] }
 0x3f2   : > { %v1173_v28 = vsel %vm1170_vm14, %v1169_v36, 0.0  ;;  %v1193_v20 = vsel %vm1190_vm15, %v1189_v63, 0.0  ;;  %vm1457_vm6 = vcmp.eq.s32.totalorder %v3883_v30, 19  ;;  %v4306_v7 = vstv %s3722_s27  ;;  %s4313_s27 = sld [smem:[#allocation59_spill]] }
 0x3f3   : > { %v1495_v53 = vmul.f32 0.01, %v1494_v61  ;;  %vm1497_vm7 = vcmp.eq.s32.totalorder %v3883_v30, 21  ;;  %vm1477_vm8 = vcmp.eq.s32.totalorder %v3883_v30, 20  ;;  %v4310_v27 = vstv %s4304_s2 }
 0x3f4   : > { %vm1537_vm9 = vcmp.eq.s32.totalorder %v3883_v30, 23  ;;  %v4312_v34 = vstv %s4307_s3  ;;  %vm1704_vm11 = vcmp.eq.s32.totalorder %v3883_v30, 24  ;;  %vm1724_vm12 = vcmp.eq.s32.totalorder %v3883_v30, 25 }
 0x3f5   : > { %vm1764_vm14 = vcmp.eq.s32.totalorder %v3883_v30, 27  ;;  %vm1784_vm15 = vcmp.eq.s32.totalorder %v3883_v30, 28 }
 0x3f7   : > { %v3918_v0 = vpop.xlane.xlu1 %1204  ;;  %v3932_v50 = vpop.xlane.xlu2 %1224 }
 0x3f8   : > { %v1209_v37 = vadd.f32 %v1208_v14, %v3918_v0  ;;  %v1229_v54 = vadd.f32 %v1228_v4, %v3932_v50  ;;  %v1453_v0 = vmul.f32 %v1444_v10, %v3907_v8 }
 0x3fa   : > { %v1233_v32 = vsel %vm1230_vm2, %v1229_v54, 0.0  ;;  %vm1824_vm2 = vcmp.eq.s32.totalorder %v3883_v30, 30 }
 0x3ff   : > { %v3946_v9 = vpop.xlane.xlu1 %1411  ;;  %v1432_v11 = vpop.xlane.xlu2 %1431 }
 0x400   : > { %v1436_v29 = vadd.f32 %v1435_v60, %v1432_v11 }
 0x407   : > { %v3980_v24 = vpop.xlane.xlu1 %1471  ;;  %v1492_v17 = vpop.xlane.xlu2 %1491 }
 0x40f   : > { %v1512_v50 = vpop.xlane.xlu1 %1511  ;;  %v1532_v58 = vpop.xlane.xlu2 %1531 }
 0x415   : > { %v3926_v22 = vpop.xlane.xlu0 %1685 }
 0x41d   : > { %v1719_v63 = vpop.xlane.xlu1 %1718 }
 0x41e   : > { %v1085_v48 = vpop.xlane.xlu0 %1084 }
 0x41f   : > { %v1089_v18 = vadd.f32 %v1088_v31, %v1085_v48  ;;  %v1213_v31 = vsel %vm1210_vm1, %v1209_v37, 0.0  ;;  %v4296_v48 = vstv %s4293_s29  ;;  %vm1804_vm1 = vcmp.eq.s32.totalorder %v3883_v30, 29 }
 0x420   : > { %v1513_v35 = vmul.f32 %v4296_v48, %v3907_v8 }
 0x421   : > { %v1093_v43 = vsel %vm1090_vm10, %v1089_v18, 0.0  ;;  %v1416_v18 = vadd.f32 %v1415_v41, %v3946_v9  ;;  %v4302_v9 = vstv %s4297_s22  ;;  %vm1517_vm10 = vcmp.eq.s32.totalorder %v3883_v30, 22 }
 0x422   : > { %v1094_v39 = vadd.f32 %v1093_v43, %v924_v26  ;;  %v1454_v26 = vadd.f32 %v1453_v0, %v4298_v25  ;;  %v1533_v43 = vmul.f32 %v4301_v5, %v3907_v8  ;;  %v4314_v0 = vstv %s4308_s5 }
 0x423   : > { %v4317_v41 = vstv %s3832_s24  ;;  %s4325_s24 = sld [smem:[#allocation64_spill]] }
 0x424   : > { %v1114_v62 = vadd.f32 %v1113_v2, %v1094_v39  ;;  %v1475_v39 = vmul.f32 0.01, %v1474_v51  ;;  %v1420_v2 = vsel %vm1417_vm4, %v1416_v18, 0.0  ;;  %v1455_v45 = vmul.f32 0.01, %v1454_v26  ;;  %v1739_v51 = vpop.xlane.xlu2 %1738 }
 0x425   : > { %v1534_v8 = vadd.f32 %v1533_v43, %v4305_v16  ;;  %v4319_v18 = vstv %s4313_s27 }
 0x426   : > { %v1145_v15 = vpop.xlane.xlu0 %1144  ;;  %v1134_v33 = vadd.f32 %v1133_v49, %v1114_v62  ;;  %v1514_v62 = vadd.f32 %v1513_v35, %v4302_v9  ;;  %v1440_v49 = vsel %vm1437_vm5, %v1436_v29, 0.0  ;;  %v1476_v36 = vadd.f32 %v1475_v39, %v3980_v24 }
 0x427   : > { %v1149_v57 = vadd.f32 %v1148_v46, %v1145_v15  ;;  %v1700_v46 = vmul.f32 %v4303_v42, %v3926_v22  ;;  %v1535_v37 = vmul.f32 0.01, %v1534_v8  ;;  %v1800_v25 = vmul.f32 %v4319_v18, %v3926_v22 }
 0x428   : > { %v1480_v23 = vsel %vm1477_vm8, %v1476_v36, 0.0  ;;  %v4323_v9 = vstv %s4318_s0  ;;  %v4324_v42 = vstv %s3845_s16  ;;  %s4330_s16 = sld [smem:[#allocation31_spill]] }
 0x429   : > { %v1153_v19 = vsel %vm1150_vm13, %v1149_v57, 0.0  ;;  %v1720_v57 = vmul.f32 %v4306_v7, %v3926_v22  ;;  %v1536_v54 = vadd.f32 %v1535_v37, %v1532_v58  ;;  %vm1744_vm13 = vcmp.eq.s32.totalorder %v3883_v30, 26 }
 0x42a   : > { %v1154_v38 = vadd.f32 %v1153_v19, %v1134_v33  ;;  %v1496_v33 = vadd.f32 %v1495_v53, %v1492_v17  ;;  %v1515_v19 = vmul.f32 0.01, %v1514_v62  ;;  %v1840_v62 = vmul.f32 %v4323_v9, %v3926_v22 }
 0x42b   : > { %v1540_v60 = vsel %vm1537_vm9, %v1536_v54, 0.0  ;;  %v4326_v58 = vstv %s4320_s4 }
 0x42c   : > { %v1174_v1 = vadd.f32 %v1173_v28, %v1154_v38  ;;  %v1740_v38 = vmul.f32 %v4310_v27, %v3926_v22  ;;  %v4311_v28 = vstv %s3821_s1  ;;  %v1516_v17 = vadd.f32 %v1515_v19, %v1512_v50  ;;  %s4316_s1 = sld [smem:[#allocation62_spill]] }
 0x42d   : > { %v1701_v4 = vadd.f32 %v1700_v46, %v4311_v28  ;;  %v1820_v46 = vmul.f32 %v4324_v42, %v3926_v22  ;;  %v1801_v16 = vadd.f32 %v1800_v25, %v4326_v58  ;;  %v4328_v27 = vstv %s3848_s25  ;;  %s4329_s25 = sld [smem:[#allocation23_spill]] }
 0x42e   : > { %v1194_v56 = vadd.f32 %v1193_v20, %v1174_v1  ;;  %v1392_v21 = vpop.xlane.xlu0 %1391  ;;  %v1721_v1 = vadd.f32 %v1720_v57, %v4312_v34  ;;  %v1500_v20 = vsel %vm1497_vm7, %v1496_v33, 0.0  ;;  %v1741_v59 = vadd.f32 %v1740_v38, %v4314_v0  ;;  %s415_s21 = scalar_lea.vmem [#allocation13], %s4330_s16 }
 0x42f   : > { %v1396_v47 = vadd.f32 %v1395_v12, %v1392_v21  ;;  %v1520_v35 = vsel %vm1517_vm10, %v1516_v17, 0.0  ;;  %v1821_v38 = vadd.f32 %v1820_v46, %v4328_v27  ;;  %s2067_s23 = sshll.u32 %s415_s21, 4  ;;  %s2068_s23 = int_to_ptr.vmem [resolvable:$true] %s2067_s23 }
 0x430   : > { %v1214_v10 = vadd.f32 %v1213_v31, %v1194_v56  ;;  %v4315_v56 = vstv %s4309_s28  ;;  %v1702_v31 = vmul.f32 0.01, %v1701_v4  ;;  %v1742_v40 = vmul.f32 0.01, %v1741_v59 }
 0x431   : > { %v1400_v13 = vsel %vm1397_vm3, %v1396_v47, 0.0  ;;  %v1780_v21 = vmul.f32 %v4315_v56, %v3926_v22  ;;  %v1760_v47 = vmul.f32 %v4317_v41, %v3926_v22  ;;  %v1822_v17 = vmul.f32 0.01, %v1821_v38  ;;  %v1856_v41 = vld [vmem:[#allocation9 + $0x10] sm:$0xff] }
 0x432   : > { %v1234_v6 = vadd.f32 %v1233_v32, %v1214_v10  ;;  %v1722_v10 = vmul.f32 0.01, %v1721_v1  ;;  %v4321_v5 = vstv %s4316_s1  ;;  %vm1844_vm3 = vcmp.eq.s32.totalorder %v3883_v30, 31 }
 0x433   : > { %v1781_v43 = vadd.f32 %v1780_v21, %v4321_v5  ;;  %v1854_v5 = vld [vmem:[#allocation9] sm:$0xff]  ;;  %s2362_s8 = sshll.u32 %s4329_s25, 3 }
 0x434   : > { %v1401_v55 = vadd.f32 %v1400_v13, %v1234_v6  ;;  %v1723_v61 = vadd.f32 %v1722_v10, %v1719_v63  ;;  %v4322_v6 = vstv %s3835_s7  ;;  %v1779_v13 = vpop.xlane.xlu1 %1778  ;;  %v1802_v63 = vmul.f32 0.01, %v1801_v16  ;;  %s2870_s7 = smov 64   ;;  %s2065_s11 = scalar_lea.hbm %s4332_s30, %s2362_s8 }
 0x435   : > { %v1761_v29 = vadd.f32 %v1760_v47, %v4322_v6  ;;  %v1782_v8 = vmul.f32 0.01, %v1781_v43  ;;  %v1885_v43 = vand.u32 4294901760, %v1854_v5  ;;  %s2069_s13 = sshll.u32 %s2065_s11, 4  ;;  %s2070_s13 = int_to_ptr.hbm [resolvable:$true] %s2069_s13 }
 0x436   : > { %v1421_v11 = vadd.f32 %v1420_v2, %v1401_v55  ;;  %v1452_v15 = vpop.xlane.xlu0 %1451  ;;  %v1743_v55 = vadd.f32 %v1742_v40, %v1739_v51  ;;  %v1727_v53 = vsel %vm1724_vm12, %v1723_v61, 0.0  ;;  %v1881_v51 = vand.u32 4294901760, %v1856_v41  ;;  %v1855_v40 = vld [vmem:[#allocation9 + $0x8] sm:$0xff]  ;;  %s2742_s20 = sshra.s32 %s2070_s13, 4  ;;  %s2743_s20 = int_to_ptr.hbm [resolvable:$true] %s2742_s20 }
 0x437   : > { %v1456_v3 = vadd.f32 %v1455_v45, %v1452_v15  ;;  %v1783_v7 = vadd.f32 %v1782_v8, %v1779_v13  ;;  %v1883_v61 = vand.u32 4294901760, %v1855_v40  ;;  %v2545_v8 = vld [vmem:[#allocation11] ss:$0 sm:$0xff]  ;;  %s2744_s12 = scalar_lea.hbm %s2743_s20, 8  ;;  %p2749_p10 = scmp.lt.s32.totalorder %s2743_s20, %s4332_s30 }
 0x438   : > { %v1441_v14 = vadd.f32 %v1440_v49, %v1421_v11  ;;  %v1762_v11 = vmul.f32 0.01, %v1761_v29  ;;  %v1747_v36 = vsel %vm1744_vm13, %v1743_v55, 0.0  ;;  %v1927_v29 = vsub.f32 %v1854_v5, %v1885_v43  ;;  %p2745_p1 = scmp.ne.s32.totalorder %s2743_s20, %s2744_s12  ;;  %p2750_p11 = scmp.lt.s32.totalorder %s2748_s15, %s2744_s12 }
 0x439   : > { %v1460_v24 = vsel %vm1457_vm6, %v1456_v3, 0.0  ;;  %v1799_v3 = vpop.xlane.xlu2 %1798  ;;  %v1787_v4 = vsel %vm1784_vm15, %v1783_v7, 0.0  ;;  %v1921_v6 = vsub.f32 %v1855_v40, %v1883_v61 }
 0x43a   : > { %v1461_v52 = vadd.f32 %v1460_v24, %v1441_v14  ;;  %v4327_v14 = vstv %s4325_s24  ;;  %v1803_v28 = vadd.f32 %v1802_v63, %v1799_v3  ;;  %p2746_p3 = pnand %p2745_p1, %p3003_p2  ;;  %p2751_p12 = por %p2750_p11, %p2749_p10 }
 0x43b   : > { %v1841_v22 = vadd.f32 %v1840_v62, %v4327_v14  ;;  %v1922_v13 = vand.u32 4294901760, %v1921_v6 }
 0x43c   : > { %v1481_v12 = vadd.f32 %v1480_v23, %v1461_v52  ;;  %v1839_v37 = vpop.xlane.xlu1 %1838  ;;  %v1807_v1 = vsel %vm1804_vm1, %v1803_v28, 0.0  ;;  %p2747_p9 = pneg %p2746_p3 }
 0x43d   : > { %v1842_v23 = vmul.f32 0.01, %v1841_v22  ;;  %v1923_v55 = vsub.f32 %v1921_v6, %v1922_v13 }
 0x43e   : > { %v1501_v50 = vadd.f32 %v1500_v20, %v1481_v12  ;;  %v1699_v48 = vpop.xlane.xlu0 %1698  ;;  %p2752_p13 = pnand %p2751_p12, %p2747_p9 }
 0x43f   : > { %v1703_v32 = vadd.f32 %v1702_v31, %v1699_v48  ;;  %v1843_v20 = vadd.f32 %v1842_v23, %v1839_v37  ;;  %v1857_v31 = vld [vmem:[#allocation9 + $0x18] sm:$0xff]  ;;  %v1915_v48 = vsub.f32 %v1856_v41, %v1881_v51  ;;  %v1924_v9 = vand.u32 4294901760, %v1923_v55 }
 0x440   : > { %v1521_v26 = vadd.f32 %v1520_v35, %v1501_v50  ;;  %v1879_v47 = vand.u32 4294901760, %v1857_v31 }
 0x441   : > { %v1707_v2 = vsel %vm1704_vm11, %v1703_v32, 0.0  ;;  %v1847_v56 = vsel %vm1844_vm3, %v1843_v20, 0.0  ;;  %v1916_v10 = vand.u32 4294901760, %v1915_v48 }
 0x442   : > { %v1541_v39 = vadd.f32 %v1540_v60, %v1521_v26  ;;  %v1909_v50 = vsub.f32 %v1857_v31, %v1879_v47  ;;  %1980 = vmatpush.msra.mxu1 %v1879_v47  ;;  %1880 = vmatpush.msrb.mxu2 %v1879_v47 }
 0x443   : > { %v1917_v32 = vsub.f32 %v1915_v48, %v1916_v10 }
 0x444   : > { %v1708_v45 = vadd.f32 %v1707_v2, %v1541_v39  ;;  %v1910_v35 = vand.u32 4294901760, %v1909_v50  ;;  %1951 = vmatpush.msra.mxu0 %v1909_v50  ;;  %1982 = vmatpush.msra.mxu1 %v1881_v51  ;;  %v1928_v39 = vand.u32 4294901760, %v1927_v29 }
 0x445   : > { %1882 = vmatpush.msrb.mxu2 %v1881_v51  ;;  %v1918_v18 = vand.u32 4294901760, %v1917_v32 }
 0x446   : > { %v1728_v15 = vadd.f32 %v1727_v53, %v1708_v45  ;;  %v1759_v49 = vpop.xlane.xlu0 %1758  ;;  %v1911_v30 = vsub.f32 %v1909_v50, %v1910_v35  ;;  %1954 = vmatpush.msra.mxu0 %v1915_v48  ;;  %1984 = vmatpush.msra.mxu1 %v1883_v61  ;;  %v1929_v2 = vsub.f32 %v1927_v29, %v1928_v39 }
 0x447   : > { %v1763_v57 = vadd.f32 %v1762_v11, %v1759_v49  ;;  %1884 = vmatpush.msrb.mxu2 %v1883_v61 }
 0x448   : > { %v1748_v33 = vadd.f32 %v1747_v36, %v1728_v15  ;;  %v1912_v60 = vand.u32 4294901760, %v1911_v30  ;;  %1957 = vmatpush.msra.mxu0 %v1921_v6  ;;  %1986 = vmatpush.msra.mxu1 %v1885_v43 }
 0x449   : > { %v1767_v19 = vsel %vm1764_vm14, %v1763_v57, 0.0  ;;  %1886 = vmatpush.msrb.mxu2 %v1885_v43 }
 0x44a   : > { %v1768_v24 = vadd.f32 %v1767_v19, %v1748_v33  ;;  %1913 = vmatpush.msrb.mxu3 %v1912_v60  ;;  %1960 = vmatpush.msra.mxu0 %v1927_v29 }
 0x44b   : > { %2009 = vmatpush.msra.mxu2 %v1910_v35 }
 0x44c   : > { %v1788_v52 = vadd.f32 %v1787_v4, %v1768_v24  ;;  %1919 = vmatpush.msrb.mxu3 %v1918_v18 }
 0x44d   : > { %2013 = vmatpush.msra.mxu2 %v1916_v10 }
 0x44e   : > { %v1819_v34 = vpop.xlane.xlu0 %1818  ;;  %v1808_v12 = vadd.f32 %v1807_v1, %v1788_v52  ;;  %1925 = vmatpush.msrb.mxu3 %v1924_v9 }
 0x44f   : > { %v1823_v54 = vadd.f32 %v1822_v17, %v1819_v34  ;;  %2017 = vmatpush.msra.mxu2 %v1922_v13 }
 0x451   : > { %v1827_v0 = vsel %vm1824_vm2, %v1823_v54, 0.0  ;;  %2021 = vmatpush.msra.mxu2 %v1928_v39 }
 0x452   : > { %v1828_v59 = vadd.f32 %v1827_v0, %v1808_v12 }
 0x454   : > { %v1848_v21 = vadd.f32 %v1847_v56, %v1828_v59 }
 0x456   : > { %1850 = vrot.lane.b32.xlu2 %v1848_v21, %s2870_s7 }
 0x4b0   : > { %v1851_v25 = vpop.permute.xlu2 %1850 }
 0x4b1   : > { %v1853_v26 = vadd.f32 %v1851_v25, %v3059_v44  ;;  %v1930_v44 = vand.u32 4294901760, %v1929_v2 }
 0x4b3   : > { %1863 = vrot.lane.b32.xlu0 %v1853_v26, %s2870_s7  ;;  %1931 = vmatpush.msrb.mxu3 %v1930_v44 }
 0x4b5   : > { %2040 = vmatpush.msra.mxu3 %v1879_v47 }
 0x4b7   : > { %2042 = vmatpush.msra.mxu3 %v1881_v51 }
 0x4b9   : > { %2044 = vmatpush.msra.mxu3 %v1883_v61 }
 0x4bb   : > { %2046 = vmatpush.msra.mxu3 %v1885_v43 }
 0x525   : > { %v1864_v62 = vpop.permute.xlu0 %1863 }
 0x526   : > { %v1865_v45 = vsel %vm423_vm0, %v1864_v62, 0 }
 0x527   : > { %v1887_v42 = vand.u32 4294901760, %v1865_v45 }
 0x529   : > { %v1888_v46 = vsub.f32 %v1865_v45, %v1887_v42  ;;  %1933 = vmatmul.f32.vlgmr.msrb.gmra.mxu3 %v1887_v42 }
 0x52b   : > { %v1889_v53 = vand.u32 4294901760, %v1888_v46  ;;  %1963 = vmatmul.f32.vlgmr.msra.gmra.mxu0 %v1888_v46 }
 0x52d   : > { %1990 = vmatmul.f32.vlgmr.msra.gmra.mxu1 %v1889_v53  ;;  %v1890_v58 = vsub.f32 %v1888_v46, %v1889_v53 }
 0x52f   : > { %v1891_v16 = vand.u32 4294901760, %v1890_v58 }
 0x531   : > { %1892 = vmatmul.f32.vlgmr.msrb.gmra.mxu2 %v1891_v16  ;;  %2048 = vmatmul.f32.vlgmr.msra.gmra.mxu3 %v1887_v42 }
 0x539   : > { %2023 = vmatmul.f32.vlgmr.msra.gmra.mxu2 %v1887_v42 }
 0x5a8   : > { %v1964_v7 = vpop.f32.mrf.mxu0 }
 0x5aa   : > { %v1991_v3 = vpop.f32.mrf.mxu1 }
 0x5ac   : > { %v1934_v11 = vpop.f32.mrf.mxu3 }
 0x5b4   : > { %v1893_v15 = vpop.f32.mrf.mxu2  ;;  %v2049_v22 = vpop.f32.mrf.mxu3 }
 0x5b5   : > { %v1894_v49 = vadd.f32 %v2545_v8, %v1893_v15 }
 0x5b7   : > { %v1935_v36 = vadd.f32 %v1934_v11, %v1894_v49 }
 0x5b9   : > { %v1965_v57 = vadd.f32 %v1964_v7, %v1935_v36 }
 0x5bb   : > { %v1992_v33 = vadd.f32 %v1991_v3, %v1965_v57 }
 0x5bc   : > { %v2024_v63 = vpop.f32.mrf.mxu2 }
 0x5bd   : > { %v2025_v14 = vadd.f32 %v2024_v63, %v1992_v33 }
 0x5bf   : > { %v2050_v19 = vadd.f32 %v2049_v22, %v2025_v14 }
 0x5c1   : > { %2052 = vst.msk [vmem:[%s415_s21] sm:$0xff] %vm423_vm0, %v2050_v19 }
 0x5c2   : > { %2755 = shalt.err (!%p2752_p13)
}
 0x5c3   : > { %2385 = dma.vmem_to_hbm [thread:$0]  (%p3003_p2), %s2068_s23, 128, %s2070_s13, %s2054_s9  }
 0x5c4 PF: > { %s4334_s19 = sld [smem:[#allocation20_spill]]  ;;  %p2408_p0 = pnand %p2221_p6, %p3010_p5 }
 0x5c5   : > { %s4336_s3 = sld [smem:[#allocation25_spill]] }
 0x5c6   : > { %p2409_p4 = pneg %p2408_p0 }
 0x5ca   : > { %s2081_s5 = sand.u32 1, %s4334_s19  }
 0x5cb   : > { %s2082_s28 = scalar_lea.sflag [#allocation4], %s2081_s5 }
 0x5cc   : > { %2801 = dma.done.wait (%p2409_p4), %s2082_s28, 128  }
 0x5cd   : > { %2803 = vsyncadd (%p2409_p4), %s2082_s28, 4294967168  ;;  %s28_s29 = sadd.s32 1, %s4336_s3   ;;  %s4337_s24 = sld [smem:[#allocation21_spill]] }
 0x5ce   : > { %p25_p7 = scmp.ge.s32.totalorder %s28_s29, 4   ;;  %s4338_s25 = sld [smem:[#allocation22_spill]] }
 0x5cf   : > { %s4339_s26 = sld [smem:[#allocation28_spill]] }
 0x5d0   : > { %s4340_s27 = sld [smem:[#allocation24_spill]]  ;;  %27 = sbr.rel (!%p25_p7) target bundleno = 19 (0x13), region = 123 }
 0x5d1   : > { %s4341_s28 = sld [smem:[#allocation26_spill]] }
 0x5d5   :  { %2088 = vsyncpa [#allocation3], 1 }
 0x5d6   :  { %2090 = vsyncpa [#allocation3 + $0x1], 1 }
 0x5d7   :  { %2091 = vsyncpa [#allocation7], 1 }
 0x5d8   :  { %2093 = vsyncpa [#allocation7 + $0x1], 1 }
 0x5d9   :  { %2094 = vsyncpa [#allocation10], 1 }
 0x5da   :  { %2095 = vsyncpa [#allocation4], 1 }
 0x5db   :  { %2097 = vsyncpa [#allocation4 + $0x1], 1 }
 0x5dc   :  { %2098 = vsyncpa [#allocation5], 1 }
 0x5dd   :  { %2100 = vsyncpa [#allocation5 + $0x1], 1 }

</bundles_post_ra>
